<compile_context>
chip_gen: v7x
topology: tpu7x:2x2x1
jax: 0.10.0
libtpu: 0.0.40
codegen_flags: <defaults>
</compile_context>

<pallas_src>
import functools
import math

import jax
import jax.numpy as jnp
from jax.experimental import pallas as pl
from jax.experimental.pallas import tpu as pltpu

VMEM_SPEC = pl.BlockSpec(memory_space=pltpu.MemorySpace.VMEM)
LN_EPS = 1e-5          # nn.LayerNorm default
NEG_INF = -1e30        # softmax key-mask bias for padded tokens


def _layernorm(x, gamma, beta):
    mu = jnp.mean(x, axis=-1, keepdims=True)
    var = jnp.mean((x - mu) ** 2, axis=-1, keepdims=True)
    return (x - mu) * jax.lax.rsqrt(var + LN_EPS) * gamma + beta


# ---------------------------------------------------------------------------
# Single fused kernel: embed + class/pos token -> n_layers encoder blocks -> head
# ---------------------------------------------------------------------------
def vit_kernel(num_heads, n_layers, seq_real,
               patches_ref, ew_ref, hw1_ref, misc_ref, lw_ref, lp_ref,
               out_ref):
    S = patches_ref.shape[0]           # padded sequence length (incl. cls slot)
    D = ew_ref.shape[1]
    H = num_heads
    dh = D // H
    bf16 = jnp.bfloat16

    # Key-side mask: padded tokens (columns >= seq_real) never enter a softmax.
    col = jax.lax.broadcasted_iota(jnp.int32, (1, S), 1)
    key_bias = jnp.where(col < seq_real, 0.0, NEG_INF).astype(jnp.float32)

    misc = misc_ref[...]               # (7, D) f32 packed small params
    cls_pos = misc[0:1]                # class token + positional embedding
    eb_pos = misc[1:2]                 # embed bias + positional embedding

    # ----- patch embedding + class token + positional embedding --------------
    proj = jnp.dot(patches_ref[...], ew_ref[...],
                   preferred_element_type=jnp.float32) + eb_pos
    row = jax.lax.broadcasted_iota(jnp.int32, (S, 1), 0)
    # row 0 = class token; rows 1..n_patch = projected patches; rest = padding
    x = jnp.where(row == 0, cls_pos, proj)                        # (S, D) f32

    # ----- encoder stack (static loop, all weights resident in VMEM) ---------
    # lw_ref[l] column layout: [ wqkv (3D) | wo (D) | w1 (D) | w2 (D) ]  (bf16)
    # lp_ref[l] row layout:    [bq,bk,bv, bo, ln1g,ln1b, b1, b2, ln2g,ln2b] (f32)
    for l in range(n_layers):
        # fused QKV projection: one lane-dense (S,D)@(D,3D) matmul
        qkv = jnp.dot(x.astype(bf16), lw_ref[l, :, 0:3 * D],
                      preferred_element_type=jnp.float32)
        qb = (qkv[:, 0:D] + lp_ref[l, 0:1, :]).astype(bf16)   # scale folded in
        kb = (qkv[:, D:2 * D] + lp_ref[l, 1:2, :]).astype(bf16)
        vb = (qkv[:, 2 * D:3 * D] + lp_ref[l, 2:3, :]).astype(bf16)

        # per-head attention on tiny (S, dh) tiles, issued from the dense slabs
        ctx_parts = []
        for h in range(H):
            sl = slice(h * dh, (h + 1) * dh)
            s = jax.lax.dot_general(                           # q_h @ k_h^T
                qb[:, sl], kb[:, sl], (((1,), (1,)), ((), ())),
                preferred_element_type=jnp.float32) + key_bias
            s = s - jnp.max(s, axis=-1, keepdims=True)
            p = jnp.exp(s)
            p = p * pl.reciprocal(jnp.sum(p, axis=-1, keepdims=True),
                                  approx=True)
            ctx_parts.append(jnp.dot(p.astype(bf16), vb[:, sl],
                                     preferred_element_type=jnp.float32))
        ctx = jnp.concatenate(ctx_parts, axis=-1)              # (S, D) f32

        # fused output projection: one (S,D)@(D,D) matmul
        attn = jnp.dot(ctx.astype(bf16), lw_ref[l, :, 3 * D:4 * D],
                       preferred_element_type=jnp.float32) + lp_ref[l, 3:4, :]

        x1 = _layernorm(x + attn, lp_ref[l, 4:5, :], lp_ref[l, 5:6, :])
        h1 = jnp.maximum(
            jnp.dot(x1.astype(bf16), lw_ref[l, :, 4 * D:5 * D],
                    preferred_element_type=jnp.float32) + lp_ref[l, 6:7, :],
            0.0)
        ffn = jnp.dot(h1.astype(bf16), lw_ref[l, :, 5 * D:6 * D],
                      preferred_element_type=jnp.float32) + lp_ref[l, 7:8, :]
        x = _layernorm(x1 + ffn, lp_ref[l, 8:9, :], lp_ref[l, 9:10, :])

    # ----- MLP head on the class token ---------------------------------------
    # misc rows 2.. : [head_ln_g, head_ln_b, head_b1, head_w2_row, head_b2]
    cls_tok = _layernorm(x[0:1, :], misc[2:3], misc[3:4])
    hh = jnp.dot(cls_tok.astype(bf16), hw1_ref[...],
                 preferred_element_type=jnp.float32) + misc[4:5]
    hh = 0.5 * hh * (1.0 + jax.lax.erf(hh * (1.0 / math.sqrt(2.0))))  # exact GELU
    # TODO(synk): nn.Dropout(p=0.1) is identity at inference; training-mode dropout not modeled.
    # final (D -> 1) projection as VPU multiply + cross-lane reduce (no f32 MXU op)
    out_ref[...] = jnp.sum(hh * misc[5:6], axis=-1, keepdims=True) + misc[6:7, 0:1]


# ---------------------------------------------------------------------------
# Parameter init (deterministic, packed matmul-ready layouts, bf16 matmul weights)
# ---------------------------------------------------------------------------
def init_params(key, *, latent, patch_size, n_channels, n_layers, num_heads):
    assert latent % num_heads == 0
    in_dim = patch_size * patch_size * n_channels
    dh = latent // num_heads
    scale = 1.0 / math.sqrt(dh)
    bf16 = jnp.bfloat16

    def nrm(k, shape, std=0.02):
        return std * jax.random.normal(k, shape, jnp.float32)

    keys = iter(jax.random.split(key, 20))

    # bf16 matmul weights, matmul-ready (in, out) layout
    embed_w = nrm(next(keys), (in_dim, latent)).astype(bf16)
    wq = nrm(next(keys), (n_layers, latent, latent)) * scale   # softmax scale folded in
    wk = nrm(next(keys), (n_layers, latent, latent))
    wv = nrm(next(keys), (n_layers, latent, latent))
    wo = nrm(next(keys), (n_layers, latent, latent))
    w1 = nrm(next(keys), (n_layers, latent, latent))
    w2 = nrm(next(keys), (n_layers, latent, latent))
    layer_w = jnp.concatenate([wq, wk, wv, wo, w1, w2], axis=-1).astype(bf16)

    # per-layer small f32 params, packed row-wise:
    # [bq, bk, bv, bo, ln1_g, ln1_b, b1, b2, ln2_g, ln2_b]
    bq = nrm(next(keys), (n_layers, 1, latent)) * scale
    bk = nrm(next(keys), (n_layers, 1, latent))
    bv = nrm(next(keys), (n_layers, 1, latent))
    bo = nrm(next(keys), (n_layers, 1, latent))
    b1 = nrm(next(keys), (n_layers, 1, latent))
    b2 = nrm(next(keys), (n_layers, 1, latent))
    ones = jnp.ones((n_layers, 1, latent), jnp.float32)
    zeros = jnp.zeros((n_layers, 1, latent), jnp.float32)
    layer_f32 = jnp.concatenate(
        [bq, bk, bv, bo, ones, zeros, b1, b2, ones, zeros], axis=1)

    # embedding / head small f32 params, packed:
    # [cls+pos, embed_b+pos, head_ln_g, head_ln_b, head_b1, head_w2_row, head_b2]
    cls = jax.random.normal(next(keys), (1, latent), jnp.float32)
    pos = jax.random.normal(next(keys), (1, latent), jnp.float32)
    eb = nrm(next(keys), (1, latent))
    hb1 = nrm(next(keys), (1, latent))
    hw2 = nrm(next(keys), (1, latent))          # final Linear(D,1) weight as a row
    hb2 = nrm(next(keys), (1, latent))          # only element [0,0] is used
    misc = jnp.concatenate(
        [cls + pos, eb + pos,
         jnp.ones((1, latent), jnp.float32), jnp.zeros((1, latent), jnp.float32),
         hb1, hw2, hb2], axis=0)

    head_w1 = nrm(next(keys), (latent, latent)).astype(bf16)

    return {"embed_w": embed_w, "head_w1": head_w1, "misc": misc,
            "layer_w": layer_w, "layer_f32": layer_f32}


# ---------------------------------------------------------------------------
# Wrapper: minimal layout glue (patchify) + single fused pallas_call
# ---------------------------------------------------------------------------
def value_network_forward(state_input, params, *, patch_size, num_heads):
    # state_input: (1, C, H, W) -> squeeze leading dim (as in the PyTorch module)
    x = state_input[0]
    c, h, w = x.shape
    pad_h = (-h) % patch_size
    pad_w = (-w) % patch_size
    if pad_h or pad_w:
        x = jnp.pad(x, ((0, 0), (0, pad_h), (0, pad_w)))
    c, h, w = x.shape
    hp, wp = h // patch_size, w // patch_size
    # einops 'c (h h1) (w w1) -> (h w) (h1 w1 c)'
    patches = jnp.transpose(
        x.reshape(c, hp, patch_size, wp, patch_size),
        (1, 3, 2, 4, 0)).reshape(hp * wp, patch_size * patch_size * c)

    n_patch = hp * wp
    seq_real = n_patch + 1                       # + class token
    s_pad = ((seq_real + 7) // 8) * 8            # pad seq to a full sublane tile
    # single pad: row 0 = class-token slot, trailing rows = padding
    patches_pad = jnp.pad(patches.astype(jnp.bfloat16),
                          ((1, s_pad - seq_real), (0, 0)))

    n_layers = params["layer_w"].shape[0]
    kern = functools.partial(vit_kernel, num_heads, n_layers, seq_real)
    out = pl.pallas_call(
        kern,
        out_shape=jax.ShapeDtypeStruct((1, 1), jnp.float32),
        in_specs=[VMEM_SPEC] * 6,
        out_specs=VMEM_SPEC,
        compiler_params=pltpu.CompilerParams(vmem_limit_bytes=32 * 1024 * 1024),
    )(patches_pad, params["embed_w"], params["head_w1"],
      params["misc"], params["layer_w"], params["layer_f32"])
    return out.reshape(1)


if __name__ == "__main__":
    # small-but-consistent config: latent 128 (8 heads x 16), patch 8, 3 channels,
    # 16x16 image -> 4 patches + cls token = 5 tokens (padded to 8), 2 blocks.
    LATENT = 128
    HEADS = 8
    PATCH = 8
    CHANNELS = 3
    N_LAYERS = 2

    key = jax.random.PRNGKey(0)
    k_x, k_p = jax.random.split(key)
    state_input = jax.random.normal(k_x, (1, CHANNELS, 16, 16), jnp.float32)
    params = init_params(k_p, latent=LATENT, patch_size=PATCH,
                         n_channels=CHANNELS, n_layers=N_LAYERS, num_heads=HEADS)

    fwd = jax.jit(functools.partial(value_network_forward,
                                    patch_size=PATCH, num_heads=HEADS))
    out = jax.block_until_ready(fwd(state_input, params))
    assert out.shape == (1,) and bool(jnp.all(jnp.isfinite(out)))
    print("KERNEL_OK")
</pallas_src>

<mosaic_0001>
module attributes {stable_mosaic.version = 11 : i64} {
  func.func @vit_kernel(%arg0: memref<8x192xbf16, #tpu.memory_space<vmem>>, %arg1: memref<192x128xbf16, #tpu.memory_space<vmem>>, %arg2: memref<128x128xbf16, #tpu.memory_space<vmem>>, %arg3: memref<7x128xf32, #tpu.memory_space<vmem>>, %arg4: memref<2x128x768xbf16, #tpu.memory_space<vmem>>, %arg5: memref<2x10x128xf32, #tpu.memory_space<vmem>>, %arg6: memref<1x1xf32, #tpu.memory_space<vmem>>) attributes {dimension_semantics = [], scalar_prefetch = 0 : i64, scratch_operands = 0 : i64, tpu.core_type = #tpu.core_type<tc>} {
    %0 = tpu.iota {dimensions = array<i32: 1>} : vector<1x8xi32>
    %c5_i32 = arith.constant 5 : i32
    %1 = vector.broadcast %c5_i32 : i32 to vector<1x8xi32>
    %2 = arith.cmpi slt, %0, %1 : vector<1x8xi32>
    %cst = arith.constant 0.000000e+00 : f32
    %cst_0 = arith.constant -1.000000e+30 : f32
    %3 = vector.broadcast %cst : f32 to vector<1x8xf32>
    %4 = vector.broadcast %cst_0 : f32 to vector<1x8xf32>
    %5 = arith.select %2, %3, %4 : vector<1x8xi1>, vector<1x8xf32>
    %c0 = arith.constant 0 : index
    %c0_1 = arith.constant 0 : index
    %6 = vector.load %arg3[%c0, %c0_1] : memref<7x128xf32, #tpu.memory_space<vmem>>, vector<7x128xf32>
    %7 = vector.extract_strided_slice %6 {offsets = [0, 0], sizes = [1, 128], strides = [1, 1]} : vector<7x128xf32> to vector<1x128xf32>
    %8 = vector.extract_strided_slice %6 {offsets = [1, 0], sizes = [1, 128], strides = [1, 1]} : vector<7x128xf32> to vector<1x128xf32>
    %c0_2 = arith.constant 0 : index
    %c0_3 = arith.constant 0 : index
    %9 = vector.load %arg0[%c0_2, %c0_3] : memref<8x192xbf16, #tpu.memory_space<vmem>>, vector<8x192xbf16>
    %c0_4 = arith.constant 0 : index
    %c0_5 = arith.constant 0 : index
    %10 = vector.load %arg1[%c0_4, %c0_5] : memref<192x128xbf16, #tpu.memory_space<vmem>>, vector<192x128xbf16>
    %cst_6 = arith.constant dense<0.000000e+00> : vector<8x128xf32>
    %11 = tpu.matmul %9, %10, %cst_6 {dimension_numbers = #tpu.dot_dimension_numbers<[1], [0], [0], [1], [0, 0, 1, 1], [], []>} : vector<8x192xbf16>, vector<192x128xbf16>, vector<8x128xf32> -> vector<8x128xf32>
    %12 = vector.broadcast %8 : vector<1x128xf32> to vector<8x128xf32>
    %13 = arith.addf %11, %12 : vector<8x128xf32>
    %14 = tpu.iota {dimensions = array<i32: 0>} : vector<8x1xi32>
    %c0_i32 = arith.constant 0 : i32
    %15 = vector.broadcast %c0_i32 : i32 to vector<8x1xi32>
    %16 = arith.cmpi eq, %14, %15 : vector<8x1xi32>
    %17 = vector.shape_cast %16 : vector<8x1xi1> to vector<8x1xi1>
    %18 = vector.broadcast %17 : vector<8x1xi1> to vector<8x128xi1>
    %19 = vector.shape_cast %7 : vector<1x128xf32> to vector<1x128xf32>
    %20 = vector.broadcast %19 : vector<1x128xf32> to vector<8x128xf32>
    %21 = arith.select %18, %20, %13 : vector<8x128xi1>, vector<8x128xf32>
    %22 = arith.truncf %21 : vector<8x128xf32> to vector<8x128xbf16>
    %c0_7 = arith.constant 0 : index
    %c0_8 = arith.constant 0 : index
    %c0_9 = arith.constant 0 : index
    %23 = vector.load %arg4[%c0_7, %c0_8, %c0_9] : memref<2x128x768xbf16, #tpu.memory_space<vmem>>, vector<1x128x384xbf16>
    %24 = vector.shape_cast %23 : vector<1x128x384xbf16> to vector<128x384xbf16>
    %cst_10 = arith.constant dense<0.000000e+00> : vector<8x384xf32>
    %25 = tpu.matmul %22, %24, %cst_10 {dimension_numbers = #tpu.dot_dimension_numbers<[1], [0], [0], [1], [0, 0, 1, 1], [], []>} : vector<8x128xbf16>, vector<128x384xbf16>, vector<8x384xf32> -> vector<8x384xf32>
    %26 = vector.extract_strided_slice %25 {offsets = [0, 0], sizes = [8, 128], strides = [1, 1]} : vector<8x384xf32> to vector<8x128xf32>
    %c0_11 = arith.constant 0 : index
    %c0_12 = arith.constant 0 : index
    %c0_13 = arith.constant 0 : index
    %27 = vector.load %arg5[%c0_11, %c0_12, %c0_13] : memref<2x10x128xf32, #tpu.memory_space<vmem>>, vector<1x1x128xf32>
    %28 = vector.shape_cast %27 : vector<1x1x128xf32> to vector<1x128xf32>
    %29 = vector.broadcast %28 : vector<1x128xf32> to vector<8x128xf32>
    %30 = arith.addf %26, %29 : vector<8x128xf32>
    %31 = arith.truncf %30 : vector<8x128xf32> to vector<8x128xbf16>
    %32 = vector.extract_strided_slice %25 {offsets = [0, 128], sizes = [8, 128], strides = [1, 1]} : vector<8x384xf32> to vector<8x128xf32>
    %c0_14 = arith.constant 0 : index
    %c1 = arith.constant 1 : index
    %c0_15 = arith.constant 0 : index
    %33 = vector.load %arg5[%c0_14, %c1, %c0_15] : memref<2x10x128xf32, #tpu.memory_space<vmem>>, vector<1x1x128xf32>
    %34 = vector.shape_cast %33 : vector<1x1x128xf32> to vector<1x128xf32>
    %35 = vector.broadcast %34 : vector<1x128xf32> to vector<8x128xf32>
    %36 = arith.addf %32, %35 : vector<8x128xf32>
    %37 = arith.truncf %36 : vector<8x128xf32> to vector<8x128xbf16>
    %38 = vector.extract_strided_slice %25 {offsets = [0, 256], sizes = [8, 128], strides = [1, 1]} : vector<8x384xf32> to vector<8x128xf32>
    %c0_16 = arith.constant 0 : index
    %c2 = arith.constant 2 : index
    %c0_17 = arith.constant 0 : index
    %39 = vector.load %arg5[%c0_16, %c2, %c0_17] : memref<2x10x128xf32, #tpu.memory_space<vmem>>, vector<1x1x128xf32>
    %40 = vector.shape_cast %39 : vector<1x1x128xf32> to vector<1x128xf32>
    %41 = vector.broadcast %40 : vector<1x128xf32> to vector<8x128xf32>
    %42 = arith.addf %38, %41 : vector<8x128xf32>
    %43 = arith.truncf %42 : vector<8x128xf32> to vector<8x128xbf16>
    %44 = vector.extract_strided_slice %31 {offsets = [0, 0], sizes = [8, 16], strides = [1, 1]} : vector<8x128xbf16> to vector<8x16xbf16>
    %45 = vector.extract_strided_slice %37 {offsets = [0, 0], sizes = [8, 16], strides = [1, 1]} : vector<8x128xbf16> to vector<8x16xbf16>
    %cst_18 = arith.constant dense<0.000000e+00> : vector<8x8xf32>
    %46 = tpu.matmul %44, %45, %cst_18 {dimension_numbers = #tpu.dot_dimension_numbers<[1], [1], [0], [0], [0, 0, 1, 0], [], []>} : vector<8x16xbf16>, vector<8x16xbf16>, vector<8x8xf32> -> vector<8x8xf32>
    %47 = vector.broadcast %5 : vector<1x8xf32> to vector<8x8xf32>
    %48 = arith.addf %46, %47 : vector<8x8xf32>
    %cst_19 = arith.constant dense<0xFF800000> : vector<8xf32>
    %49 = vector.multi_reduction <maximumf>, %48, %cst_19 [1] : vector<8x8xf32> to vector<8xf32>
    %50 = vector.shape_cast %49 : vector<8xf32> to vector<8x1xf32>
    %51 = vector.broadcast %50 : vector<8x1xf32> to vector<8x8xf32>
    %52 = arith.subf %48, %51 : vector<8x8xf32>
    %53 = math.exp %52 : vector<8x8xf32>
    %cst_20 = arith.constant dense<0.000000e+00> : vector<8xf32>
    %54 = vector.multi_reduction <add>, %53, %cst_20 [1] : vector<8x8xf32> to vector<8xf32>
    %55 = vector.shape_cast %54 : vector<8xf32> to vector<8x1xf32>
    %56 = tpu.reciprocal %55 {approx = true} : vector<8x1xf32> -> vector<8x1xf32>
    %57 = vector.broadcast %56 : vector<8x1xf32> to vector<8x8xf32>
    %58 = arith.mulf %53, %57 : vector<8x8xf32>
    %59 = arith.truncf %58 : vector<8x8xf32> to vector<8x8xbf16>
    %60 = vector.extract_strided_slice %43 {offsets = [0, 0], sizes = [8, 16], strides = [1, 1]} : vector<8x128xbf16> to vector<8x16xbf16>
    %cst_21 = arith.constant dense<0.000000e+00> : vector<8x16xf32>
    %61 = tpu.matmul %59, %60, %cst_21 {dimension_numbers = #tpu.dot_dimension_numbers<[1], [0], [0], [1], [0, 0, 1, 1], [], []>} : vector<8x8xbf16>, vector<8x16xbf16>, vector<8x16xf32> -> vector<8x16xf32>
    %62 = vector.extract_strided_slice %31 {offsets = [0, 16], sizes = [8, 16], strides = [1, 1]} : vector<8x128xbf16> to vector<8x16xbf16>
    %63 = vector.extract_strided_slice %37 {offsets = [0, 16], sizes = [8, 16], strides = [1, 1]} : vector<8x128xbf16> to vector<8x16xbf16>
    %cst_22 = arith.constant dense<0.000000e+00> : vector<8x8xf32>
    %64 = tpu.matmul %62, %63, %cst_22 {dimension_numbers = #tpu.dot_dimension_numbers<[1], [1], [0], [0], [0, 0, 1, 0], [], []>} : vector<8x16xbf16>, vector<8x16xbf16>, vector<8x8xf32> -> vector<8x8xf32>
    %65 = vector.broadcast %5 : vector<1x8xf32> to vector<8x8xf32>
    %66 = arith.addf %64, %65 : vector<8x8xf32>
    %cst_23 = arith.constant dense<0xFF800000> : vector<8xf32>
    %67 = vector.multi_reduction <maximumf>, %66, %cst_23 [1] : vector<8x8xf32> to vector<8xf32>
    %68 = vector.shape_cast %67 : vector<8xf32> to vector<8x1xf32>
    %69 = vector.broadcast %68 : vector<8x1xf32> to vector<8x8xf32>
    %70 = arith.subf %66, %69 : vector<8x8xf32>
    %71 = math.exp %70 : vector<8x8xf32>
    %cst_24 = arith.constant dense<0.000000e+00> : vector<8xf32>
    %72 = vector.multi_reduction <add>, %71, %cst_24 [1] : vector<8x8xf32> to vector<8xf32>
    %73 = vector.shape_cast %72 : vector<8xf32> to vector<8x1xf32>
    %74 = tpu.reciprocal %73 {approx = true} : vector<8x1xf32> -> vector<8x1xf32>
    %75 = vector.broadcast %74 : vector<8x1xf32> to vector<8x8xf32>
    %76 = arith.mulf %71, %75 : vector<8x8xf32>
    %77 = arith.truncf %76 : vector<8x8xf32> to vector<8x8xbf16>
    %78 = vector.extract_strided_slice %43 {offsets = [0, 16], sizes = [8, 16], strides = [1, 1]} : vector<8x128xbf16> to vector<8x16xbf16>
    %cst_25 = arith.constant dense<0.000000e+00> : vector<8x16xf32>
    %79 = tpu.matmul %77, %78, %cst_25 {dimension_numbers = #tpu.dot_dimension_numbers<[1], [0], [0], [1], [0, 0, 1, 1], [], []>} : vector<8x8xbf16>, vector<8x16xbf16>, vector<8x16xf32> -> vector<8x16xf32>
    %80 = vector.extract_strided_slice %31 {offsets = [0, 32], sizes = [8, 16], strides = [1, 1]} : vector<8x128xbf16> to vector<8x16xbf16>
    %81 = vector.extract_strided_slice %37 {offsets = [0, 32], sizes = [8, 16], strides = [1, 1]} : vector<8x128xbf16> to vector<8x16xbf16>
    %cst_26 = arith.constant dense<0.000000e+00> : vector<8x8xf32>
    %82 = tpu.matmul %80, %81, %cst_26 {dimension_numbers = #tpu.dot_dimension_numbers<[1], [1], [0], [0], [0, 0, 1, 0], [], []>} : vector<8x16xbf16>, vector<8x16xbf16>, vector<8x8xf32> -> vector<8x8xf32>
    %83 = vector.broadcast %5 : vector<1x8xf32> to vector<8x8xf32>
    %84 = arith.addf %82, %83 : vector<8x8xf32>
    %cst_27 = arith.constant dense<0xFF800000> : vector<8xf32>
    %85 = vector.multi_reduction <maximumf>, %84, %cst_27 [1] : vector<8x8xf32> to vector<8xf32>
    %86 = vector.shape_cast %85 : vector<8xf32> to vector<8x1xf32>
    %87 = vector.broadcast %86 : vector<8x1xf32> to vector<8x8xf32>
    %88 = arith.subf %84, %87 : vector<8x8xf32>
    %89 = math.exp %88 : vector<8x8xf32>
    %cst_28 = arith.constant dense<0.000000e+00> : vector<8xf32>
    %90 = vector.multi_reduction <add>, %89, %cst_28 [1] : vector<8x8xf32> to vector<8xf32>
    %91 = vector.shape_cast %90 : vector<8xf32> to vector<8x1xf32>
    %92 = tpu.reciprocal %91 {approx = true} : vector<8x1xf32> -> vector<8x1xf32>
    %93 = vector.broadcast %92 : vector<8x1xf32> to vector<8x8xf32>
    %94 = arith.mulf %89, %93 : vector<8x8xf32>
    %95 = arith.truncf %94 : vector<8x8xf32> to vector<8x8xbf16>
    %96 = vector.extract_strided_slice %43 {offsets = [0, 32], sizes = [8, 16], strides = [1, 1]} : vector<8x128xbf16> to vector<8x16xbf16>
    %cst_29 = arith.constant dense<0.000000e+00> : vector<8x16xf32>
    %97 = tpu.matmul %95, %96, %cst_29 {dimension_numbers = #tpu.dot_dimension_numbers<[1], [0], [0], [1], [0, 0, 1, 1], [], []>} : vector<8x8xbf16>, vector<8x16xbf16>, vector<8x16xf32> -> vector<8x16xf32>
    %98 = vector.extract_strided_slice %31 {offsets = [0, 48], sizes = [8, 16], strides = [1, 1]} : vector<8x128xbf16> to vector<8x16xbf16>
    %99 = vector.extract_strided_slice %37 {offsets = [0, 48], sizes = [8, 16], strides = [1, 1]} : vector<8x128xbf16> to vector<8x16xbf16>
    %cst_30 = arith.constant dense<0.000000e+00> : vector<8x8xf32>
    %100 = tpu.matmul %98, %99, %cst_30 {dimension_numbers = #tpu.dot_dimension_numbers<[1], [1], [0], [0], [0, 0, 1, 0], [], []>} : vector<8x16xbf16>, vector<8x16xbf16>, vector<8x8xf32> -> vector<8x8xf32>
    %101 = vector.broadcast %5 : vector<1x8xf32> to vector<8x8xf32>
    %102 = arith.addf %100, %101 : vector<8x8xf32>
    %cst_31 = arith.constant dense<0xFF800000> : vector<8xf32>
    %103 = vector.multi_reduction <maximumf>, %102, %cst_31 [1] : vector<8x8xf32> to vector<8xf32>
    %104 = vector.shape_cast %103 : vector<8xf32> to vector<8x1xf32>
    %105 = vector.broadcast %104 : vector<8x1xf32> to vector<8x8xf32>
    %106 = arith.subf %102, %105 : vector<8x8xf32>
    %107 = math.exp %106 : vector<8x8xf32>
    %cst_32 = arith.constant dense<0.000000e+00> : vector<8xf32>
    %108 = vector.multi_reduction <add>, %107, %cst_32 [1] : vector<8x8xf32> to vector<8xf32>
    %109 = vector.shape_cast %108 : vector<8xf32> to vector<8x1xf32>
    %110 = tpu.reciprocal %109 {approx = true} : vector<8x1xf32> -> vector<8x1xf32>
    %111 = vector.broadcast %110 : vector<8x1xf32> to vector<8x8xf32>
    %112 = arith.mulf %107, %111 : vector<8x8xf32>
    %113 = arith.truncf %112 : vector<8x8xf32> to vector<8x8xbf16>
    %114 = vector.extract_strided_slice %43 {offsets = [0, 48], sizes = [8, 16], strides = [1, 1]} : vector<8x128xbf16> to vector<8x16xbf16>
    %cst_33 = arith.constant dense<0.000000e+00> : vector<8x16xf32>
    %115 = tpu.matmul %113, %114, %cst_33 {dimension_numbers = #tpu.dot_dimension_numbers<[1], [0], [0], [1], [0, 0, 1, 1], [], []>} : vector<8x8xbf16>, vector<8x16xbf16>, vector<8x16xf32> -> vector<8x16xf32>
    %116 = vector.extract_strided_slice %31 {offsets = [0, 64], sizes = [8, 16], strides = [1, 1]} : vector<8x128xbf16> to vector<8x16xbf16>
    %117 = vector.extract_strided_slice %37 {offsets = [0, 64], sizes = [8, 16], strides = [1, 1]} : vector<8x128xbf16> to vector<8x16xbf16>
    %cst_34 = arith.constant dense<0.000000e+00> : vector<8x8xf32>
    %118 = tpu.matmul %116, %117, %cst_34 {dimension_numbers = #tpu.dot_dimension_numbers<[1], [1], [0], [0], [0, 0, 1, 0], [], []>} : vector<8x16xbf16>, vector<8x16xbf16>, vector<8x8xf32> -> vector<8x8xf32>
    %119 = vector.broadcast %5 : vector<1x8xf32> to vector<8x8xf32>
    %120 = arith.addf %118, %119 : vector<8x8xf32>
    %cst_35 = arith.constant dense<0xFF800000> : vector<8xf32>
    %121 = vector.multi_reduction <maximumf>, %120, %cst_35 [1] : vector<8x8xf32> to vector<8xf32>
    %122 = vector.shape_cast %121 : vector<8xf32> to vector<8x1xf32>
    %123 = vector.broadcast %122 : vector<8x1xf32> to vector<8x8xf32>
    %124 = arith.subf %120, %123 : vector<8x8xf32>
    %125 = math.exp %124 : vector<8x8xf32>
    %cst_36 = arith.constant dense<0.000000e+00> : vector<8xf32>
    %126 = vector.multi_reduction <add>, %125, %cst_36 [1] : vector<8x8xf32> to vector<8xf32>
    %127 = vector.shape_cast %126 : vector<8xf32> to vector<8x1xf32>
    %128 = tpu.reciprocal %127 {approx = true} : vector<8x1xf32> -> vector<8x1xf32>
    %129 = vector.broadcast %128 : vector<8x1xf32> to vector<8x8xf32>
    %130 = arith.mulf %125, %129 : vector<8x8xf32>
    %131 = arith.truncf %130 : vector<8x8xf32> to vector<8x8xbf16>
    %132 = vector.extract_strided_slice %43 {offsets = [0, 64], sizes = [8, 16], strides = [1, 1]} : vector<8x128xbf16> to vector<8x16xbf16>
    %cst_37 = arith.constant dense<0.000000e+00> : vector<8x16xf32>
    %133 = tpu.matmul %131, %132, %cst_37 {dimension_numbers = #tpu.dot_dimension_numbers<[1], [0], [0], [1], [0, 0, 1, 1], [], []>} : vector<8x8xbf16>, vector<8x16xbf16>, vector<8x16xf32> -> vector<8x16xf32>
    %134 = vector.extract_strided_slice %31 {offsets = [0, 80], sizes = [8, 16], strides = [1, 1]} : vector<8x128xbf16> to vector<8x16xbf16>
    %135 = vector.extract_strided_slice %37 {offsets = [0, 80], sizes = [8, 16], strides = [1, 1]} : vector<8x128xbf16> to vector<8x16xbf16>
    %cst_38 = arith.constant dense<0.000000e+00> : vector<8x8xf32>
    %136 = tpu.matmul %134, %135, %cst_38 {dimension_numbers = #tpu.dot_dimension_numbers<[1], [1], [0], [0], [0, 0, 1, 0], [], []>} : vector<8x16xbf16>, vector<8x16xbf16>, vector<8x8xf32> -> vector<8x8xf32>
    %137 = vector.broadcast %5 : vector<1x8xf32> to vector<8x8xf32>
    %138 = arith.addf %136, %137 : vector<8x8xf32>
    %cst_39 = arith.constant dense<0xFF800000> : vector<8xf32>
    %139 = vector.multi_reduction <maximumf>, %138, %cst_39 [1] : vector<8x8xf32> to vector<8xf32>
    %140 = vector.shape_cast %139 : vector<8xf32> to vector<8x1xf32>
    %141 = vector.broadcast %140 : vector<8x1xf32> to vector<8x8xf32>
    %142 = arith.subf %138, %141 : vector<8x8xf32>
    %143 = math.exp %142 : vector<8x8xf32>
    %cst_40 = arith.constant dense<0.000000e+00> : vector<8xf32>
    %144 = vector.multi_reduction <add>, %143, %cst_40 [1] : vector<8x8xf32> to vector<8xf32>
    %145 = vector.shape_cast %144 : vector<8xf32> to vector<8x1xf32>
    %146 = tpu.reciprocal %145 {approx = true} : vector<8x1xf32> -> vector<8x1xf32>
    %147 = vector.broadcast %146 : vector<8x1xf32> to vector<8x8xf32>
    %148 = arith.mulf %143, %147 : vector<8x8xf32>
    %149 = arith.truncf %148 : vector<8x8xf32> to vector<8x8xbf16>
    %150 = vector.extract_strided_slice %43 {offsets = [0, 80], sizes = [8, 16], strides = [1, 1]} : vector<8x128xbf16> to vector<8x16xbf16>
    %cst_41 = arith.constant dense<0.000000e+00> : vector<8x16xf32>
    %151 = tpu.matmul %149, %150, %cst_41 {dimension_numbers = #tpu.dot_dimension_numbers<[1], [0], [0], [1], [0, 0, 1, 1], [], []>} : vector<8x8xbf16>, vector<8x16xbf16>, vector<8x16xf32> -> vector<8x16xf32>
    %152 = vector.extract_strided_slice %31 {offsets = [0, 96], sizes = [8, 16], strides = [1, 1]} : vector<8x128xbf16> to vector<8x16xbf16>
    %153 = vector.extract_strided_slice %37 {offsets = [0, 96], sizes = [8, 16], strides = [1, 1]} : vector<8x128xbf16> to vector<8x16xbf16>
    %cst_42 = arith.constant dense<0.000000e+00> : vector<8x8xf32>
    %154 = tpu.matmul %152, %153, %cst_42 {dimension_numbers = #tpu.dot_dimension_numbers<[1], [1], [0], [0], [0, 0, 1, 0], [], []>} : vector<8x16xbf16>, vector<8x16xbf16>, vector<8x8xf32> -> vector<8x8xf32>
    %155 = vector.broadcast %5 : vector<1x8xf32> to vector<8x8xf32>
    %156 = arith.addf %154, %155 : vector<8x8xf32>
    %cst_43 = arith.constant dense<0xFF800000> : vector<8xf32>
    %157 = vector.multi_reduction <maximumf>, %156, %cst_43 [1] : vector<8x8xf32> to vector<8xf32>
    %158 = vector.shape_cast %157 : vector<8xf32> to vector<8x1xf32>
    %159 = vector.broadcast %158 : vector<8x1xf32> to vector<8x8xf32>
    %160 = arith.subf %156, %159 : vector<8x8xf32>
    %161 = math.exp %160 : vector<8x8xf32>
    %cst_44 = arith.constant dense<0.000000e+00> : vector<8xf32>
    %162 = vector.multi_reduction <add>, %161, %cst_44 [1] : vector<8x8xf32> to vector<8xf32>
    %163 = vector.shape_cast %162 : vector<8xf32> to vector<8x1xf32>
    %164 = tpu.reciprocal %163 {approx = true} : vector<8x1xf32> -> vector<8x1xf32>
    %165 = vector.broadcast %164 : vector<8x1xf32> to vector<8x8xf32>
    %166 = arith.mulf %161, %165 : vector<8x8xf32>
    %167 = arith.truncf %166 : vector<8x8xf32> to vector<8x8xbf16>
    %168 = vector.extract_strided_slice %43 {offsets = [0, 96], sizes = [8, 16], strides = [1, 1]} : vector<8x128xbf16> to vector<8x16xbf16>
    %cst_45 = arith.constant dense<0.000000e+00> : vector<8x16xf32>
    %169 = tpu.matmul %167, %168, %cst_45 {dimension_numbers = #tpu.dot_dimension_numbers<[1], [0], [0], [1], [0, 0, 1, 1], [], []>} : vector<8x8xbf16>, vector<8x16xbf16>, vector<8x16xf32> -> vector<8x16xf32>
    %170 = vector.extract_strided_slice %31 {offsets = [0, 112], sizes = [8, 16], strides = [1, 1]} : vector<8x128xbf16> to vector<8x16xbf16>
    %171 = vector.extract_strided_slice %37 {offsets = [0, 112], sizes = [8, 16], strides = [1, 1]} : vector<8x128xbf16> to vector<8x16xbf16>
    %cst_46 = arith.constant dense<0.000000e+00> : vector<8x8xf32>
    %172 = tpu.matmul %170, %171, %cst_46 {dimension_numbers = #tpu.dot_dimension_numbers<[1], [1], [0], [0], [0, 0, 1, 0], [], []>} : vector<8x16xbf16>, vector<8x16xbf16>, vector<8x8xf32> -> vector<8x8xf32>
    %173 = vector.broadcast %5 : vector<1x8xf32> to vector<8x8xf32>
    %174 = arith.addf %172, %173 : vector<8x8xf32>
    %cst_47 = arith.constant dense<0xFF800000> : vector<8xf32>
    %175 = vector.multi_reduction <maximumf>, %174, %cst_47 [1] : vector<8x8xf32> to vector<8xf32>
    %176 = vector.shape_cast %175 : vector<8xf32> to vector<8x1xf32>
    %177 = vector.broadcast %176 : vector<8x1xf32> to vector<8x8xf32>
    %178 = arith.subf %174, %177 : vector<8x8xf32>
    %179 = math.exp %178 : vector<8x8xf32>
    %cst_48 = arith.constant dense<0.000000e+00> : vector<8xf32>
    %180 = vector.multi_reduction <add>, %179, %cst_48 [1] : vector<8x8xf32> to vector<8xf32>
    %181 = vector.shape_cast %180 : vector<8xf32> to vector<8x1xf32>
    %182 = tpu.reciprocal %181 {approx = true} : vector<8x1xf32> -> vector<8x1xf32>
    %183 = vector.broadcast %182 : vector<8x1xf32> to vector<8x8xf32>
    %184 = arith.mulf %179, %183 : vector<8x8xf32>
    %185 = arith.truncf %184 : vector<8x8xf32> to vector<8x8xbf16>
    %186 = vector.extract_strided_slice %43 {offsets = [0, 112], sizes = [8, 16], strides = [1, 1]} : vector<8x128xbf16> to vector<8x16xbf16>
    %cst_49 = arith.constant dense<0.000000e+00> : vector<8x16xf32>
    %187 = tpu.matmul %185, %186, %cst_49 {dimension_numbers = #tpu.dot_dimension_numbers<[1], [0], [0], [1], [0, 0, 1, 1], [], []>} : vector<8x8xbf16>, vector<8x16xbf16>, vector<8x16xf32> -> vector<8x16xf32>
    %188 = tpu.concatenate %61, %79, %97, %115, %133, %151, %169, %187 in 1 : vector<8x16xf32>, vector<8x16xf32>, vector<8x16xf32>, vector<8x16xf32>, vector<8x16xf32>, vector<8x16xf32>, vector<8x16xf32>, vector<8x16xf32> -> vector<8x128xf32>
    %189 = arith.truncf %188 : vector<8x128xf32> to vector<8x128xbf16>
    %c0_50 = arith.constant 0 : index
    %c0_51 = arith.constant 0 : index
    %c384 = arith.constant 384 : index
    %190 = vector.load %arg4[%c0_50, %c0_51, %c384] : memref<2x128x768xbf16, #tpu.memory_space<vmem>>, vector<1x128x128xbf16>
    %191 = vector.shape_cast %190 : vector<1x128x128xbf16> to vector<128x128xbf16>
    %cst_52 = arith.constant dense<0.000000e+00> : vector<8x128xf32>
    %192 = tpu.matmul %189, %191, %cst_52 {dimension_numbers = #tpu.dot_dimension_numbers<[1], [0], [0], [1], [0, 0, 1, 1], [], []>} : vector<8x128xbf16>, vector<128x128xbf16>, vector<8x128xf32> -> vector<8x128xf32>
    %c0_53 = arith.constant 0 : index
    %c3 = arith.constant 3 : index
    %c0_54 = arith.constant 0 : index
    %193 = vector.load %arg5[%c0_53, %c3, %c0_54] : memref<2x10x128xf32, #tpu.memory_space<vmem>>, vector<1x1x128xf32>
    %194 = vector.shape_cast %193 : vector<1x1x128xf32> to vector<1x128xf32>
    %195 = vector.broadcast %194 : vector<1x128xf32> to vector<8x128xf32>
    %196 = arith.addf %192, %195 : vector<8x128xf32>
    %197 = arith.addf %21, %196 : vector<8x128xf32>
    %c0_55 = arith.constant 0 : index
    %c4 = arith.constant 4 : index
    %c0_56 = arith.constant 0 : index
    %198 = vector.load %arg5[%c0_55, %c4, %c0_56] : memref<2x10x128xf32, #tpu.memory_space<vmem>>, vector<1x1x128xf32>
    %199 = vector.shape_cast %198 : vector<1x1x128xf32> to vector<1x128xf32>
    %c0_57 = arith.constant 0 : index
    %c5 = arith.constant 5 : index
    %c0_58 = arith.constant 0 : index
    %200 = vector.load %arg5[%c0_57, %c5, %c0_58] : memref<2x10x128xf32, #tpu.memory_space<vmem>>, vector<1x1x128xf32>
    %201 = vector.shape_cast %200 : vector<1x1x128xf32> to vector<1x128xf32>
    %cst_59 = arith.constant dense<0.000000e+00> : vector<8xf32>
    %202 = vector.multi_reduction <add>, %197, %cst_59 [1] : vector<8x128xf32> to vector<8xf32>
    %203 = vector.shape_cast %202 : vector<8xf32> to vector<8x1xf32>
    %cst_60 = arith.constant 1.280000e+02 : f32
    %204 = vector.broadcast %cst_60 : f32 to vector<8x1xf32>
    %205 = arith.divf %203, %204 : vector<8x1xf32>
    %206 = vector.broadcast %205 : vector<8x1xf32> to vector<8x128xf32>
    %207 = arith.subf %197, %206 : vector<8x128xf32>
    %208 = arith.mulf %207, %207 : vector<8x128xf32>
    %cst_61 = arith.constant dense<0.000000e+00> : vector<8xf32>
    %209 = vector.multi_reduction <add>, %208, %cst_61 [1] : vector<8x128xf32> to vector<8xf32>
    %210 = vector.shape_cast %209 : vector<8xf32> to vector<8x1xf32>
    %cst_62 = arith.constant 1.280000e+02 : f32
    %211 = vector.broadcast %cst_62 : f32 to vector<8x1xf32>
    %212 = arith.divf %210, %211 : vector<8x1xf32>
    %213 = vector.broadcast %205 : vector<8x1xf32> to vector<8x128xf32>
    %214 = arith.subf %197, %213 : vector<8x128xf32>
    %cst_63 = arith.constant 9.99999974E-6 : f32
    %215 = vector.broadcast %cst_63 : f32 to vector<8x1xf32>
    %216 = arith.addf %212, %215 : vector<8x1xf32>
    %217 = math.rsqrt %216 : vector<8x1xf32>
    %218 = vector.broadcast %217 : vector<8x1xf32> to vector<8x128xf32>
    %219 = arith.mulf %214, %218 : vector<8x128xf32>
    %220 = vector.broadcast %199 : vector<1x128xf32> to vector<8x128xf32>
    %221 = arith.mulf %219, %220 : vector<8x128xf32>
    %222 = vector.broadcast %201 : vector<1x128xf32> to vector<8x128xf32>
    %223 = arith.addf %221, %222 : vector<8x128xf32>
    %224 = arith.truncf %223 : vector<8x128xf32> to vector<8x128xbf16>
    %c0_64 = arith.constant 0 : index
    %c0_65 = arith.constant 0 : index
    %c512 = arith.constant 512 : index
    %225 = vector.load %arg4[%c0_64, %c0_65, %c512] : memref<2x128x768xbf16, #tpu.memory_space<vmem>>, vector<1x128x128xbf16>
    %226 = vector.shape_cast %225 : vector<1x128x128xbf16> to vector<128x128xbf16>
    %cst_66 = arith.constant dense<0.000000e+00> : vector<8x128xf32>
    %227 = tpu.matmul %224, %226, %cst_66 {dimension_numbers = #tpu.dot_dimension_numbers<[1], [0], [0], [1], [0, 0, 1, 1], [], []>} : vector<8x128xbf16>, vector<128x128xbf16>, vector<8x128xf32> -> vector<8x128xf32>
    %c0_67 = arith.constant 0 : index
    %c6 = arith.constant 6 : index
    %c0_68 = arith.constant 0 : index
    %228 = vector.load %arg5[%c0_67, %c6, %c0_68] : memref<2x10x128xf32, #tpu.memory_space<vmem>>, vector<1x1x128xf32>
    %229 = vector.shape_cast %228 : vector<1x1x128xf32> to vector<1x128xf32>
    %230 = vector.broadcast %229 : vector<1x128xf32> to vector<8x128xf32>
    %231 = arith.addf %227, %230 : vector<8x128xf32>
    %cst_69 = arith.constant 0.000000e+00 : f32
    %232 = vector.broadcast %cst_69 : f32 to vector<8x128xf32>
    %233 = arith.maximumf %231, %232 : vector<8x128xf32>
    %234 = arith.truncf %233 : vector<8x128xf32> to vector<8x128xbf16>
    %c0_70 = arith.constant 0 : index
    %c0_71 = arith.constant 0 : index
    %c640 = arith.constant 640 : index
    %235 = vector.load %arg4[%c0_70, %c0_71, %c640] : memref<2x128x768xbf16, #tpu.memory_space<vmem>>, vector<1x128x128xbf16>
    %236 = vector.shape_cast %235 : vector<1x128x128xbf16> to vector<128x128xbf16>
    %cst_72 = arith.constant dense<0.000000e+00> : vector<8x128xf32>
    %237 = tpu.matmul %234, %236, %cst_72 {dimension_numbers = #tpu.dot_dimension_numbers<[1], [0], [0], [1], [0, 0, 1, 1], [], []>} : vector<8x128xbf16>, vector<128x128xbf16>, vector<8x128xf32> -> vector<8x128xf32>
    %c0_73 = arith.constant 0 : index
    %c7 = arith.constant 7 : index
    %c0_74 = arith.constant 0 : index
    %238 = vector.load %arg5[%c0_73, %c7, %c0_74] : memref<2x10x128xf32, #tpu.memory_space<vmem>>, vector<1x1x128xf32>
    %239 = vector.shape_cast %238 : vector<1x1x128xf32> to vector<1x128xf32>
    %240 = vector.broadcast %239 : vector<1x128xf32> to vector<8x128xf32>
    %241 = arith.addf %237, %240 : vector<8x128xf32>
    %242 = arith.addf %223, %241 : vector<8x128xf32>
    %c0_75 = arith.constant 0 : index
    %c8 = arith.constant 8 : index
    %c0_76 = arith.constant 0 : index
    %243 = vector.load %arg5[%c0_75, %c8, %c0_76] : memref<2x10x128xf32, #tpu.memory_space<vmem>>, vector<1x1x128xf32>
    %244 = vector.shape_cast %243 : vector<1x1x128xf32> to vector<1x128xf32>
    %c0_77 = arith.constant 0 : index
    %c9 = arith.constant 9 : index
    %c0_78 = arith.constant 0 : index
    %245 = vector.load %arg5[%c0_77, %c9, %c0_78] : memref<2x10x128xf32, #tpu.memory_space<vmem>>, vector<1x1x128xf32>
    %246 = vector.shape_cast %245 : vector<1x1x128xf32> to vector<1x128xf32>
    %cst_79 = arith.constant dense<0.000000e+00> : vector<8xf32>
    %247 = vector.multi_reduction <add>, %242, %cst_79 [1] : vector<8x128xf32> to vector<8xf32>
    %248 = vector.shape_cast %247 : vector<8xf32> to vector<8x1xf32>
    %cst_80 = arith.constant 1.280000e+02 : f32
    %249 = vector.broadcast %cst_80 : f32 to vector<8x1xf32>
    %250 = arith.divf %248, %249 : vector<8x1xf32>
    %251 = vector.broadcast %250 : vector<8x1xf32> to vector<8x128xf32>
    %252 = arith.subf %242, %251 : vector<8x128xf32>
    %253 = arith.mulf %252, %252 : vector<8x128xf32>
    %cst_81 = arith.constant dense<0.000000e+00> : vector<8xf32>
    %254 = vector.multi_reduction <add>, %253, %cst_81 [1] : vector<8x128xf32> to vector<8xf32>
    %255 = vector.shape_cast %254 : vector<8xf32> to vector<8x1xf32>
    %cst_82 = arith.constant 1.280000e+02 : f32
    %256 = vector.broadcast %cst_82 : f32 to vector<8x1xf32>
    %257 = arith.divf %255, %256 : vector<8x1xf32>
    %258 = vector.broadcast %250 : vector<8x1xf32> to vector<8x128xf32>
    %259 = arith.subf %242, %258 : vector<8x128xf32>
    %cst_83 = arith.constant 9.99999974E-6 : f32
    %260 = vector.broadcast %cst_83 : f32 to vector<8x1xf32>
    %261 = arith.addf %257, %260 : vector<8x1xf32>
    %262 = math.rsqrt %261 : vector<8x1xf32>
    %263 = vector.broadcast %262 : vector<8x1xf32> to vector<8x128xf32>
    %264 = arith.mulf %259, %263 : vector<8x128xf32>
    %265 = vector.broadcast %244 : vector<1x128xf32> to vector<8x128xf32>
    %266 = arith.mulf %264, %265 : vector<8x128xf32>
    %267 = vector.broadcast %246 : vector<1x128xf32> to vector<8x128xf32>
    %268 = arith.addf %266, %267 : vector<8x128xf32>
    %269 = arith.truncf %268 : vector<8x128xf32> to vector<8x128xbf16>
    %c1_84 = arith.constant 1 : index
    %c0_85 = arith.constant 0 : index
    %c0_86 = arith.constant 0 : index
    %270 = vector.load %arg4[%c1_84, %c0_85, %c0_86] : memref<2x128x768xbf16, #tpu.memory_space<vmem>>, vector<1x128x384xbf16>
    %271 = vector.shape_cast %270 : vector<1x128x384xbf16> to vector<128x384xbf16>
    %cst_87 = arith.constant dense<0.000000e+00> : vector<8x384xf32>
    %272 = tpu.matmul %269, %271, %cst_87 {dimension_numbers = #tpu.dot_dimension_numbers<[1], [0], [0], [1], [0, 0, 1, 1], [], []>} : vector<8x128xbf16>, vector<128x384xbf16>, vector<8x384xf32> -> vector<8x384xf32>
    %273 = vector.extract_strided_slice %272 {offsets = [0, 0], sizes = [8, 128], strides = [1, 1]} : vector<8x384xf32> to vector<8x128xf32>
    %c1_88 = arith.constant 1 : index
    %c0_89 = arith.constant 0 : index
    %c0_90 = arith.constant 0 : index
    %274 = vector.load %arg5[%c1_88, %c0_89, %c0_90] : memref<2x10x128xf32, #tpu.memory_space<vmem>>, vector<1x1x128xf32>
    %275 = vector.shape_cast %274 : vector<1x1x128xf32> to vector<1x128xf32>
    %276 = vector.broadcast %275 : vector<1x128xf32> to vector<8x128xf32>
    %277 = arith.addf %273, %276 : vector<8x128xf32>
    %278 = arith.truncf %277 : vector<8x128xf32> to vector<8x128xbf16>
    %279 = vector.extract_strided_slice %272 {offsets = [0, 128], sizes = [8, 128], strides = [1, 1]} : vector<8x384xf32> to vector<8x128xf32>
    %c1_91 = arith.constant 1 : index
    %c1_92 = arith.constant 1 : index
    %c0_93 = arith.constant 0 : index
    %280 = vector.load %arg5[%c1_91, %c1_92, %c0_93] : memref<2x10x128xf32, #tpu.memory_space<vmem>>, vector<1x1x128xf32>
    %281 = vector.shape_cast %280 : vector<1x1x128xf32> to vector<1x128xf32>
    %282 = vector.broadcast %281 : vector<1x128xf32> to vector<8x128xf32>
    %283 = arith.addf %279, %282 : vector<8x128xf32>
    %284 = arith.truncf %283 : vector<8x128xf32> to vector<8x128xbf16>
    %285 = vector.extract_strided_slice %272 {offsets = [0, 256], sizes = [8, 128], strides = [1, 1]} : vector<8x384xf32> to vector<8x128xf32>
    %c1_94 = arith.constant 1 : index
    %c2_95 = arith.constant 2 : index
    %c0_96 = arith.constant 0 : index
    %286 = vector.load %arg5[%c1_94, %c2_95, %c0_96] : memref<2x10x128xf32, #tpu.memory_space<vmem>>, vector<1x1x128xf32>
    %287 = vector.shape_cast %286 : vector<1x1x128xf32> to vector<1x128xf32>
    %288 = vector.broadcast %287 : vector<1x128xf32> to vector<8x128xf32>
    %289 = arith.addf %285, %288 : vector<8x128xf32>
    %290 = arith.truncf %289 : vector<8x128xf32> to vector<8x128xbf16>
    %291 = vector.extract_strided_slice %278 {offsets = [0, 0], sizes = [8, 16], strides = [1, 1]} : vector<8x128xbf16> to vector<8x16xbf16>
    %292 = vector.extract_strided_slice %284 {offsets = [0, 0], sizes = [8, 16], strides = [1, 1]} : vector<8x128xbf16> to vector<8x16xbf16>
    %cst_97 = arith.constant dense<0.000000e+00> : vector<8x8xf32>
    %293 = tpu.matmul %291, %292, %cst_97 {dimension_numbers = #tpu.dot_dimension_numbers<[1], [1], [0], [0], [0, 0, 1, 0], [], []>} : vector<8x16xbf16>, vector<8x16xbf16>, vector<8x8xf32> -> vector<8x8xf32>
    %294 = vector.broadcast %5 : vector<1x8xf32> to vector<8x8xf32>
    %295 = arith.addf %293, %294 : vector<8x8xf32>
    %cst_98 = arith.constant dense<0xFF800000> : vector<8xf32>
    %296 = vector.multi_reduction <maximumf>, %295, %cst_98 [1] : vector<8x8xf32> to vector<8xf32>
    %297 = vector.shape_cast %296 : vector<8xf32> to vector<8x1xf32>
    %298 = vector.broadcast %297 : vector<8x1xf32> to vector<8x8xf32>
    %299 = arith.subf %295, %298 : vector<8x8xf32>
    %300 = math.exp %299 : vector<8x8xf32>
    %cst_99 = arith.constant dense<0.000000e+00> : vector<8xf32>
    %301 = vector.multi_reduction <add>, %300, %cst_99 [1] : vector<8x8xf32> to vector<8xf32>
    %302 = vector.shape_cast %301 : vector<8xf32> to vector<8x1xf32>
    %303 = tpu.reciprocal %302 {approx = true} : vector<8x1xf32> -> vector<8x1xf32>
    %304 = vector.broadcast %303 : vector<8x1xf32> to vector<8x8xf32>
    %305 = arith.mulf %300, %304 : vector<8x8xf32>
    %306 = arith.truncf %305 : vector<8x8xf32> to vector<8x8xbf16>
    %307 = vector.extract_strided_slice %290 {offsets = [0, 0], sizes = [8, 16], strides = [1, 1]} : vector<8x128xbf16> to vector<8x16xbf16>
    %cst_100 = arith.constant dense<0.000000e+00> : vector<8x16xf32>
    %308 = tpu.matmul %306, %307, %cst_100 {dimension_numbers = #tpu.dot_dimension_numbers<[1], [0], [0], [1], [0, 0, 1, 1], [], []>} : vector<8x8xbf16>, vector<8x16xbf16>, vector<8x16xf32> -> vector<8x16xf32>
    %309 = vector.extract_strided_slice %278 {offsets = [0, 16], sizes = [8, 16], strides = [1, 1]} : vector<8x128xbf16> to vector<8x16xbf16>
    %310 = vector.extract_strided_slice %284 {offsets = [0, 16], sizes = [8, 16], strides = [1, 1]} : vector<8x128xbf16> to vector<8x16xbf16>
    %cst_101 = arith.constant dense<0.000000e+00> : vector<8x8xf32>
    %311 = tpu.matmul %309, %310, %cst_101 {dimension_numbers = #tpu.dot_dimension_numbers<[1], [1], [0], [0], [0, 0, 1, 0], [], []>} : vector<8x16xbf16>, vector<8x16xbf16>, vector<8x8xf32> -> vector<8x8xf32>
    %312 = vector.broadcast %5 : vector<1x8xf32> to vector<8x8xf32>
    %313 = arith.addf %311, %312 : vector<8x8xf32>
    %cst_102 = arith.constant dense<0xFF800000> : vector<8xf32>
    %314 = vector.multi_reduction <maximumf>, %313, %cst_102 [1] : vector<8x8xf32> to vector<8xf32>
    %315 = vector.shape_cast %314 : vector<8xf32> to vector<8x1xf32>
    %316 = vector.broadcast %315 : vector<8x1xf32> to vector<8x8xf32>
    %317 = arith.subf %313, %316 : vector<8x8xf32>
    %318 = math.exp %317 : vector<8x8xf32>
    %cst_103 = arith.constant dense<0.000000e+00> : vector<8xf32>
    %319 = vector.multi_reduction <add>, %318, %cst_103 [1] : vector<8x8xf32> to vector<8xf32>
    %320 = vector.shape_cast %319 : vector<8xf32> to vector<8x1xf32>
    %321 = tpu.reciprocal %320 {approx = true} : vector<8x1xf32> -> vector<8x1xf32>
    %322 = vector.broadcast %321 : vector<8x1xf32> to vector<8x8xf32>
    %323 = arith.mulf %318, %322 : vector<8x8xf32>
    %324 = arith.truncf %323 : vector<8x8xf32> to vector<8x8xbf16>
    %325 = vector.extract_strided_slice %290 {offsets = [0, 16], sizes = [8, 16], strides = [1, 1]} : vector<8x128xbf16> to vector<8x16xbf16>
    %cst_104 = arith.constant dense<0.000000e+00> : vector<8x16xf32>
    %326 = tpu.matmul %324, %325, %cst_104 {dimension_numbers = #tpu.dot_dimension_numbers<[1], [0], [0], [1], [0, 0, 1, 1], [], []>} : vector<8x8xbf16>, vector<8x16xbf16>, vector<8x16xf32> -> vector<8x16xf32>
    %327 = vector.extract_strided_slice %278 {offsets = [0, 32], sizes = [8, 16], strides = [1, 1]} : vector<8x128xbf16> to vector<8x16xbf16>
    %328 = vector.extract_strided_slice %284 {offsets = [0, 32], sizes = [8, 16], strides = [1, 1]} : vector<8x128xbf16> to vector<8x16xbf16>
    %cst_105 = arith.constant dense<0.000000e+00> : vector<8x8xf32>
    %329 = tpu.matmul %327, %328, %cst_105 {dimension_numbers = #tpu.dot_dimension_numbers<[1], [1], [0], [0], [0, 0, 1, 0], [], []>} : vector<8x16xbf16>, vector<8x16xbf16>, vector<8x8xf32> -> vector<8x8xf32>
    %330 = vector.broadcast %5 : vector<1x8xf32> to vector<8x8xf32>
    %331 = arith.addf %329, %330 : vector<8x8xf32>
    %cst_106 = arith.constant dense<0xFF800000> : vector<8xf32>
    %332 = vector.multi_reduction <maximumf>, %331, %cst_106 [1] : vector<8x8xf32> to vector<8xf32>
    %333 = vector.shape_cast %332 : vector<8xf32> to vector<8x1xf32>
    %334 = vector.broadcast %333 : vector<8x1xf32> to vector<8x8xf32>
    %335 = arith.subf %331, %334 : vector<8x8xf32>
    %336 = math.exp %335 : vector<8x8xf32>
    %cst_107 = arith.constant dense<0.000000e+00> : vector<8xf32>
    %337 = vector.multi_reduction <add>, %336, %cst_107 [1] : vector<8x8xf32> to vector<8xf32>
    %338 = vector.shape_cast %337 : vector<8xf32> to vector<8x1xf32>
    %339 = tpu.reciprocal %338 {approx = true} : vector<8x1xf32> -> vector<8x1xf32>
    %340 = vector.broadcast %339 : vector<8x1xf32> to vector<8x8xf32>
    %341 = arith.mulf %336, %340 : vector<8x8xf32>
    %342 = arith.truncf %341 : vector<8x8xf32> to vector<8x8xbf16>
    %343 = vector.extract_strided_slice %290 {offsets = [0, 32], sizes = [8, 16], strides = [1, 1]} : vector<8x128xbf16> to vector<8x16xbf16>
    %cst_108 = arith.constant dense<0.000000e+00> : vector<8x16xf32>
    %344 = tpu.matmul %342, %343, %cst_108 {dimension_numbers = #tpu.dot_dimension_numbers<[1], [0], [0], [1], [0, 0, 1, 1], [], []>} : vector<8x8xbf16>, vector<8x16xbf16>, vector<8x16xf32> -> vector<8x16xf32>
    %345 = vector.extract_strided_slice %278 {offsets = [0, 48], sizes = [8, 16], strides = [1, 1]} : vector<8x128xbf16> to vector<8x16xbf16>
    %346 = vector.extract_strided_slice %284 {offsets = [0, 48], sizes = [8, 16], strides = [1, 1]} : vector<8x128xbf16> to vector<8x16xbf16>
    %cst_109 = arith.constant dense<0.000000e+00> : vector<8x8xf32>
    %347 = tpu.matmul %345, %346, %cst_109 {dimension_numbers = #tpu.dot_dimension_numbers<[1], [1], [0], [0], [0, 0, 1, 0], [], []>} : vector<8x16xbf16>, vector<8x16xbf16>, vector<8x8xf32> -> vector<8x8xf32>
    %348 = vector.broadcast %5 : vector<1x8xf32> to vector<8x8xf32>
    %349 = arith.addf %347, %348 : vector<8x8xf32>
    %cst_110 = arith.constant dense<0xFF800000> : vector<8xf32>
    %350 = vector.multi_reduction <maximumf>, %349, %cst_110 [1] : vector<8x8xf32> to vector<8xf32>
    %351 = vector.shape_cast %350 : vector<8xf32> to vector<8x1xf32>
    %352 = vector.broadcast %351 : vector<8x1xf32> to vector<8x8xf32>
    %353 = arith.subf %349, %352 : vector<8x8xf32>
    %354 = math.exp %353 : vector<8x8xf32>
    %cst_111 = arith.constant dense<0.000000e+00> : vector<8xf32>
    %355 = vector.multi_reduction <add>, %354, %cst_111 [1] : vector<8x8xf32> to vector<8xf32>
    %356 = vector.shape_cast %355 : vector<8xf32> to vector<8x1xf32>
    %357 = tpu.reciprocal %356 {approx = true} : vector<8x1xf32> -> vector<8x1xf32>
    %358 = vector.broadcast %357 : vector<8x1xf32> to vector<8x8xf32>
    %359 = arith.mulf %354, %358 : vector<8x8xf32>
    %360 = arith.truncf %359 : vector<8x8xf32> to vector<8x8xbf16>
    %361 = vector.extract_strided_slice %290 {offsets = [0, 48], sizes = [8, 16], strides = [1, 1]} : vector<8x128xbf16> to vector<8x16xbf16>
    %cst_112 = arith.constant dense<0.000000e+00> : vector<8x16xf32>
    %362 = tpu.matmul %360, %361, %cst_112 {dimension_numbers = #tpu.dot_dimension_numbers<[1], [0], [0], [1], [0, 0, 1, 1], [], []>} : vector<8x8xbf16>, vector<8x16xbf16>, vector<8x16xf32> -> vector<8x16xf32>
    %363 = vector.extract_strided_slice %278 {offsets = [0, 64], sizes = [8, 16], strides = [1, 1]} : vector<8x128xbf16> to vector<8x16xbf16>
    %364 = vector.extract_strided_slice %284 {offsets = [0, 64], sizes = [8, 16], strides = [1, 1]} : vector<8x128xbf16> to vector<8x16xbf16>
    %cst_113 = arith.constant dense<0.000000e+00> : vector<8x8xf32>
    %365 = tpu.matmul %363, %364, %cst_113 {dimension_numbers = #tpu.dot_dimension_numbers<[1], [1], [0], [0], [0, 0, 1, 0], [], []>} : vector<8x16xbf16>, vector<8x16xbf16>, vector<8x8xf32> -> vector<8x8xf32>
    %366 = vector.broadcast %5 : vector<1x8xf32> to vector<8x8xf32>
    %367 = arith.addf %365, %366 : vector<8x8xf32>
    %cst_114 = arith.constant dense<0xFF800000> : vector<8xf32>
    %368 = vector.multi_reduction <maximumf>, %367, %cst_114 [1] : vector<8x8xf32> to vector<8xf32>
    %369 = vector.shape_cast %368 : vector<8xf32> to vector<8x1xf32>
    %370 = vector.broadcast %369 : vector<8x1xf32> to vector<8x8xf32>
    %371 = arith.subf %367, %370 : vector<8x8xf32>
    %372 = math.exp %371 : vector<8x8xf32>
    %cst_115 = arith.constant dense<0.000000e+00> : vector<8xf32>
    %373 = vector.multi_reduction <add>, %372, %cst_115 [1] : vector<8x8xf32> to vector<8xf32>
    %374 = vector.shape_cast %373 : vector<8xf32> to vector<8x1xf32>
    %375 = tpu.reciprocal %374 {approx = true} : vector<8x1xf32> -> vector<8x1xf32>
    %376 = vector.broadcast %375 : vector<8x1xf32> to vector<8x8xf32>
    %377 = arith.mulf %372, %376 : vector<8x8xf32>
    %378 = arith.truncf %377 : vector<8x8xf32> to vector<8x8xbf16>
    %379 = vector.extract_strided_slice %290 {offsets = [0, 64], sizes = [8, 16], strides = [1, 1]} : vector<8x128xbf16> to vector<8x16xbf16>
    %cst_116 = arith.constant dense<0.000000e+00> : vector<8x16xf32>
    %380 = tpu.matmul %378, %379, %cst_116 {dimension_numbers = #tpu.dot_dimension_numbers<[1], [0], [0], [1], [0, 0, 1, 1], [], []>} : vector<8x8xbf16>, vector<8x16xbf16>, vector<8x16xf32> -> vector<8x16xf32>
    %381 = vector.extract_strided_slice %278 {offsets = [0, 80], sizes = [8, 16], strides = [1, 1]} : vector<8x128xbf16> to vector<8x16xbf16>
    %382 = vector.extract_strided_slice %284 {offsets = [0, 80], sizes = [8, 16], strides = [1, 1]} : vector<8x128xbf16> to vector<8x16xbf16>
    %cst_117 = arith.constant dense<0.000000e+00> : vector<8x8xf32>
    %383 = tpu.matmul %381, %382, %cst_117 {dimension_numbers = #tpu.dot_dimension_numbers<[1], [1], [0], [0], [0, 0, 1, 0], [], []>} : vector<8x16xbf16>, vector<8x16xbf16>, vector<8x8xf32> -> vector<8x8xf32>
    %384 = vector.broadcast %5 : vector<1x8xf32> to vector<8x8xf32>
    %385 = arith.addf %383, %384 : vector<8x8xf32>
    %cst_118 = arith.constant dense<0xFF800000> : vector<8xf32>
    %386 = vector.multi_reduction <maximumf>, %385, %cst_118 [1] : vector<8x8xf32> to vector<8xf32>
    %387 = vector.shape_cast %386 : vector<8xf32> to vector<8x1xf32>
    %388 = vector.broadcast %387 : vector<8x1xf32> to vector<8x8xf32>
    %389 = arith.subf %385, %388 : vector<8x8xf32>
    %390 = math.exp %389 : vector<8x8xf32>
    %cst_119 = arith.constant dense<0.000000e+00> : vector<8xf32>
    %391 = vector.multi_reduction <add>, %390, %cst_119 [1] : vector<8x8xf32> to vector<8xf32>
    %392 = vector.shape_cast %391 : vector<8xf32> to vector<8x1xf32>
    %393 = tpu.reciprocal %392 {approx = true} : vector<8x1xf32> -> vector<8x1xf32>
    %394 = vector.broadcast %393 : vector<8x1xf32> to vector<8x8xf32>
    %395 = arith.mulf %390, %394 : vector<8x8xf32>
    %396 = arith.truncf %395 : vector<8x8xf32> to vector<8x8xbf16>
    %397 = vector.extract_strided_slice %290 {offsets = [0, 80], sizes = [8, 16], strides = [1, 1]} : vector<8x128xbf16> to vector<8x16xbf16>
    %cst_120 = arith.constant dense<0.000000e+00> : vector<8x16xf32>
    %398 = tpu.matmul %396, %397, %cst_120 {dimension_numbers = #tpu.dot_dimension_numbers<[1], [0], [0], [1], [0, 0, 1, 1], [], []>} : vector<8x8xbf16>, vector<8x16xbf16>, vector<8x16xf32> -> vector<8x16xf32>
    %399 = vector.extract_strided_slice %278 {offsets = [0, 96], sizes = [8, 16], strides = [1, 1]} : vector<8x128xbf16> to vector<8x16xbf16>
    %400 = vector.extract_strided_slice %284 {offsets = [0, 96], sizes = [8, 16], strides = [1, 1]} : vector<8x128xbf16> to vector<8x16xbf16>
    %cst_121 = arith.constant dense<0.000000e+00> : vector<8x8xf32>
    %401 = tpu.matmul %399, %400, %cst_121 {dimension_numbers = #tpu.dot_dimension_numbers<[1], [1], [0], [0], [0, 0, 1, 0], [], []>} : vector<8x16xbf16>, vector<8x16xbf16>, vector<8x8xf32> -> vector<8x8xf32>
    %402 = vector.broadcast %5 : vector<1x8xf32> to vector<8x8xf32>
    %403 = arith.addf %401, %402 : vector<8x8xf32>
    %cst_122 = arith.constant dense<0xFF800000> : vector<8xf32>
    %404 = vector.multi_reduction <maximumf>, %403, %cst_122 [1] : vector<8x8xf32> to vector<8xf32>
    %405 = vector.shape_cast %404 : vector<8xf32> to vector<8x1xf32>
    %406 = vector.broadcast %405 : vector<8x1xf32> to vector<8x8xf32>
    %407 = arith.subf %403, %406 : vector<8x8xf32>
    %408 = math.exp %407 : vector<8x8xf32>
    %cst_123 = arith.constant dense<0.000000e+00> : vector<8xf32>
    %409 = vector.multi_reduction <add>, %408, %cst_123 [1] : vector<8x8xf32> to vector<8xf32>
    %410 = vector.shape_cast %409 : vector<8xf32> to vector<8x1xf32>
    %411 = tpu.reciprocal %410 {approx = true} : vector<8x1xf32> -> vector<8x1xf32>
    %412 = vector.broadcast %411 : vector<8x1xf32> to vector<8x8xf32>
    %413 = arith.mulf %408, %412 : vector<8x8xf32>
    %414 = arith.truncf %413 : vector<8x8xf32> to vector<8x8xbf16>
    %415 = vector.extract_strided_slice %290 {offsets = [0, 96], sizes = [8, 16], strides = [1, 1]} : vector<8x128xbf16> to vector<8x16xbf16>
    %cst_124 = arith.constant dense<0.000000e+00> : vector<8x16xf32>
    %416 = tpu.matmul %414, %415, %cst_124 {dimension_numbers = #tpu.dot_dimension_numbers<[1], [0], [0], [1], [0, 0, 1, 1], [], []>} : vector<8x8xbf16>, vector<8x16xbf16>, vector<8x16xf32> -> vector<8x16xf32>
    %417 = vector.extract_strided_slice %278 {offsets = [0, 112], sizes = [8, 16], strides = [1, 1]} : vector<8x128xbf16> to vector<8x16xbf16>
    %418 = vector.extract_strided_slice %284 {offsets = [0, 112], sizes = [8, 16], strides = [1, 1]} : vector<8x128xbf16> to vector<8x16xbf16>
    %cst_125 = arith.constant dense<0.000000e+00> : vector<8x8xf32>
    %419 = tpu.matmul %417, %418, %cst_125 {dimension_numbers = #tpu.dot_dimension_numbers<[1], [1], [0], [0], [0, 0, 1, 0], [], []>} : vector<8x16xbf16>, vector<8x16xbf16>, vector<8x8xf32> -> vector<8x8xf32>
    %420 = vector.broadcast %5 : vector<1x8xf32> to vector<8x8xf32>
    %421 = arith.addf %419, %420 : vector<8x8xf32>
    %cst_126 = arith.constant dense<0xFF800000> : vector<8xf32>
    %422 = vector.multi_reduction <maximumf>, %421, %cst_126 [1] : vector<8x8xf32> to vector<8xf32>
    %423 = vector.shape_cast %422 : vector<8xf32> to vector<8x1xf32>
    %424 = vector.broadcast %423 : vector<8x1xf32> to vector<8x8xf32>
    %425 = arith.subf %421, %424 : vector<8x8xf32>
    %426 = math.exp %425 : vector<8x8xf32>
    %cst_127 = arith.constant dense<0.000000e+00> : vector<8xf32>
    %427 = vector.multi_reduction <add>, %426, %cst_127 [1] : vector<8x8xf32> to vector<8xf32>
    %428 = vector.shape_cast %427 : vector<8xf32> to vector<8x1xf32>
    %429 = tpu.reciprocal %428 {approx = true} : vector<8x1xf32> -> vector<8x1xf32>
    %430 = vector.broadcast %429 : vector<8x1xf32> to vector<8x8xf32>
    %431 = arith.mulf %426, %430 : vector<8x8xf32>
    %432 = arith.truncf %431 : vector<8x8xf32> to vector<8x8xbf16>
    %433 = vector.extract_strided_slice %290 {offsets = [0, 112], sizes = [8, 16], strides = [1, 1]} : vector<8x128xbf16> to vector<8x16xbf16>
    %cst_128 = arith.constant dense<0.000000e+00> : vector<8x16xf32>
    %434 = tpu.matmul %432, %433, %cst_128 {dimension_numbers = #tpu.dot_dimension_numbers<[1], [0], [0], [1], [0, 0, 1, 1], [], []>} : vector<8x8xbf16>, vector<8x16xbf16>, vector<8x16xf32> -> vector<8x16xf32>
    %435 = tpu.concatenate %308, %326, %344, %362, %380, %398, %416, %434 in 1 : vector<8x16xf32>, vector<8x16xf32>, vector<8x16xf32>, vector<8x16xf32>, vector<8x16xf32>, vector<8x16xf32>, vector<8x16xf32>, vector<8x16xf32> -> vector<8x128xf32>
    %436 = arith.truncf %435 : vector<8x128xf32> to vector<8x128xbf16>
    %c1_129 = arith.constant 1 : index
    %c0_130 = arith.constant 0 : index
    %c384_131 = arith.constant 384 : index
    %437 = vector.load %arg4[%c1_129, %c0_130, %c384_131] : memref<2x128x768xbf16, #tpu.memory_space<vmem>>, vector<1x128x128xbf16>
    %438 = vector.shape_cast %437 : vector<1x128x128xbf16> to vector<128x128xbf16>
    %cst_132 = arith.constant dense<0.000000e+00> : vector<8x128xf32>
    %439 = tpu.matmul %436, %438, %cst_132 {dimension_numbers = #tpu.dot_dimension_numbers<[1], [0], [0], [1], [0, 0, 1, 1], [], []>} : vector<8x128xbf16>, vector<128x128xbf16>, vector<8x128xf32> -> vector<8x128xf32>
    %c1_133 = arith.constant 1 : index
    %c3_134 = arith.constant 3 : index
    %c0_135 = arith.constant 0 : index
    %440 = vector.load %arg5[%c1_133, %c3_134, %c0_135] : memref<2x10x128xf32, #tpu.memory_space<vmem>>, vector<1x1x128xf32>
    %441 = vector.shape_cast %440 : vector<1x1x128xf32> to vector<1x128xf32>
    %442 = vector.broadcast %441 : vector<1x128xf32> to vector<8x128xf32>
    %443 = arith.addf %439, %442 : vector<8x128xf32>
    %444 = arith.addf %268, %443 : vector<8x128xf32>
    %c1_136 = arith.constant 1 : index
    %c4_137 = arith.constant 4 : index
    %c0_138 = arith.constant 0 : index
    %445 = vector.load %arg5[%c1_136, %c4_137, %c0_138] : memref<2x10x128xf32, #tpu.memory_space<vmem>>, vector<1x1x128xf32>
    %446 = vector.shape_cast %445 : vector<1x1x128xf32> to vector<1x128xf32>
    %c1_139 = arith.constant 1 : index
    %c5_140 = arith.constant 5 : index
    %c0_141 = arith.constant 0 : index
    %447 = vector.load %arg5[%c1_139, %c5_140, %c0_141] : memref<2x10x128xf32, #tpu.memory_space<vmem>>, vector<1x1x128xf32>
    %448 = vector.shape_cast %447 : vector<1x1x128xf32> to vector<1x128xf32>
    %cst_142 = arith.constant dense<0.000000e+00> : vector<8xf32>
    %449 = vector.multi_reduction <add>, %444, %cst_142 [1] : vector<8x128xf32> to vector<8xf32>
    %450 = vector.shape_cast %449 : vector<8xf32> to vector<8x1xf32>
    %cst_143 = arith.constant 1.280000e+02 : f32
    %451 = vector.broadcast %cst_143 : f32 to vector<8x1xf32>
    %452 = arith.divf %450, %451 : vector<8x1xf32>
    %453 = vector.broadcast %452 : vector<8x1xf32> to vector<8x128xf32>
    %454 = arith.subf %444, %453 : vector<8x128xf32>
    %455 = arith.mulf %454, %454 : vector<8x128xf32>
    %cst_144 = arith.constant dense<0.000000e+00> : vector<8xf32>
    %456 = vector.multi_reduction <add>, %455, %cst_144 [1] : vector<8x128xf32> to vector<8xf32>
    %457 = vector.shape_cast %456 : vector<8xf32> to vector<8x1xf32>
    %cst_145 = arith.constant 1.280000e+02 : f32
    %458 = vector.broadcast %cst_145 : f32 to vector<8x1xf32>
    %459 = arith.divf %457, %458 : vector<8x1xf32>
    %460 = vector.broadcast %452 : vector<8x1xf32> to vector<8x128xf32>
    %461 = arith.subf %444, %460 : vector<8x128xf32>
    %cst_146 = arith.constant 9.99999974E-6 : f32
    %462 = vector.broadcast %cst_146 : f32 to vector<8x1xf32>
    %463 = arith.addf %459, %462 : vector<8x1xf32>
    %464 = math.rsqrt %463 : vector<8x1xf32>
    %465 = vector.broadcast %464 : vector<8x1xf32> to vector<8x128xf32>
    %466 = arith.mulf %461, %465 : vector<8x128xf32>
    %467 = vector.broadcast %446 : vector<1x128xf32> to vector<8x128xf32>
    %468 = arith.mulf %466, %467 : vector<8x128xf32>
    %469 = vector.broadcast %448 : vector<1x128xf32> to vector<8x128xf32>
    %470 = arith.addf %468, %469 : vector<8x128xf32>
    %471 = arith.truncf %470 : vector<8x128xf32> to vector<8x128xbf16>
    %c1_147 = arith.constant 1 : index
    %c0_148 = arith.constant 0 : index
    %c512_149 = arith.constant 512 : index
    %472 = vector.load %arg4[%c1_147, %c0_148, %c512_149] : memref<2x128x768xbf16, #tpu.memory_space<vmem>>, vector<1x128x128xbf16>
    %473 = vector.shape_cast %472 : vector<1x128x128xbf16> to vector<128x128xbf16>
    %cst_150 = arith.constant dense<0.000000e+00> : vector<8x128xf32>
    %474 = tpu.matmul %471, %473, %cst_150 {dimension_numbers = #tpu.dot_dimension_numbers<[1], [0], [0], [1], [0, 0, 1, 1], [], []>} : vector<8x128xbf16>, vector<128x128xbf16>, vector<8x128xf32> -> vector<8x128xf32>
    %c1_151 = arith.constant 1 : index
    %c6_152 = arith.constant 6 : index
    %c0_153 = arith.constant 0 : index
    %475 = vector.load %arg5[%c1_151, %c6_152, %c0_153] : memref<2x10x128xf32, #tpu.memory_space<vmem>>, vector<1x1x128xf32>
    %476 = vector.shape_cast %475 : vector<1x1x128xf32> to vector<1x128xf32>
    %477 = vector.broadcast %476 : vector<1x128xf32> to vector<8x128xf32>
    %478 = arith.addf %474, %477 : vector<8x128xf32>
    %cst_154 = arith.constant 0.000000e+00 : f32
    %479 = vector.broadcast %cst_154 : f32 to vector<8x128xf32>
    %480 = arith.maximumf %478, %479 : vector<8x128xf32>
    %481 = arith.truncf %480 : vector<8x128xf32> to vector<8x128xbf16>
    %c1_155 = arith.constant 1 : index
    %c0_156 = arith.constant 0 : index
    %c640_157 = arith.constant 640 : index
    %482 = vector.load %arg4[%c1_155, %c0_156, %c640_157] : memref<2x128x768xbf16, #tpu.memory_space<vmem>>, vector<1x128x128xbf16>
    %483 = vector.shape_cast %482 : vector<1x128x128xbf16> to vector<128x128xbf16>
    %cst_158 = arith.constant dense<0.000000e+00> : vector<8x128xf32>
    %484 = tpu.matmul %481, %483, %cst_158 {dimension_numbers = #tpu.dot_dimension_numbers<[1], [0], [0], [1], [0, 0, 1, 1], [], []>} : vector<8x128xbf16>, vector<128x128xbf16>, vector<8x128xf32> -> vector<8x128xf32>
    %c1_159 = arith.constant 1 : index
    %c7_160 = arith.constant 7 : index
    %c0_161 = arith.constant 0 : index
    %485 = vector.load %arg5[%c1_159, %c7_160, %c0_161] : memref<2x10x128xf32, #tpu.memory_space<vmem>>, vector<1x1x128xf32>
    %486 = vector.shape_cast %485 : vector<1x1x128xf32> to vector<1x128xf32>
    %487 = vector.broadcast %486 : vector<1x128xf32> to vector<8x128xf32>
    %488 = arith.addf %484, %487 : vector<8x128xf32>
    %489 = arith.addf %470, %488 : vector<8x128xf32>
    %c1_162 = arith.constant 1 : index
    %c8_163 = arith.constant 8 : index
    %c0_164 = arith.constant 0 : index
    %490 = vector.load %arg5[%c1_162, %c8_163, %c0_164] : memref<2x10x128xf32, #tpu.memory_space<vmem>>, vector<1x1x128xf32>
    %491 = vector.shape_cast %490 : vector<1x1x128xf32> to vector<1x128xf32>
    %c1_165 = arith.constant 1 : index
    %c9_166 = arith.constant 9 : index
    %c0_167 = arith.constant 0 : index
    %492 = vector.load %arg5[%c1_165, %c9_166, %c0_167] : memref<2x10x128xf32, #tpu.memory_space<vmem>>, vector<1x1x128xf32>
    %493 = vector.shape_cast %492 : vector<1x1x128xf32> to vector<1x128xf32>
    %cst_168 = arith.constant dense<0.000000e+00> : vector<8xf32>
    %494 = vector.multi_reduction <add>, %489, %cst_168 [1] : vector<8x128xf32> to vector<8xf32>
    %495 = vector.shape_cast %494 : vector<8xf32> to vector<8x1xf32>
    %cst_169 = arith.constant 1.280000e+02 : f32
    %496 = vector.broadcast %cst_169 : f32 to vector<8x1xf32>
    %497 = arith.divf %495, %496 : vector<8x1xf32>
    %498 = vector.broadcast %497 : vector<8x1xf32> to vector<8x128xf32>
    %499 = arith.subf %489, %498 : vector<8x128xf32>
    %500 = arith.mulf %499, %499 : vector<8x128xf32>
    %cst_170 = arith.constant dense<0.000000e+00> : vector<8xf32>
    %501 = vector.multi_reduction <add>, %500, %cst_170 [1] : vector<8x128xf32> to vector<8xf32>
    %502 = vector.shape_cast %501 : vector<8xf32> to vector<8x1xf32>
    %cst_171 = arith.constant 1.280000e+02 : f32
    %503 = vector.broadcast %cst_171 : f32 to vector<8x1xf32>
    %504 = arith.divf %502, %503 : vector<8x1xf32>
    %505 = vector.broadcast %497 : vector<8x1xf32> to vector<8x128xf32>
    %506 = arith.subf %489, %505 : vector<8x128xf32>
    %cst_172 = arith.constant 9.99999974E-6 : f32
    %507 = vector.broadcast %cst_172 : f32 to vector<8x1xf32>
    %508 = arith.addf %504, %507 : vector<8x1xf32>
    %509 = math.rsqrt %508 : vector<8x1xf32>
    %510 = vector.broadcast %509 : vector<8x1xf32> to vector<8x128xf32>
    %511 = arith.mulf %506, %510 : vector<8x128xf32>
    %512 = vector.broadcast %491 : vector<1x128xf32> to vector<8x128xf32>
    %513 = arith.mulf %511, %512 : vector<8x128xf32>
    %514 = vector.broadcast %493 : vector<1x128xf32> to vector<8x128xf32>
    %515 = arith.addf %513, %514 : vector<8x128xf32>
    %516 = vector.extract_strided_slice %515 {offsets = [0, 0], sizes = [1, 128], strides = [1, 1]} : vector<8x128xf32> to vector<1x128xf32>
    %517 = vector.extract_strided_slice %6 {offsets = [2, 0], sizes = [1, 128], strides = [1, 1]} : vector<7x128xf32> to vector<1x128xf32>
    %518 = vector.extract_strided_slice %6 {offsets = [3, 0], sizes = [1, 128], strides = [1, 1]} : vector<7x128xf32> to vector<1x128xf32>
    %cst_173 = arith.constant dense<0.000000e+00> : vector<1xf32>
    %519 = vector.multi_reduction <add>, %516, %cst_173 [1] : vector<1x128xf32> to vector<1xf32>
    %520 = vector.shape_cast %519 : vector<1xf32> to vector<1x1xf32>
    %cst_174 = arith.constant 1.280000e+02 : f32
    %521 = vector.broadcast %cst_174 : f32 to vector<1x1xf32>
    %522 = arith.divf %520, %521 : vector<1x1xf32>
    %523 = vector.broadcast %522 : vector<1x1xf32> to vector<1x128xf32>
    %524 = arith.subf %516, %523 : vector<1x128xf32>
    %525 = arith.mulf %524, %524 : vector<1x128xf32>
    %cst_175 = arith.constant dense<0.000000e+00> : vector<1xf32>
    %526 = vector.multi_reduction <add>, %525, %cst_175 [1] : vector<1x128xf32> to vector<1xf32>
    %527 = vector.shape_cast %526 : vector<1xf32> to vector<1x1xf32>
    %cst_176 = arith.constant 1.280000e+02 : f32
    %528 = vector.broadcast %cst_176 : f32 to vector<1x1xf32>
    %529 = arith.divf %527, %528 : vector<1x1xf32>
    %530 = vector.broadcast %522 : vector<1x1xf32> to vector<1x128xf32>
    %531 = arith.subf %516, %530 : vector<1x128xf32>
    %cst_177 = arith.constant 9.99999974E-6 : f32
    %532 = vector.broadcast %cst_177 : f32 to vector<1x1xf32>
    %533 = arith.addf %529, %532 : vector<1x1xf32>
    %534 = math.rsqrt %533 : vector<1x1xf32>
    %535 = vector.broadcast %534 : vector<1x1xf32> to vector<1x128xf32>
    %536 = arith.mulf %531, %535 : vector<1x128xf32>
    %537 = arith.mulf %536, %517 : vector<1x128xf32>
    %538 = arith.addf %537, %518 : vector<1x128xf32>
    %539 = arith.truncf %538 : vector<1x128xf32> to vector<1x128xbf16>
    %c0_178 = arith.constant 0 : index
    %c0_179 = arith.constant 0 : index
    %540 = vector.load %arg2[%c0_178, %c0_179] : memref<128x128xbf16, #tpu.memory_space<vmem>>, vector<128x128xbf16>
    %cst_180 = arith.constant dense<0.000000e+00> : vector<1x128xf32>
    %541 = tpu.matmul %539, %540, %cst_180 {dimension_numbers = #tpu.dot_dimension_numbers<[1], [0], [0], [1], [0, 0, 1, 1], [], []>} : vector<1x128xbf16>, vector<128x128xbf16>, vector<1x128xf32> -> vector<1x128xf32>
    %542 = vector.extract_strided_slice %6 {offsets = [4, 0], sizes = [1, 128], strides = [1, 1]} : vector<7x128xf32> to vector<1x128xf32>
    %543 = arith.addf %541, %542 : vector<1x128xf32>
    %cst_181 = arith.constant 5.000000e-01 : f32
    %544 = vector.broadcast %cst_181 : f32 to vector<1x128xf32>
    %545 = arith.mulf %544, %543 : vector<1x128xf32>
    %cst_182 = arith.constant 0.707106769 : f32
    %546 = vector.broadcast %cst_182 : f32 to vector<1x128xf32>
    %547 = arith.mulf %543, %546 : vector<1x128xf32>
    %548 = math.erf %547 : vector<1x128xf32>
    %cst_183 = arith.constant 1.000000e+00 : f32
    %549 = vector.broadcast %cst_183 : f32 to vector<1x128xf32>
    %550 = arith.addf %549, %548 : vector<1x128xf32>
    %551 = arith.mulf %545, %550 : vector<1x128xf32>
    %552 = vector.extract_strided_slice %6 {offsets = [5, 0], sizes = [1, 128], strides = [1, 1]} : vector<7x128xf32> to vector<1x128xf32>
    %553 = arith.mulf %551, %552 : vector<1x128xf32>
    %cst_184 = arith.constant dense<0.000000e+00> : vector<1xf32>
    %554 = vector.multi_reduction <add>, %553, %cst_184 [1] : vector<1x128xf32> to vector<1xf32>
    %555 = vector.shape_cast %554 : vector<1xf32> to vector<1x1xf32>
    %556 = vector.extract_strided_slice %6 {offsets = [6, 0], sizes = [1, 1], strides = [1, 1]} : vector<7x128xf32> to vector<1x1xf32>
    %557 = arith.addf %555, %556 : vector<1x1xf32>
    %c0_185 = arith.constant 0 : index
    %c0_186 = arith.constant 0 : index
    %558 = vector.load %arg6[%c0_185, %c0_186] : memref<1x1xf32, #tpu.memory_space<vmem>>, vector<1x1xf32>
    tpu.vector_store %arg6[%c0_185, %c0_186], %557 {strides = array<i32>} : memref<1x1xf32, #tpu.memory_space<vmem>>, vector<1x1xf32>,
    return
  }
}

</mosaic_0001>

<bundles_post_ra>
// kernel: value_network_forward.1
= control target key start
LH: loop header
LB: loop body
LE: loop exit
PB: predicated region body
PF: predicated region fallthrough
CT: control target
= control target key end

     0   :  { %11 = vsyncpa [#allocation3], 0  ;;  %s5120_s0 = inlined_call_operand.vmem [shape: bf16[8,192], index: 0, kind: input, shape index: {}]   ;;  %s5121_s1 = inlined_call_operand.vmem [shape: bf16[192,128], index: 1, kind: input, shape index: {}]   ;;  %s5122_s2 = inlined_call_operand.vmem [shape: bf16[128,128], index: 2, kind: input, shape index: {}]   ;;  %s5123_s3 = inlined_call_operand.vmem [shape: f32[7,128], index: 3, kind: input, shape index: {}]   ;;  %s5124_s4 = inlined_call_operand.hbm [shape: bf16[2,128,768], index: 4, kind: input, shape index: {}]   ;;  %s5125_s5 = inlined_call_operand.vmem [shape: f32[2,10,128], index: 5, kind: input, shape index: {}]   ;;  %s5126_s6 = inlined_call_operand.hbm [shape: f32[1,1], index: 6, kind: output, shape index: {}]  }
   0x1   :  { %12 = vsyncpa [#allocation4], 0  ;;  %s4455_s21 = smov [#allocation2]   ;;  %s4407_s25 = scalar_lea.hbm %s5124_s4, 12288 }
   0x2   :  { %s26_s22 = sshll.u32 %s4455_s21, 4  ;;  %p4408_p0 = scmp.ne.s32.totalorder %s5124_s4, %s4407_s25  ;;  %s27_s22 = int_to_ptr.vmem [resolvable:$true] %s26_s22 }
   0x3   :  { %p4411_p1 = scmp.lt.u32.totalorder %s4407_s25, %s5124_s4 }
   0x5   :  { %p4413_p2 = pnand %p4411_p1, %p4408_p0 }
   0x7   :  { %4416 = shalt.err (!%p4413_p2)
}
   0x8   :  { %s4417_s30 = scalar_lea.vmem %s27_s22, 12288  ;;  %p4422_p4 = scmp.lt.s32.totalorder %s27_s22, %s27_s22 }
   0x9   :  { %p4418_p3 = scmp.ne.s32.totalorder %s27_s22, %s4417_s30  ;;  %p4423_p5 = scmp.lt.s32.totalorder %s4417_s30, %s4417_s30 }
   0xb   :  { %p4424_p6 = por %p4423_p5, %p4422_p4 }
   0xd   :  { %p4425_p7 = pnand %p4424_p6, %p4418_p3 }
   0xf   :  { %4428 = shalt.err (!%p4425_p7)
}
  0x10   :  { %s4456_s7 = smov 384   ;;  %s4457_s8 = smov 24  }
  0x11   :  { %32 = dma.hbm_to_vmem [thread:$0]  %s5124_s4, 12288, %s27_s22, [#allocation3], %s4456_s7, %s4456_s7, %s4457_s8  }
  0x12   :  { %4451 = dma.done.wait [#allocation3], 12288  }
  0x13   :  { %4452 = vsyncadd [#allocation3], 4294955008  ;;  %v4458_v0 = vmov 0   ;;  %v4196_v1 = vld [vmem:[%s5121_s1] sm:$0xff]   ;;  %v4197_v2 = vld [vmem:[%s5121_s1 + $0x8] sm:$0xff]   ;;  %vm151_vm0 = vcmask 523264   ;;  %v39_v33 = vlaneseq }
  0x14   :  { %155 = vmatprep.subr.bf16.mxu0 %v4458_v0  ;;  %398 = vmatprep.mubr.bf16.mxu1 %v4458_v0  ;;  %v4198_v3 = vld [vmem:[%s5121_s1 + $0x10] sm:$0xff]   ;;  %v4199_v4 = vld [vmem:[%s5121_s1 + $0x18] sm:$0xff]   ;;  %v44_v5 = vld [vmem:[%s5120_s0] sm:$0xff]  ;;  %v4459_v32 = vmov 0.0   ;;  %vm4460_vm1 = vmmov 0   ;;  %vm468_vm3 = vcmask 130048  }
  0x15   :  { %156 = vmatpush1.bf16.msra.mxu0 %v4196_v1  ;;  %v3484_v6 = vcombine.high %v44_v5, %v44_v5  ;;  %v4210_v7 = vld [vmem:[#allocation2 + $0x4] ss:$24 sps:$4 sm:$0xff]   ;;  %v4212_v8 = vld [vmem:[#allocation2] ss:$24 sps:$4 sm:$0xff]   ;;  %v4213_v10 = vld [vmem:[#allocation2 + $0x34] ss:$24 sps:$4 sm:$0xff]   ;;  %v3483_v29 = vcombine.low %v44_v5, %v44_v5 }
  0x16   :  { %157 = vmatprep.subr.bf16.mxu0 %v4458_v0  ;;  %v4200_v9 = vld [vmem:[%s5121_s1 + $0x20] sm:$0xff]   ;;  %366 = vmatprep.subr.bf16.mxu1 %v4210_v7  ;;  %v4215_v11 = vld [vmem:[#allocation2 + $0x30] ss:$24 sps:$4 sm:$0xff]   ;;  %v4219_v16 = vld [vmem:[#allocation2 + $0x94] ss:$24 sps:$4 sm:$0xff]   ;;  %v70_v34 = vshrl.u32 %v39_v33, 7 }
  0x17   :  { %3497 = vmatprep.mubr.msk.bf16.mxu0 %vm151_vm0, %v3484_v6  ;;  %367 = vmatpush1.bf16.msra.mxu1 %v4212_v8  ;;  %v4201_v12 = vld [vmem:[%s5121_s1 + $0x28] sm:$0xff]   ;;  %v4216_v13 = vld [vmem:[#allocation2 + $0x64] ss:$24 sps:$4 sm:$0xff]   ;;  %v4202_v14 = vld [vmem:[%s5121_s1 + $0x30] sm:$0xff]   ;;  %s4461_s15 = smov 112   ;;  %s4462_s16 = smov 96  }
  0x18   :  { %368 = vmatprep.subr.bf16.mxu1 %v4213_v10  ;;  %v4218_v15 = vld [vmem:[#allocation2 + $0x60] ss:$24 sps:$4 sm:$0xff]   ;;  %v4221_v17 = vld [vmem:[#allocation2 + $0x90] ss:$24 sps:$4 sm:$0xff]   ;;  %v4222_v19 = vld [vmem:[#allocation2 + $0xc4] ss:$24 sps:$4 sm:$0xff]  }
  0x19   :  { %158 = vmatpush1.bf16.msra.mxu0 %v4197_v2  ;;  %v4203_v18 = vld [vmem:[%s5121_s1 + $0x38] sm:$0xff]   ;;  %v4204_v21 = vld [vmem:[%s5121_s1 + $0x40] sm:$0xff]   ;;  %v4225_v22 = vld [vmem:[#allocation2 + $0xf4] ss:$24 sps:$4 sm:$0xff]   ;;  %v71_v35 = vsub.s32 1, %v70_v34  ;;  %v202_v37 = vsub.s32 0, %v70_v34 }
  0x1a   :  { %159 = vmatprep.subr.bf16.mxu0 %v4458_v0  ;;  %v4224_v20 = vld [vmem:[#allocation2 + $0xc0] ss:$24 sps:$4 sm:$0xff]   ;;  %v4227_v23 = vld [vmem:[#allocation2 + $0xf0] ss:$24 sps:$4 sm:$0xff]   ;;  %v4228_v25 = vld [vmem:[#allocation2 + $0x124] ss:$24 sps:$4 sm:$0xff]  }
  0x1b   :  { %369 = vmatpush1.bf16.msra.mxu1 %v4215_v11  ;;  %v4205_v24 = vld [vmem:[%s5121_s1 + $0x48] sm:$0xff]   ;;  %v4230_v26 = vld [vmem:[#allocation2 + $0x120] ss:$24 sps:$4 sm:$0xff]   ;;  %v4206_v27 = vld [vmem:[%s5121_s1 + $0x50] sm:$0xff]   ;;  %vm197_vm2 = vcmp.eq.s32.totalorder %v70_v34, 0  ;;  %s4463_s17 = smov 80  }
  0x1c   :  { %370 = vmatprep.subr.bf16.mxu1 %v4216_v13  ;;  %v4207_v28 = vld [vmem:[%s5121_s1 + $0x58] sm:$0xff]   ;;  %v4231_v30 = vld [vmem:[#allocation2 + $0x154] ss:$24 sps:$4 sm:$0xff]   ;;  %v4233_v31 = vld [vmem:[#allocation2 + $0x150] ss:$24 sps:$4 sm:$0xff]   ;;  %s4464_s18 = smov 64  }
  0x1d   :  { %160 = vmatpush1.bf16.msra.mxu0 %v4198_v3  ;;  %v43_v36 = vld [vmem:[%s5123_s3] sm:$0x7f]  ;;  %v4235_v48 = vld [vmem:[#allocation2 + $0x38] ss:$24 sps:$4 sm:$0xff]   ;;  %s4465_s21 = smov 48   ;;  %vm531_vm4 = vcmask 1043456  }
  0x1e   :  { %161 = vmatprep.subr.bf16.mxu0 %v4458_v0  ;;  %v72_v38 = vrot.slane %v43_v36, %v71_v35  ;;  %v203_v39 = vrot.slane %v43_v36, %v202_v37  ;;  %v4234_v46 = vld [vmem:[#allocation2 + $0x8] ss:$24 sps:$4 sm:$0xff]   ;;  %v4237_v50 = vld [vmem:[#allocation2 + $0x98] ss:$24 sps:$4 sm:$0xff]   ;;  %s4466_s22 = smov 32   ;;  %s4467_s0 = smov 16  }
  0x1f   :  { %371 = vmatpush1.bf16.msra.mxu1 %v4218_v15  ;;  %v4236_v49 = vld [vmem:[#allocation2 + $0x68] ss:$24 sps:$4 sm:$0xff]   ;;  %v4239_v52 = vld [vmem:[#allocation2 + $0xf8] ss:$24 sps:$4 sm:$0xff]   ;;  %v40_v11 = vand.u32 127, %v39_v33  ;;  %vm515_vm6 = vcmask 64512  }
  0x20   :  { %372 = vmatprep.subr.bf16.mxu1 %v4219_v16  ;;  %v4238_v51 = vld [vmem:[#allocation2 + $0xc8] ss:$24 sps:$4 sm:$0xff]   ;;  %v4241_v54 = vld [vmem:[#allocation2 + $0x158] ss:$24 sps:$4 sm:$0xff]   ;;  %vm1377_vm7 = vcmask 261120   ;;  %vm1379_vm8 = vcmask 392192  }
  0x21   :  { %162 = vmatpush1.bf16.msra.mxu0 %v4199_v4  ;;  %v4240_v53 = vld [vmem:[#allocation2 + $0x128] ss:$24 sps:$4 sm:$0xff]   ;;  %vm41_vm5 = vcmp.lt.s32.totalorder %v40_v11, 5  ;;  %vm1382_vm9 = vcmask 654336   ;;  %vm1384_vm10 = vcmask 785408   ;;  %vm1386_vm11 = vcmask 916480  }
  0x22   :  { %163 = vmatprep.subr.bf16.mxu0 %v4458_v0  ;;  %v3523_v55 = vld [vmem:[%s5125_s5 + $0x1] ss:$0 sm:$0xff]  ;;  %v3522_v57 = vld [vmem:[%s5125_s5] ss:$0 sm:$0xff]  ;;  %v3524_v3 = vld [vmem:[%s5125_s5 + $0x2] ss:$0 sm:$0xff] }
  0x23   :  { %373 = vmatpush1.bf16.msra.mxu1 %v4221_v17  ;;  %vm3324_vm12 = vcmask 1040384   ;;  %vm3466_vm13 = vcmask 0  }
  0x24   :  { %374 = vmatprep.subr.bf16.mxu1 %v4222_v19 }
  0x25   :  { %164 = vmatpush1.bf16.msra.mxu0 %v4200_v9 }
  0x26   :  { %165 = vmatprep.subr.bf16.mxu0 %v4458_v0 }
  0x27   :  { %375 = vmatpush1.bf16.msra.mxu1 %v4224_v20 }
  0x28   :  { %376 = vmatprep.subr.bf16.mxu1 %v4225_v22 }
  0x29   :  { %166 = vmatpush1.bf16.msra.mxu0 %v4201_v12  ;;  %v4468_v12 = vmov -1e+30  }
  0x2a   :  { %167 = vmatprep.subr.bf16.mxu0 %v4458_v0  ;;  %v4624_v13 = vsel %vm41_vm5, 0.0, %v4468_v12 }
  0x2b   :  { %377 = vmatpush1.bf16.msra.mxu1 %v4227_v23 }
  0x2c   :  { %378 = vmatprep.subr.bf16.mxu1 %v4228_v25 }
  0x2d   :  { %168 = vmatpush1.bf16.msra.mxu0 %v4202_v14 }
  0x2e   :  { %169 = vmatprep.subr.bf16.mxu0 %v4458_v0 }
  0x2f   :  { %379 = vmatpush1.bf16.msra.mxu1 %v4230_v26 }
  0x30   :  { %380 = vmatprep.subr.bf16.mxu1 %v4231_v30 }
  0x31   :  { %170 = vmatpush1.bf16.msra.mxu0 %v4203_v18 }
  0x32   :  { %171 = vmatprep.subr.bf16.mxu0 %v4458_v0 }
  0x33   :  { %381 = vmatpush1.bf16.msra.mxu1 %v4233_v31 }
  0x34   :  { %3809 = vmatprep.subr.bf16.mxu1 %v4459_v32 }
  0x35   :  { %172 = vmatpush1.bf16.msra.mxu0 %v4204_v21 }
  0x36   :  { %173 = vmatprep.subr.bf16.mxu0 %v4458_v0 }
  0x39   :  { %174 = vmatpush1.bf16.msra.mxu0 %v4205_v24 }
  0x3a   :  { %175 = vmatprep.subr.bf16.mxu0 %v4458_v0 }
  0x3d   :  { %176 = vmatpush1.bf16.msra.mxu0 %v4206_v27 }
  0x3e   :  { %177 = vmatprep.subr.bf16.mxu0 %v4458_v0 }
  0x41   :  { %178 = vmatpush1.bf16.msra.mxu0 %v4207_v28 }
  0x42   :  { %3829 = vmatprep.subr.bf16.mxu0 %v4459_v32 }
  0x44   :  { %188 = vmatmul.mubr.bf16.vlgmr.msra.gmra.mrb[0].mxu0 %v3483_v29 }
  0x45   :  { %3831 = vmatprep.mubr.msk.bf16.mxu0 %vm4460_vm1, %v4459_v32 }
 0x117   :  { %v189_v40 = vpop.f32.mrb[0].mxu0 }
 0x118   :  { %v190_v41 = vadd.f32 %v189_v40, %v72_v38  ;;  %v191_v42 = vpop.f32.mrb[1].mxu0 }
 0x119   :  { %v192_v43 = vpop.f32.mrb[2].mxu0 }
 0x11a   :  { %v193_v44 = vpop.f32.mrb[3].mxu0  ;;  %v4578_v45 = vsel %vm197_vm2, %v203_v39, %v190_v41 }
 0x11b   :  { %v205_v47 = vpack.c.bf16 %v4578_v45, %v4578_v45 }
 0x11d   :  { %399 = vmatmul.mubr.bf16.vlgmr.msra.gmra.mrb[0].mxu1 %v205_v47 }
 0x11e   :  { %3810 = vmatpush3.bf16.msra.mxu1 %v4234_v46  ;;  %3825 = vmatprep.mubr.msk.bf16.mxu1 %vm4460_vm1, %v4459_v32 }
 0x11f   :  { %3811 = vmatprep.subr.bf16.mxu1 %v4459_v32 }
 0x122   :  { %3812 = vmatpush3.bf16.msra.mxu1 %v4235_v48 }
 0x123   :  { %3813 = vmatprep.subr.bf16.mxu1 %v4459_v32 }
 0x126   :  { %3814 = vmatpush3.bf16.msra.mxu1 %v4236_v49 }
 0x127   :  { %3815 = vmatprep.subr.bf16.mxu1 %v4459_v32 }
 0x12a   :  { %3816 = vmatpush3.bf16.msra.mxu1 %v4237_v50 }
 0x12b   :  { %3817 = vmatprep.subr.bf16.mxu1 %v4459_v32 }
 0x12e   :  { %3818 = vmatpush3.bf16.msra.mxu1 %v4238_v51 }
 0x12f   :  { %3819 = vmatprep.subr.bf16.mxu1 %v4459_v32 }
 0x132   :  { %3820 = vmatpush3.bf16.msra.mxu1 %v4239_v52 }
 0x133   :  { %3821 = vmatprep.subr.bf16.mxu1 %v4459_v32 }
 0x136   :  { %3822 = vmatpush3.bf16.msra.mxu1 %v4240_v53 }
 0x137   :  { %3823 = vmatprep.subr.bf16.mxu1 %v4459_v32 }
 0x13a   :  { %3824 = vmatpush3.bf16.msra.mxu1 %v4241_v54 }
 0x13b   :  { %3847 = vmatprep.subr.bf16.mxu1 %v4459_v32 }
 0x13d   :  { %3826 = vmatmul.mubr.bf16.vlgmr.msra.gmra.mrb[4].mxu1 %v205_v47 }
 0x13e   :  { %3849 = vmatprep.mubr.msk.bf16.mxu1 %vm4460_vm1, %v4459_v32 }
 0x1f0   :  { %v400_v56 = vpop.f32.mrb[0].mxu1 }
 0x1f1   :  { %v402_v58 = vpop.f32.mrb[1].mxu1  ;;  %v452_v62 = vadd.f32 %v3522_v57, %v400_v56 }
 0x1f2   :  { %v459_v59 = vadd.f32 %v3523_v55, %v402_v58  ;;  %v404_v60 = vpop.f32.mrb[2].mxu1 }
 0x1f3   :  { %v405_v61 = vpop.f32.mrb[3].mxu1  ;;  %v453_v2 = vpack.c.bf16 %v452_v62, %v452_v62 }
 0x1f4   :  { %v460_v63 = vpack.c.bf16 %v459_v59, %v459_v59 }
 0x1f6   :  { %579 = vrot.lane.b32.xlu1 %v460_v63, %s4461_s15  ;;  %v473_v1 = vsel %vm468_vm3, %v460_v63, 0 }
 0x1f7   :  { %3830 = vmatpush3.bf16.xpose.msra.mxu0 %v473_v1 }
 0x1f8   :  { %3835 = vmatprep.subr.bf16.mxu0 %v4459_v32 }
 0x1fa   :  { %576 = vrot.lane.b32.xlu1 %v453_v2, %s4461_s15 }
 0x1fe   :  { %688 = vrot.lane.b32.xlu1 %v453_v2, %s4462_s16  ;;  %3832 = vmatmul.mubr.msk.bf16.vlgmr.msra.gmra.mrb[4].mxu0 %vm468_vm3, %v453_v2 }
 0x1ff   :  { %3837 = vmatprep.mubr.msk.bf16.mxu0 %vm4460_vm1, %v4459_v32 }
 0x202   :  { %800 = vrot.lane.b32.xlu1 %v460_v63, %s4463_s17 }
 0x206   :  { %798 = vrot.lane.b32.xlu1 %v453_v2, %s4463_s17 }
 0x20a   :  { %910 = vrot.lane.b32.xlu1 %v460_v63, %s4464_s18 }
 0x20e   :  { %908 = vrot.lane.b32.xlu1 %v453_v2, %s4464_s18 }
 0x210   :  { %v441_v4 = vpop.f32.mrb[4].mxu1 }
 0x211   :  { %v466_v5 = vadd.f32 %v3524_v3, %v441_v4  ;;  %v3827_v6 = vpop.f32.mrb[5].mxu1 }
 0x212   :  { %v444_v7 = vpop.f32.mrb[6].mxu1  ;;  %1020 = vrot.lane.b32.xlu1 %v460_v63, %s4465_s21 }
 0x213   :  { %v4616_v8 = vpack.c.bf16 %v466_v5, %v466_v5  ;;  %v3828_v9 = vpop.f32.mrb[7].mxu1 }
 0x215   :  { %v533_v10 = vsel %vm531_vm4, %v4616_v8, 0 }
 0x216   :  { %3836 = vmatpush3.bf16.msra.mxu0 %v533_v10  ;;  %1130 = vrot.lane.b32.xlu1 %v460_v63, %s4466_s22 }
 0x217   :  { %3841 = vmatprep.subr.bf16.mxu0 %v4459_v32 }
 0x21a   :  { %1240 = vrot.lane.b32.xlu1 %v460_v63, %s4467_s0 }
 0x268   :  { %v580_v26 = vpop.permute.xlu1 %579 }
 0x269   :  { %v585_v33 = vsel %vm468_vm3, %v580_v26, 0 }
 0x26c   :  { %v577_v27 = vpop.permute.xlu1 %576 }
 0x270   :  { %v689_v31 = vpop.permute.xlu1 %688 }
 0x274   :  { %v801_v34 = vpop.permute.xlu1 %800 }
 0x275   :  { %v806_v38 = vsel %vm468_vm3, %v801_v34, 0 }
 0x278   :  { %v799_v37 = vpop.permute.xlu1 %798 }
 0x27c   :  { %v911_v39 = vpop.permute.xlu1 %910 }
 0x27d   :  { %v916_v41 = vsel %vm468_vm3, %v911_v39, 0 }
 0x280   :  { %v909_v40 = vpop.permute.xlu1 %908 }
 0x284   :  { %v1021_v42 = vpop.permute.xlu1 %1020 }
 0x285   :  { %v1026_v43 = vsel %vm468_vm3, %v1021_v42, 0 }
 0x288   :  { %v1131_v44 = vpop.permute.xlu1 %1130 }
 0x289   :  { %v1136_v47 = vsel %vm468_vm3, %v1131_v44, 0 }
 0x28c   :  { %v1241_v48 = vpop.permute.xlu1 %1240 }
 0x28d   :  { %v1246_v50 = vsel %vm468_vm3, %v1241_v48, 0 }
 0x2d1   :  { %v509_v14 = vpop.f32.mrb[4].mxu0 }
 0x2d2   :  { %v510_v15 = vadd.f32 %v509_v14, %v4624_v13  ;;  %v3833_v16 = vpop.f32.mrb[5].mxu0 }
 0x2d3   :  { %v512_v17 = vpop.f32.mrb[6].mxu0 }
 0x2d4   :  { %v3834_v18 = vpop.f32.mrb[7].mxu0  ;;  %v516_v19 = vsel %vm515_vm6, %v510_v15, -inf }
 0x2d5   :  { %517 = vmax.xlane.f32.xlu0 %v516_v19 }
 0x362   :  { %v518_v20 = vpop.xlane.xlu0 %517 }
 0x363   :  { %v519_v21 = vsub.f32 %v510_v15, %v518_v20 }
 0x365   :  { %v520_v22 = vmul.f32 1.442695, %v519_v21 }
 0x367   :  { %4330 = vpow2.f32 %v520_v22 }
 0x371   :  { %v4331_v23 = vpop.eup %4330 }
 0x372   :  { %v522_v24 = vsel %vm515_vm6, %v4331_v23, 0.0 }
 0x373   :  { %523 = vadd.xlane.f32.xlu0 %v522_v24 }
 0x389   :  { %690 = vrot.lane.b32.xlu0 %v460_v63, %s4462_s16 }
 0x38d   :  { %1018 = vrot.lane.b32.xlu0 %v453_v2, %s4465_s21 }
 0x391   :  { %1128 = vrot.lane.b32.xlu0 %v453_v2, %s4466_s22 }
 0x395   :  { %1238 = vrot.lane.b32.xlu0 %v453_v2, %s4467_s0 }
 0x400   :  { %v524_v25 = vpop.xlane.xlu0 %523 }
 0x401   :  { %4332 = vrcp.f32 %v524_v25 }
 0x404   :  { %v691_v35 = vpop.permute.xlu0 %690 }
 0x405   :  { %v696_v36 = vsel %vm468_vm3, %v691_v35, 0 }
 0x408   :  { %v1019_v46 = vpop.permute.xlu0 %1018 }
 0x40b   :  { %v4333_v28 = vpop.eup %4332 }
 0x40c   :  { %v526_v29 = vmul.f32 %v4333_v28, %v4331_v23  ;;  %v1129_v49 = vpop.permute.xlu0 %1128 }
 0x40e   :  { %v527_v30 = vpack.c.bf16 %v526_v29, %v526_v29 }
 0x410   :  { %3838 = vmatmul.mubr.msk.bf16.vlgmr.msra.gmra.mrb[8].mxu0 %vm515_vm6, %v527_v30  ;;  %v1239_v51 = vpop.permute.xlu0 %1238 }
 0x411   :  { %3842 = vmatpush3.bf16.xpose.msra.mxu0 %v585_v33  ;;  %3843 = vmatprep.mubr.msk.bf16.mxu0 %vm4460_vm1, %v4459_v32 }
 0x412   :  { %3853 = vmatprep.subr.bf16.mxu0 %v4459_v32 }
 0x418   :  { %3844 = vmatmul.mubr.msk.bf16.vlgmr.msra.gmra.mrb[12].mxu0 %vm468_vm3, %v577_v27 }
 0x419   :  { %3854 = vmatpush3.bf16.xpose.msra.mxu0 %v696_v36  ;;  %3855 = vmatprep.mubr.msk.bf16.mxu0 %vm4460_vm1, %v4459_v32 }
 0x41a   :  { %3865 = vmatprep.subr.bf16.mxu0 %v4459_v32 }
 0x420   :  { %3856 = vmatmul.mubr.msk.bf16.vlgmr.msra.gmra.mrb[16].mxu0 %vm468_vm3, %v689_v31 }
 0x421   :  { %3866 = vmatpush3.bf16.xpose.msra.mxu0 %v806_v38  ;;  %3867 = vmatprep.mubr.msk.bf16.mxu0 %vm4460_vm1, %v4459_v32 }
 0x422   :  { %3877 = vmatprep.subr.bf16.mxu0 %v4459_v32 }
 0x428   :  { %3868 = vmatmul.mubr.msk.bf16.vlgmr.msra.gmra.mrb[20].mxu0 %vm468_vm3, %v799_v37 }
 0x429   :  { %3878 = vmatpush3.bf16.xpose.msra.mxu0 %v916_v41  ;;  %3879 = vmatprep.mubr.msk.bf16.mxu0 %vm4460_vm1, %v4459_v32 }
 0x42a   :  { %3889 = vmatprep.subr.bf16.mxu0 %v4459_v32 }
 0x430   :  { %3880 = vmatmul.mubr.msk.bf16.vlgmr.msra.gmra.mrb[24].mxu0 %vm468_vm3, %v909_v40 }
 0x431   :  { %3890 = vmatpush3.bf16.xpose.msra.mxu0 %v1026_v43  ;;  %3891 = vmatprep.mubr.msk.bf16.mxu0 %vm4460_vm1, %v4459_v32 }
 0x432   :  { %3901 = vmatprep.subr.bf16.mxu0 %v4459_v32 }
 0x438   :  { %3892 = vmatmul.mubr.msk.bf16.vlgmr.msra.gmra.mrb[28].mxu0 %vm468_vm3, %v1019_v46 }
 0x439   :  { %3902 = vmatpush3.bf16.xpose.msra.mxu0 %v1136_v47  ;;  %3903 = vmatprep.mubr.msk.bf16.mxu0 %vm4460_vm1, %v4459_v32 }
 0x43a   :  { %3913 = vmatprep.subr.bf16.mxu0 %v4459_v32 }
 0x440   :  { %3904 = vmatmul.mubr.msk.bf16.vlgmr.msra.gmra.mrb[32].mxu0 %vm468_vm3, %v1129_v49 }
 0x441   :  { %3914 = vmatpush3.bf16.xpose.msra.mxu0 %v1246_v50  ;;  %3915 = vmatprep.mubr.msk.bf16.mxu0 %vm4460_vm1, %v4459_v32 }
 0x442   :  { %3925 = vmatprep.subr.bf16.mxu0 %v4459_v32 }
 0x448   :  { %3916 = vmatmul.mubr.msk.bf16.vlgmr.msra.gmra.mrb[36].mxu0 %vm468_vm3, %v1239_v51 }
 0x449   :  { %3941 = vmatprep.mubr.msk.bf16.mxu0 %vm4460_vm1, %v4459_v32 }
 0x4e3   :  { %v4671_v52 = vpop.f32.mrb[8].mxu0 }
 0x4e4   :  { %v3839_v53 = vpop.f32.mrb[9].mxu0 }
 0x4e5   :  { %v572_v54 = vpop.f32.mrb[10].mxu0 }
 0x4e6   :  { %v3840_v55 = vpop.f32.mrb[11].mxu0 }
 0x4eb   :  { %v621_v56 = vpop.f32.mrb[12].mxu0 }
 0x4ec   :  { %v622_v57 = vadd.f32 %v621_v56, %v4624_v13  ;;  %v3845_v58 = vpop.f32.mrb[13].mxu0 }
 0x4ed   :  { %v624_v59 = vpop.f32.mrb[14].mxu0 }
 0x4ee   :  { %v3846_v60 = vpop.f32.mrb[15].mxu0  ;;  %v627_v61 = vsel %vm515_vm6, %v622_v57, -inf }
 0x4ef   :  { %628 = vmax.xlane.f32.xlu1 %v627_v61 }
 0x4f3   :  { %v732_v62 = vpop.f32.mrb[16].mxu0 }
 0x4f4   :  { %v733_v63 = vadd.f32 %v732_v62, %v4624_v13  ;;  %v3857_v1 = vpop.f32.mrb[17].mxu0 }
 0x4f5   :  { %v735_v2 = vpop.f32.mrb[18].mxu0 }
 0x4f6   :  { %v3858_v3 = vpop.f32.mrb[19].mxu0  ;;  %v738_v4 = vsel %vm515_vm6, %v733_v63, -inf }
 0x4f7   :  { %739 = vmax.xlane.f32.xlu0 %v738_v4 }
 0x4fb   :  { %v842_v5 = vpop.f32.mrb[20].mxu0 }
 0x4fc   :  { %v843_v6 = vadd.f32 %v842_v5, %v4624_v13  ;;  %v3869_v7 = vpop.f32.mrb[21].mxu0 }
 0x4fd   :  { %v845_v9 = vpop.f32.mrb[22].mxu0 }
 0x4fe   :  { %v3870_v10 = vpop.f32.mrb[23].mxu0  ;;  %v848_v11 = vsel %vm515_vm6, %v843_v6, -inf }
 0x4ff   :  { %849 = vmax.xlane.f32.xlu0 %v848_v11 }
 0x503   :  { %v952_v12 = vpop.f32.mrb[24].mxu0 }
 0x504   :  { %v953_v14 = vadd.f32 %v952_v12, %v4624_v13  ;;  %v3881_v15 = vpop.f32.mrb[25].mxu0 }
 0x505   :  { %v955_v16 = vpop.f32.mrb[26].mxu0 }
 0x506   :  { %v3882_v17 = vpop.f32.mrb[27].mxu0  ;;  %v958_v18 = vsel %vm515_vm6, %v953_v14, -inf }
 0x507   :  { %959 = vmax.xlane.f32.xlu1 %v958_v18 }
 0x50b   :  { %v1062_v19 = vpop.f32.mrb[28].mxu0 }
 0x50c   :  { %v1063_v20 = vadd.f32 %v1062_v19, %v4624_v13  ;;  %v3893_v21 = vpop.f32.mrb[29].mxu0 }
 0x50d   :  { %v1065_v22 = vpop.f32.mrb[30].mxu0 }
 0x50e   :  { %v3894_v23 = vpop.f32.mrb[31].mxu0  ;;  %v1068_v24 = vsel %vm515_vm6, %v1063_v20, -inf }
 0x50f   :  { %1069 = vmax.xlane.f32.xlu0 %v1068_v24 }
 0x513   :  { %v1172_v25 = vpop.f32.mrb[32].mxu0 }
 0x514   :  { %v1173_v26 = vadd.f32 %v1172_v25, %v4624_v13  ;;  %v3905_v27 = vpop.f32.mrb[33].mxu0 }
 0x515   :  { %v1175_v28 = vpop.f32.mrb[34].mxu0 }
 0x516   :  { %v3906_v29 = vpop.f32.mrb[35].mxu0  ;;  %v1178_v30 = vsel %vm515_vm6, %v1173_v26, -inf }
 0x517   :  { %1179 = vmax.xlane.f32.xlu1 %v1178_v30 }
 0x51b   :  { %v1282_v31 = vpop.f32.mrb[36].mxu0 }
 0x51c   :  { %v1283_v33 = vadd.f32 %v1282_v31, %v4624_v13  ;;  %v3917_v34 = vpop.f32.mrb[37].mxu0 }
 0x51d   :  { %v1285_v35 = vpop.f32.mrb[38].mxu0 }
 0x51e   :  { %v3918_v36 = vpop.f32.mrb[39].mxu0  ;;  %v1288_v37 = vsel %vm515_vm6, %v1283_v33, -inf }
 0x51f   :  { %1289 = vmax.xlane.f32.xlu0 %v1288_v37 }
 0x528   :  { %640 = vrot.lane.b32.xlu1 %v4616_v8, %s4461_s15 }
 0x535   :  { %750 = vrot.lane.b32.xlu0 %v4616_v8, %s4462_s16 }
 0x57c   :  { %v629_v38 = vpop.xlane.xlu1 %628 }
 0x57d   :  { %v630_v39 = vsub.f32 %v622_v57, %v629_v38 }
 0x57f   :  { %v631_v40 = vmul.f32 1.442695, %v630_v39 }
 0x581   :  { %4334 = vpow2.f32 %v631_v40 }
 0x584   :  { %v740_v41 = vpop.xlane.xlu0 %739 }
 0x585   :  { %v741_v42 = vsub.f32 %v733_v63, %v740_v41 }
 0x587   :  { %v742_v43 = vmul.f32 1.442695, %v741_v42 }
 0x589   :  { %4336 = vpow2.f32 %v742_v43 }
 0x58b   :  { %v4335_v44 = vpop.eup %4334 }
 0x58c   :  { %v850_v46 = vpop.xlane.xlu0 %849  ;;  %v633_v47 = vsel %vm515_vm6, %v4335_v44, 0.0 }
 0x58d   :  { %v851_v48 = vsub.f32 %v843_v6, %v850_v46  ;;  %634 = vadd.xlane.f32.xlu1 %v633_v47 }
 0x58f   :  { %v852_v49 = vmul.f32 1.442695, %v851_v48 }
 0x591   :  { %4338 = vpow2.f32 %v852_v49 }
 0x593   :  { %v4337_v50 = vpop.eup %4336 }
 0x594   :  { %v744_v51 = vsel %vm515_vm6, %v4337_v50, 0.0  ;;  %v960_v55 = vpop.xlane.xlu1 %959 }
 0x595   :  { %745 = vadd.xlane.f32.xlu0 %v744_v51  ;;  %v961_v59 = vsub.f32 %v953_v14, %v960_v55 }
 0x597   :  { %v962_v61 = vmul.f32 1.442695, %v961_v59 }
 0x599   :  { %4340 = vpow2.f32 %v962_v61 }
 0x59b   :  { %v4693_v53 = vpop.eup %4338 }
 0x59c   :  { %v854_v54 = vsel %vm515_vm6, %v4693_v53, 0.0  ;;  %v1070_v60 = vpop.xlane.xlu0 %1069 }
 0x59d   :  { %855 = vadd.xlane.f32.xlu1 %v854_v54  ;;  %v1071_v62 = vsub.f32 %v1063_v20, %v1070_v60 }
 0x59f   :  { %v1072_v2 = vmul.f32 1.442695, %v1071_v62  ;;  %v4242_v62 = vld [vmem:[#allocation2 + $0xc] ss:$24 sps:$4 sm:$0xff]  }
 0x5a0   :  { %3926 = vmatpush3.bf16.msra.mxu0 %v4242_v62  ;;  %v4252_v62 = vld [vmem:[#allocation2 + $0x70] ss:$24 sps:$4 sm:$0xff]  }
 0x5a1   :  { %4342 = vpow2.f32 %v1072_v2  ;;  %3927 = vmatprep.subr.bf16.mxu0 %v4459_v32 }
 0x5a3   :  { %v4341_v6 = vpop.eup %4340 }
 0x5a4   :  { %v1180_v56 = vpop.xlane.xlu1 %1179  ;;  %v964_v7 = vsel %vm515_vm6, %v4341_v6, 0.0 }
 0x5a5   :  { %v1181_v1 = vsub.f32 %v1173_v26, %v1180_v56 }
 0x5a7   :  { %v1182_v4 = vmul.f32 1.442695, %v1181_v1 }
 0x5a8   :  { %v641_v57 = vpop.permute.xlu1 %640 }
 0x5a9   :  { %v646_v58 = vsel %vm531_vm4, %v641_v57, 0  ;;  %4344 = vpow2.f32 %v1182_v4 }
 0x5aa   :  { %3848 = vmatpush3.bf16.msra.mxu1 %v646_v58 }
 0x5ab   :  { %860 = vrot.lane.b32.xlu0 %v4616_v8, %s4463_s17  ;;  %3859 = vmatprep.subr.bf16.mxu1 %v4459_v32  ;;  %v4343_v9 = vpop.eup %4342 }
 0x5ac   :  { %v1290_v63 = vpop.xlane.xlu0 %1289  ;;  %v1074_v11 = vsel %vm515_vm6, %v4343_v9, 0.0 }
 0x5ad   :  { %v1291_v3 = vsub.f32 %v1283_v33, %v1290_v63 }
 0x5ae   :  { %970 = vrot.lane.b32.xlu1 %v4616_v8, %s4464_s18 }
 0x5af   :  { %v1292_v5 = vmul.f32 1.442695, %v1291_v3 }
 0x5b0   :  { %v751_v17 = vpop.permute.xlu0 %750 }
 0x5b1   :  { %4346 = vpow2.f32 %v1292_v5  ;;  %v756_v22 = vsel %vm531_vm4, %v751_v17, 0 }
 0x5b3   :  { %v4704_v10 = vpop.eup %4344 }
 0x5b4   :  { %v1184_v14 = vsel %vm515_vm6, %v4704_v10, 0.0 }
 0x5bb   :  { %v4707_v12 = vpop.eup %4346 }
 0x5bc   :  { %v1294_v15 = vsel %vm515_vm6, %v4707_v12, 0.0 }
 0x5ca   :  { %965 = vadd.xlane.f32.xlu0 %v964_v7 }
 0x5ce   :  { %1075 = vadd.xlane.f32.xlu0 %v1074_v11  ;;  %v4245_v11 = vld [vmem:[#allocation2 + $0x9c] ss:$24 sps:$4 sm:$0xff]  }
 0x5d2   :  { %1185 = vadd.xlane.f32.xlu1 %v1184_v14  ;;  %1295 = vadd.xlane.f32.xlu0 %v1294_v15 }
 0x5e3   :  { %1190 = vrot.lane.b32.xlu1 %v4616_v8, %s4466_s22 }
 0x5e7   :  { %1300 = vrot.lane.b32.xlu1 %v4616_v8, %s4467_s0 }
 0x5e8   :  { %1080 = vrot.lane.b32.xlu0 %v4616_v8, %s4465_s21 }
 0x61a   :  { %v635_v16 = vpop.xlane.xlu1 %634 }
 0x61b   :  { %4348 = vrcp.f32 %v635_v16 }
 0x622   :  { %v746_v18 = vpop.xlane.xlu0 %745 }
 0x623   :  { %4350 = vrcp.f32 %v746_v18  ;;  %v4247_v18 = vld [vmem:[#allocation2 + $0xfc] ss:$24 sps:$4 sm:$0xff]  }
 0x625   :  { %v4349_v19 = vpop.eup %4348 }
 0x626   :  { %v637_v20 = vmul.f32 %v4349_v19, %v4335_v44  ;;  %v861_v25 = vpop.permute.xlu0 %860  ;;  %v4248_v19 = vld [vmem:[#allocation2 + $0x12c] ss:$24 sps:$4 sm:$0xff]  }
 0x627   :  { %v866_v27 = vsel %vm531_vm4, %v861_v25, 0 }
 0x628   :  { %v638_v21 = vpack.c.bf16 %v637_v20, %v637_v20 }
 0x62a   :  { %3850 = vmatmul.mubr.msk.bf16.vlgmr.msra.gmra.mrb[8].mxu1 %vm515_vm6, %v638_v21  ;;  %v856_v23 = vpop.xlane.xlu1 %855 }
 0x62b   :  { %4352 = vrcp.f32 %v856_v23  ;;  %3860 = vmatpush3.bf16.msra.mxu1 %v756_v22  ;;  %3861 = vmatprep.mubr.msk.bf16.mxu1 %vm4460_vm1, %v4459_v32 }
 0x62c   :  { %3871 = vmatprep.subr.bf16.mxu1 %v4459_v32 }
 0x62d   :  { %v4351_v8 = vpop.eup %4350 }
 0x62e   :  { %v748_v24 = vmul.f32 %v4351_v8, %v4337_v50  ;;  %v971_v30 = vpop.permute.xlu1 %970  ;;  %v4249_v8 = vld [vmem:[#allocation2 + $0x15c] ss:$24 sps:$4 sm:$0xff]  }
 0x62f   :  { %v976_v33 = vsel %vm531_vm4, %v971_v30, 0 }
 0x630   :  { %v749_v26 = vpack.c.bf16 %v748_v24, %v748_v24 }
 0x632   :  { %3862 = vmatmul.mubr.msk.bf16.vlgmr.msra.gmra.mrb[12].mxu1 %vm515_vm6, %v749_v26 }
 0x633   :  { %3872 = vmatpush3.bf16.msra.mxu1 %v866_v27  ;;  %3873 = vmatprep.mubr.msk.bf16.mxu1 %vm4460_vm1, %v4459_v32 }
 0x634   :  { %3883 = vmatprep.subr.bf16.mxu1 %v4459_v32 }
 0x635   :  { %v4353_v28 = vpop.eup %4352 }
 0x636   :  { %v858_v29 = vmul.f32 %v4353_v28, %v4693_v53 }
 0x638   :  { %v859_v31 = vpack.c.bf16 %v858_v29, %v858_v29 }
 0x63a   :  { %3874 = vmatmul.mubr.msk.bf16.vlgmr.msra.gmra.mrb[16].mxu1 %vm515_vm6, %v859_v31 }
 0x63b   :  { %3884 = vmatpush3.bf16.msra.mxu1 %v976_v33  ;;  %3885 = vmatprep.mubr.msk.bf16.mxu1 %vm4460_vm1, %v4459_v32 }
 0x63c   :  { %3895 = vmatprep.subr.bf16.mxu1 %v4459_v32 }
 0x657   :  { %v966_v34 = vpop.xlane.xlu0 %965 }
 0x658   :  { %4354 = vrcp.f32 %v966_v34 }
 0x65b   :  { %v1076_v35 = vpop.xlane.xlu0 %1075 }
 0x65c   :  { %4356 = vrcp.f32 %v1076_v35 }
 0x65f   :  { %v1296_v36 = vpop.xlane.xlu0 %1295  ;;  %v1186_v37 = vpop.xlane.xlu1 %1185 }
 0x660   :  { %4358 = vrcp.f32 %v1186_v37 }
 0x661   :  { %4360 = vrcp.f32 %v1296_v36 }
 0x662   :  { %v4355_v38 = vpop.eup %4354 }
 0x663   :  { %v968_v39 = vmul.f32 %v4355_v38, %v4341_v6  ;;  %v1081_v40 = vpop.permute.xlu0 %1080  ;;  %v1191_v46 = vpop.permute.xlu1 %1190 }
 0x664   :  { %v1086_v43 = vsel %vm531_vm4, %v1081_v40, 0  ;;  %v1196_v49 = vsel %vm531_vm4, %v1191_v46, 0 }
 0x665   :  { %v969_v41 = vpack.c.bf16 %v968_v39, %v968_v39 }
 0x666   :  { %v4357_v42 = vpop.eup %4356 }
 0x667   :  { %3886 = vmatmul.mubr.msk.bf16.vlgmr.msra.gmra.mrb[20].mxu1 %vm515_vm6, %v969_v41  ;;  %v1078_v44 = vmul.f32 %v4357_v42, %v4343_v9  ;;  %v1301_v51 = vpop.permute.xlu1 %1300  ;;  %v4243_v9 = vld [vmem:[#allocation2 + $0x3c] ss:$24 sps:$4 sm:$0xff]  }
 0x668   :  { %3896 = vmatpush3.bf16.msra.mxu1 %v1086_v43  ;;  %3897 = vmatprep.mubr.msk.bf16.mxu1 %vm4460_vm1, %v4459_v32  ;;  %v1306_v55 = vsel %vm531_vm4, %v1301_v51, 0 }
 0x669   :  { %3907 = vmatprep.subr.bf16.mxu1 %v4459_v32  ;;  %v1079_v47 = vpack.c.bf16 %v1078_v44, %v1078_v44  ;;  %3928 = vmatpush3.bf16.msra.mxu0 %v4243_v9  ;;  %v4262_v9 = vld [vmem:[#allocation2 + $0xd4] ss:$24 sps:$4 sm:$0xff]  }
 0x66a   :  { %v4359_v48 = vpop.eup %4358  ;;  %3929 = vmatprep.subr.bf16.mxu0 %v4459_v32 }
 0x66b   :  { %v1188_v50 = vmul.f32 %v4359_v48, %v4704_v10  ;;  %v4361_v54 = vpop.eup %4360  ;;  %v4244_v10 = vld [vmem:[#allocation2 + $0x6c] ss:$24 sps:$4 sm:$0xff]  }
 0x66c   :  { %v1298_v56 = vmul.f32 %v4361_v54, %v4707_v12  ;;  %v4246_v12 = vld [vmem:[#allocation2 + $0xcc] ss:$24 sps:$4 sm:$0xff]  }
 0x66d   :  { %v1189_v53 = vpack.c.bf16 %v1188_v50, %v1188_v50  ;;  %3930 = vmatpush3.bf16.msra.mxu0 %v4244_v10  ;;  %v4263_v10 = vld [vmem:[#allocation2 + $0x104] ss:$24 sps:$4 sm:$0xff]  }
 0x66e   :  { %v1299_v57 = vpack.c.bf16 %v1298_v56, %v1298_v56  ;;  %3931 = vmatprep.subr.bf16.mxu0 %v4459_v32  ;;  %v4250_v56 = vld [vmem:[#allocation2 + $0x10] ss:$24 sps:$4 sm:$0xff]  }
 0x66f   :  { %3898 = vmatmul.mubr.msk.bf16.vlgmr.msra.gmra.mrb[24].mxu1 %vm515_vm6, %v1079_v47 }
 0x670   :  { %3908 = vmatpush3.bf16.msra.mxu1 %v1196_v49  ;;  %3909 = vmatprep.mubr.msk.bf16.mxu1 %vm4460_vm1, %v4459_v32 }
 0x671   :  { %3919 = vmatprep.subr.bf16.mxu1 %v4459_v32  ;;  %3932 = vmatpush3.bf16.msra.mxu0 %v4245_v11 }
 0x672   :  { %3933 = vmatprep.subr.bf16.mxu0 %v4459_v32 }
 0x675   :  { %3934 = vmatpush3.bf16.msra.mxu0 %v4246_v12 }
 0x676   :  { %3935 = vmatprep.subr.bf16.mxu0 %v4459_v32 }
 0x677   :  { %3910 = vmatmul.mubr.msk.bf16.vlgmr.msra.gmra.mrb[28].mxu1 %vm515_vm6, %v1189_v53 }
 0x678   :  { %3920 = vmatpush3.bf16.msra.mxu1 %v1306_v55  ;;  %3921 = vmatprep.mubr.msk.bf16.mxu1 %vm4460_vm1, %v4459_v32 }
 0x679   :  { %3945 = vmatprep.subr.bf16.mxu1 %v4459_v32  ;;  %3936 = vmatpush3.bf16.msra.mxu0 %v4247_v18  ;;  %v3551_v18 = vld [vmem:[%s5125_s5 + $0x5] ss:$0 sm:$0xff] }
 0x67a   :  { %3937 = vmatprep.subr.bf16.mxu0 %v4459_v32 }
 0x67d   :  { %3938 = vmatpush3.bf16.msra.mxu0 %v4248_v19 }
 0x67e   :  { %3939 = vmatprep.subr.bf16.mxu0 %v4459_v32 }
 0x67f   :  { %3922 = vmatmul.mubr.msk.bf16.vlgmr.msra.gmra.mrb[32].mxu1 %vm515_vm6, %v1299_v57  ;;  %v4251_v57 = vld [vmem:[#allocation2 + $0x40] ss:$24 sps:$4 sm:$0xff]  }
 0x680   :  { %3961 = vmatprep.mubr.msk.bf16.mxu1 %vm4460_vm1, %v4459_v32  ;;  %3946 = vmatpush3.bf16.msra.mxu1 %v4250_v56  ;;  %v4282_v56 = vld [vmem:[#allocation2 + $0x240] ss:$24 sps:$4 sm:$0xff]  }
 0x681   :  { %3940 = vmatpush3.bf16.msra.mxu0 %v4249_v8  ;;  %3947 = vmatprep.subr.bf16.mxu1 %v4459_v32  ;;  %v3552_v8 = vld [vmem:[%s5125_s5 + $0x6] ss:$0 sm:$0xff] }
 0x682   :  { %3965 = vmatprep.subr.bf16.mxu0 %v4459_v32 }
 0x684   :  { %3948 = vmatpush3.bf16.msra.mxu1 %v4251_v57  ;;  %v4285_v57 = vld [vmem:[#allocation2 + $0x248] ss:$24 sps:$4 sm:$0xff]  }
 0x685   :  { %3949 = vmatprep.subr.bf16.mxu1 %v4459_v32 }
 0x688   :  { %3950 = vmatpush3.bf16.msra.mxu1 %v4252_v62  ;;  %v4290_v62 = vld [vmem:[#allocation2 + $0x2a0] ss:$24 sps:$4 sm:$0xff]  }
 0x689   :  { %3951 = vmatprep.subr.bf16.mxu1 %v4459_v32 }
 0x6fd   :  { %v682_v58 = vpop.f32.mrb[8].mxu1 }
 0x6fe   :  { %1349 = vrot.lane.b32.xlu1 %v682_v58, %s4467_s0  ;;  %v3851_v59 = vpop.f32.mrb[9].mxu1 }
 0x6ff   :  { %v685_v60 = vpop.f32.mrb[10].mxu1 }
 0x700   :  { %v3852_v61 = vpop.f32.mrb[11].mxu1 }
 0x705   :  { %v792_v63 = vpop.f32.mrb[12].mxu1 }
 0x706   :  { %1353 = vrot.lane.b32.xlu1 %v792_v63, %s4466_s22  ;;  %v3863_v1 = vpop.f32.mrb[13].mxu1  ;;  %v4253_v63 = vld [vmem:[#allocation2 + $0xa0] ss:$24 sps:$4 sm:$0xff]  }
 0x707   :  { %v795_v2 = vpop.f32.mrb[14].mxu1  ;;  %3952 = vmatpush3.bf16.msra.mxu1 %v4253_v63  ;;  %v4255_v1 = vld [vmem:[#allocation2 + $0x100] ss:$24 sps:$4 sm:$0xff]  }
 0x708   :  { %v3864_v3 = vpop.f32.mrb[15].mxu1  ;;  %3953 = vmatprep.subr.bf16.mxu1 %v4459_v32  ;;  %v4256_v2 = vld [vmem:[#allocation2 + $0x130] ss:$24 sps:$4 sm:$0xff]  }
 0x709   :  { %v4257_v3 = vld [vmem:[#allocation2 + $0x160] ss:$24 sps:$4 sm:$0xff]  }
 0x70a   :  { %v4293_v63 = vld [vmem:[#allocation2 + $0x2a8] ss:$24 sps:$4 sm:$0xff]  }
 0x70d   :  { %v902_v4 = vpop.f32.mrb[16].mxu1 }
 0x70e   :  { %1357 = vrot.lane.b32.xlu0 %v902_v4, %s4465_s21  ;;  %v3875_v5 = vpop.f32.mrb[17].mxu1  ;;  %v4258_v4 = vld [vmem:[#allocation2 + $0x14] ss:$24 sps:$4 sm:$0xff]  }
 0x70f   :  { %v905_v6 = vpop.f32.mrb[18].mxu1  ;;  %v4259_v5 = vld [vmem:[#allocation2 + $0x44] ss:$24 sps:$4 sm:$0xff]  }
 0x710   :  { %v3876_v7 = vpop.f32.mrb[19].mxu1  ;;  %v4260_v6 = vld [vmem:[#allocation2 + $0x74] ss:$24 sps:$4 sm:$0xff]  }
 0x711   :  { %v4261_v7 = vld [vmem:[#allocation2 + $0xa4] ss:$24 sps:$4 sm:$0xff]  }
 0x73a   :  { %v1012_v14 = vpop.f32.mrb[20].mxu1 }
 0x73b   :  { %1361 = vrot.lane.b32.xlu1 %v1012_v14, %s4464_s18  ;;  %v3887_v15 = vpop.f32.mrb[21].mxu1 }
 0x73c   :  { %v1015_v16 = vpop.f32.mrb[22].mxu1 }
 0x73d   :  { %v3888_v17 = vpop.f32.mrb[23].mxu1  ;;  %v3550_v16 = vld [vmem:[%s5125_s5 + $0x4] ss:$0 sm:$0xff] }
 0x742   :  { %v1122_v20 = vpop.f32.mrb[24].mxu1 }
 0x743   :  { %1365 = vrot.lane.b32.xlu0 %v1122_v20, %s4463_s17  ;;  %v3899_v21 = vpop.f32.mrb[25].mxu1 }
 0x744   :  { %v1125_v22 = vpop.f32.mrb[26].mxu1 }
 0x745   :  { %v3900_v23 = vpop.f32.mrb[27].mxu1  ;;  %v4264_v22 = vld [vmem:[#allocation2 + $0x134] ss:$24 sps:$4 sm:$0xff]  }
 0x746   :  { %v4265_v23 = vld [vmem:[#allocation2 + $0x164] ss:$24 sps:$4 sm:$0xff]  }
 0x74a   :  { %v1232_v24 = vpop.f32.mrb[28].mxu1 }
 0x74b   :  { %1369 = vrot.lane.b32.xlu1 %v1232_v24, %s4462_s16  ;;  %v3911_v25 = vpop.f32.mrb[29].mxu1 }
 0x74c   :  { %v1235_v26 = vpop.f32.mrb[30].mxu1 }
 0x74d   :  { %v3912_v27 = vpop.f32.mrb[31].mxu1 }
 0x752   :  { %v1342_v28 = vpop.f32.mrb[32].mxu1 }
 0x753   :  { %1373 = vrot.lane.b32.xlu0 %v1342_v28, %s4461_s15  ;;  %v3923_v29 = vpop.f32.mrb[33].mxu1 }
 0x754   :  { %v1345_v30 = vpop.f32.mrb[34].mxu1 }
 0x755   :  { %v3924_v31 = vpop.f32.mrb[35].mxu1 }
 0x770   :  { %v1350_v33 = vpop.permute.xlu1 %1349 }
 0x771   :  { %v1376_v37 = vsel %vm468_vm3, %v4671_v52, %v1350_v33  ;;  %v3541_v52 = vld [vmem:[%s5125_s5 + $0x3] ss:$0 sm:$0xff] }
 0x778   :  { %v1354_v34 = vpop.permute.xlu1 %1353 }
 0x779   :  { %v1378_v38 = vsel %vm1377_vm7, %v1376_v37, %v1354_v34 }
 0x780   :  { %v1358_v35 = vpop.permute.xlu0 %1357 }
 0x781   :  { %v1380_v40 = vsel %vm1379_vm8, %v1378_v38, %v1358_v35  ;;  %v4266_v38 = vld [vmem:[#allocation2 + $0x180] ss:$24 sps:$4 sm:$0xff]  }
 0x7ad   :  { %v1362_v36 = vpop.permute.xlu1 %1361 }
 0x7ae   :  { %v1381_v42 = vsel %vm151_vm0, %v1380_v40, %v1362_v36  ;;  %v4269_v40 = vld [vmem:[#allocation2 + $0x188] ss:$24 sps:$4 sm:$0xff]  }
 0x7b5   :  { %v1366_v39 = vpop.permute.xlu0 %1365 }
 0x7b6   :  { %v1383_v43 = vsel %vm1382_vm9, %v1381_v42, %v1366_v39  ;;  %v4268_v39 = vld [vmem:[#allocation2 + $0x184] ss:$24 sps:$4 sm:$0xff]   ;;  %v4273_v42 = vld [vmem:[#allocation2 + $0x1b8] ss:$24 sps:$4 sm:$0xff]  }
 0x7bd   :  { %v1370_v41 = vpop.permute.xlu1 %1369 }
 0x7be   :  { %v1385_v44 = vsel %vm1384_vm10, %v1383_v43, %v1370_v41  ;;  %v4272_v41 = vld [vmem:[#allocation2 + $0x1b4] ss:$24 sps:$4 sm:$0xff]   ;;  %v4270_v43 = vld [vmem:[#allocation2 + $0x1b0] ss:$24 sps:$4 sm:$0xff]  }
 0x7c5   :  { %v1374_v46 = vpop.permute.xlu0 %1373 }
 0x7c6   :  { %v1387_v47 = vsel %vm1386_vm11, %v1385_v44, %v1374_v46  ;;  %v4276_v44 = vld [vmem:[#allocation2 + $0x1e4] ss:$24 sps:$4 sm:$0xff]   ;;  %v4274_v46 = vld [vmem:[#allocation2 + $0x1e0] ss:$24 sps:$4 sm:$0xff]  }
 0x7c7   :  { %v1388_v48 = vpack.c.bf16 %v1387_v47, %v1387_v47 }
 0x7c9   :  { %3942 = vmatmul.mubr.bf16.vlgmr.msra.gmra.mrb[40].mxu0 %v1388_v48 }
 0x7ca   :  { %3981 = vmatprep.mubr.msk.bf16.mxu0 %vm4460_vm1, %v4459_v32  ;;  %3966 = vmatpush3.bf16.msra.mxu0 %v4258_v4 }
 0x7cb   :  { %3967 = vmatprep.subr.bf16.mxu0 %v4459_v32 }
 0x7ce   :  { %3968 = vmatpush3.bf16.msra.mxu0 %v4259_v5 }
 0x7cf   :  { %3969 = vmatprep.subr.bf16.mxu0 %v4459_v32 }
 0x7d2   :  { %3970 = vmatpush3.bf16.msra.mxu0 %v4260_v6 }
 0x7d3   :  { %3971 = vmatprep.subr.bf16.mxu0 %v4459_v32 }
 0x7d6   :  { %3972 = vmatpush3.bf16.msra.mxu0 %v4261_v7  ;;  %v3570_v7 = vld [vmem:[%s5125_s5 + $0x8] ss:$0 sm:$0xff] }
 0x7d7   :  { %3973 = vmatprep.subr.bf16.mxu0 %v4459_v32 }
 0x7da   :  { %3974 = vmatpush3.bf16.msra.mxu0 %v4262_v9 }
 0x7db   :  { %3975 = vmatprep.subr.bf16.mxu0 %v4459_v32 }
 0x7de   :  { %3976 = vmatpush3.bf16.msra.mxu0 %v4263_v10  ;;  %v3571_v10 = vld [vmem:[%s5125_s5 + $0x9] ss:$0 sm:$0xff] }
 0x7df   :  { %3977 = vmatprep.subr.bf16.mxu0 %v4459_v32 }
 0x7e2   :  { %3978 = vmatpush3.bf16.msra.mxu0 %v4264_v22 }
 0x7e3   :  { %3979 = vmatprep.subr.bf16.mxu0 %v4459_v32 }
 0x7e6   :  { %3980 = vmatpush3.bf16.msra.mxu0 %v4265_v23  ;;  %v3601_v23 = vld [vmem:[%s5125_s5 + $0x12] ss:$0 sm:$0xff] }
 0x7e7   :  { %3985 = vmatprep.subr.bf16.mxu0 %v4459_v32 }
 0x89c   :  { %v1492_v49 = vpop.f32.mrb[40].mxu0 }
 0x89d   :  { %v1493_v50 = vadd.f32 %v3541_v52, %v1492_v49  ;;  %v3943_v51 = vpop.f32.mrb[41].mxu0 }
 0x89e   :  { %v1495_v53 = vpop.f32.mrb[42].mxu0  ;;  %v4280_v51 = vld [vmem:[#allocation2 + $0x214] ss:$24 sps:$4 sm:$0xff]  }
 0x89f   :  { %v3944_v54 = vpop.f32.mrb[43].mxu0  ;;  %v1498_v55 = vadd.f32 %v1493_v50, %v4578_v45  ;;  %v4254_v45 = vld [vmem:[#allocation2 + $0xd0] ss:$24 sps:$4 sm:$0xff]  }
 0x8a0   :  { %3954 = vmatpush3.bf16.msra.mxu1 %v4254_v45  ;;  %v4277_v50 = vld [vmem:[#allocation2 + $0x1e8] ss:$24 sps:$4 sm:$0xff]   ;;  %v4281_v54 = vld [vmem:[#allocation2 + $0x218] ss:$24 sps:$4 sm:$0xff]   ;;  %v4296_v45 = vld [vmem:[#allocation2 + $0x2d4] ss:$24 sps:$4 sm:$0xff]  }
 0x8a1   :  { %1501 = vadd.xlane.f32.xlu1 %v1498_v55  ;;  %3955 = vmatprep.subr.bf16.mxu1 %v4459_v32  ;;  %v4278_v53 = vld [vmem:[#allocation2 + $0x210] ss:$24 sps:$4 sm:$0xff]  }
 0x8a4   :  { %3956 = vmatpush3.bf16.msra.mxu1 %v4255_v1  ;;  %v4294_v1 = vld [vmem:[#allocation2 + $0x2d0] ss:$24 sps:$4 sm:$0xff]  }
 0x8a5   :  { %3957 = vmatprep.subr.bf16.mxu1 %v4459_v32 }
 0x8a8   :  { %3958 = vmatpush3.bf16.msra.mxu1 %v4256_v2  ;;  %v4297_v2 = vld [vmem:[#allocation2 + $0x2d8] ss:$24 sps:$4 sm:$0xff]  }
 0x8a9   :  { %3959 = vmatprep.subr.bf16.mxu1 %v4459_v32 }
 0x8ac   :  { %3960 = vmatpush3.bf16.msra.mxu1 %v4257_v3 }
 0x8ad   :  { %1930 = vmatprep.subr.bf16.mxu1 %v4268_v39 }
 0x92e   :  { %v1502_v58 = vpop.xlane.xlu1 %1501 }
 0x92f   :  { %v1504_v59 = vmul.f32 0.0078125, %v1502_v58  ;;  %v4288_v58 = vld [vmem:[#allocation2 + $0x274] ss:$24 sps:$4 sm:$0xff]  }
 0x931   :  { %v1505_v60 = vsub.f32 %v1498_v55, %v1504_v59  ;;  %v4284_v55 = vld [vmem:[#allocation2 + $0x244] ss:$24 sps:$4 sm:$0xff]   ;;  %v4286_v59 = vld [vmem:[#allocation2 + $0x270] ss:$24 sps:$4 sm:$0xff]  }
 0x933   :  { %v1506_v61 = vmul.f32 %v1505_v60, %v1505_v60 }
 0x935   :  { %1507 = vadd.xlane.f32.xlu0 %v1506_v61  ;;  %v4292_v61 = vld [vmem:[#allocation2 + $0x2a4] ss:$24 sps:$4 sm:$0xff]  }
 0x9c2   :  { %v1508_v11 = vpop.xlane.xlu0 %1507 }
 0x9c3   :  { %v1509_v12 = vmul.f32 0.0078125, %v1508_v11 }
 0x9c5   :  { %v1510_v14 = vadd.f32 1e-05, %v1509_v12 }
 0x9c7   :  { %4362 = vrsqrt.f32 %v1510_v14 }
 0x9d1   :  { %v4363_v15 = vpop.eup %4362 }
 0x9d2   :  { %v1512_v17 = vmul.f32 %v4363_v15, %v1505_v60  ;;  %v4289_v60 = vld [vmem:[#allocation2 + $0x278] ss:$24 sps:$4 sm:$0xff]  }
 0x9d3   :  { %v3599_v15 = vld [vmem:[%s5125_s5 + $0x11] ss:$0 sm:$0xff] }
 0x9d4   :  { %v1517_v19 = vmul.f32 %v3550_v16, %v1512_v17 }
 0x9d6   :  { %v1522_v20 = vadd.f32 %v3551_v18, %v1517_v19 }
 0x9d8   :  { %v1523_v21 = vpack.c.bf16 %v1522_v20, %v1522_v20 }
 0x9da   :  { %3962 = vmatmul.mubr.bf16.vlgmr.msra.gmra.mrb[36].mxu1 %v1523_v21 }
 0x9db   :  { %1962 = vmatprep.mubr.bf16.mxu1 %v4458_v0  ;;  %v3561_v0 = vld [vmem:[%s5125_s5 + $0x7] ss:$0 sm:$0xff]  ;;  %1931 = vmatpush1.bf16.msra.mxu1 %v4266_v38 }
 0x9dc   :  { %1932 = vmatprep.subr.bf16.mxu1 %v4272_v41 }
 0x9df   :  { %1933 = vmatpush1.bf16.msra.mxu1 %v4270_v43 }
 0x9e0   :  { %1934 = vmatprep.subr.bf16.mxu1 %v4276_v44 }
 0x9e3   :  { %1935 = vmatpush1.bf16.msra.mxu1 %v4274_v46 }
 0x9e4   :  { %1936 = vmatprep.subr.bf16.mxu1 %v4280_v51 }
 0x9e7   :  { %1937 = vmatpush1.bf16.msra.mxu1 %v4278_v53 }
 0x9e8   :  { %1938 = vmatprep.subr.bf16.mxu1 %v4284_v55 }
 0x9eb   :  { %1939 = vmatpush1.bf16.msra.mxu1 %v4282_v56 }
 0x9ec   :  { %1940 = vmatprep.subr.bf16.mxu1 %v4288_v58 }
 0x9ef   :  { %1941 = vmatpush1.bf16.msra.mxu1 %v4286_v59 }
 0x9f0   :  { %1942 = vmatprep.subr.bf16.mxu1 %v4292_v61 }
 0x9f3   :  { %1943 = vmatpush1.bf16.msra.mxu1 %v4290_v62 }
 0x9f4   :  { %1944 = vmatprep.subr.bf16.mxu1 %v4296_v45 }
 0x9f7   :  { %1945 = vmatpush1.bf16.msra.mxu1 %v4294_v1 }
 0x9f8   :  { %4005 = vmatprep.subr.bf16.mxu1 %v4459_v32 }
 0xaad   :  { %v1627_v24 = vpop.f32.mrb[36].mxu1 }
 0xaae   :  { %v1628_v25 = vadd.f32 %v3552_v8, %v1627_v24  ;;  %v3963_v26 = vpop.f32.mrb[37].mxu1 }
 0xaaf   :  { %v1630_v27 = vpop.f32.mrb[38].mxu1  ;;  %v3597_v26 = vld [vmem:[%s5125_s5 + $0x10] ss:$0 sm:$0xff] }
 0xab0   :  { %v1633_v28 = vmax.f32 %v1628_v25, 0.0  ;;  %v3964_v29 = vpop.f32.mrb[39].mxu1 }
 0xab2   :  { %v1634_v30 = vpack.c.bf16 %v1633_v28, %v1633_v28 }
 0xab4   :  { %3982 = vmatmul.mubr.bf16.vlgmr.msra.gmra.mrb[44].mxu0 %v1634_v30 }
 0xab5   :  { %4001 = vmatprep.mubr.msk.bf16.mxu0 %vm4460_vm1, %v4459_v32  ;;  %3986 = vmatpush3.bf16.msra.mxu0 %v4269_v40 }
 0xab6   :  { %3987 = vmatprep.subr.bf16.mxu0 %v4459_v32 }
 0xab9   :  { %3988 = vmatpush3.bf16.msra.mxu0 %v4273_v42 }
 0xaba   :  { %3989 = vmatprep.subr.bf16.mxu0 %v4459_v32 }
 0xabd   :  { %3990 = vmatpush3.bf16.msra.mxu0 %v4277_v50 }
 0xabe   :  { %3991 = vmatprep.subr.bf16.mxu0 %v4459_v32 }
 0xac1   :  { %3992 = vmatpush3.bf16.msra.mxu0 %v4281_v54 }
 0xac2   :  { %3993 = vmatprep.subr.bf16.mxu0 %v4459_v32 }
 0xac5   :  { %3994 = vmatpush3.bf16.msra.mxu0 %v4285_v57 }
 0xac6   :  { %3995 = vmatprep.subr.bf16.mxu0 %v4459_v32 }
 0xac9   :  { %3996 = vmatpush3.bf16.msra.mxu0 %v4289_v60 }
 0xaca   :  { %3997 = vmatprep.subr.bf16.mxu0 %v4459_v32 }
 0xacd   :  { %3998 = vmatpush3.bf16.msra.mxu0 %v4293_v63 }
 0xace   :  { %3999 = vmatprep.subr.bf16.mxu0 %v4459_v32 }
 0xad1   :  { %4000 = vmatpush3.bf16.msra.mxu0 %v4297_v2 }
 0xad2   :  { %4029 = vmatprep.subr.bf16.mxu0 %v4459_v32 }
 0xb87   :  { %v1738_v31 = vpop.f32.mrb[44].mxu0 }
 0xb88   :  { %v1739_v33 = vadd.f32 %v3561_v0, %v1738_v31  ;;  %v3983_v34 = vpop.f32.mrb[45].mxu0 }
 0xb89   :  { %v1741_v35 = vpop.f32.mrb[46].mxu0 }
 0xb8a   :  { %v3984_v36 = vpop.f32.mrb[47].mxu0  ;;  %v1744_v37 = vadd.f32 %v1739_v33, %v1522_v20 }
 0xb8c   :  { %1747 = vadd.xlane.f32.xlu0 %v1744_v37 }
 0xc19   :  { %v1748_v47 = vpop.xlane.xlu0 %1747 }
 0xc1a   :  { %v1749_v48 = vmul.f32 0.0078125, %v1748_v47 }
 0xc1c   :  { %v1750_v52 = vsub.f32 %v1744_v37, %v1749_v48 }
 0xc1e   :  { %v1751_v49 = vmul.f32 %v1750_v52, %v1750_v52 }
 0xc20   :  { %1752 = vadd.xlane.f32.xlu1 %v1751_v49 }
 0xcad   :  { %v1753_v3 = vpop.xlane.xlu1 %1752 }
 0xcae   :  { %v1754_v4 = vmul.f32 0.0078125, %v1753_v3 }
 0xcb0   :  { %v1755_v5 = vadd.f32 1e-05, %v1754_v4 }
 0xcb2   :  { %4364 = vrsqrt.f32 %v1755_v5 }
 0xcbc   :  { %v4365_v6 = vpop.eup %4364 }
 0xcbd   :  { %v1757_v9 = vmul.f32 %v4365_v6, %v1750_v52 }
 0xcbf   :  { %v1762_v11 = vmul.f32 %v3570_v7, %v1757_v9 }
 0xcc1   :  { %v4829_v12 = vadd.f32 %v3571_v10, %v1762_v11 }
 0xcc3   :  { %v1768_v14 = vpack.c.bf16 %v4829_v12, %v4829_v12 }
 0xcc5   :  { %1963 = vmatmul.mubr.bf16.vlgmr.msra.gmra.mrb[40].mxu1 %v1768_v14  ;;  %4002 = vmatmul.mubr.bf16.vlgmr.msra.gmra.mrb[48].mxu0 %v1768_v14 }
 0xcc6   :  { %4007 = vmatprep.mubr.msk.bf16.mxu1 %vm4460_vm1, %v4459_v32  ;;  %4031 = vmatprep.mubr.msk.bf16.mxu0 %vm4460_vm1, %v4459_v32 }
 0xd98   :  { %v1964_v16 = vpop.f32.mrb[40].mxu1  ;;  %v2005_v17 = vpop.f32.mrb[48].mxu0 }
 0xd99   :  { %v1966_v18 = vpop.f32.mrb[41].mxu1  ;;  %v4003_v19 = vpop.f32.mrb[49].mxu0  ;;  %v2031_v27 = vadd.f32 %v3601_v23, %v2005_v17  ;;  %v2017_v29 = vadd.f32 %v3597_v26, %v1964_v16 }
 0xd9a   :  { %v2024_v20 = vadd.f32 %v3599_v15, %v1966_v18  ;;  %v1968_v21 = vpop.f32.mrb[42].mxu1  ;;  %v2008_v22 = vpop.f32.mrb[50].mxu0 }
 0xd9b   :  { %v1969_v8 = vpop.f32.mrb[43].mxu1  ;;  %v4004_v24 = vpop.f32.mrb[51].mxu0  ;;  %v4848_v30 = vpack.c.bf16 %v2031_v27, %v2031_v27  ;;  %v2018_v0 = vpack.c.bf16 %v2017_v29, %v2017_v29 }
 0xd9c   :  { %v2025_v25 = vpack.c.bf16 %v2024_v20, %v2024_v20 }
 0xd9d   :  { %v2095_v31 = vsel %vm531_vm4, %v4848_v30, 0 }
 0xd9e   :  { %v2037_v28 = vsel %vm468_vm3, %v2025_v25, 0 }
 0xd9f   :  { %4006 = vmatpush3.bf16.xpose.msra.mxu1 %v2037_v28 }
 0xda0   :  { %4011 = vmatprep.subr.bf16.mxu1 %v4459_v32 }
 0xda6   :  { %4008 = vmatmul.mubr.msk.bf16.vlgmr.msra.gmra.mrb[44].mxu1 %vm468_vm3, %v2018_v0 }
 0xda7   :  { %4012 = vmatpush3.bf16.msra.mxu1 %v2095_v31  ;;  %4013 = vmatprep.mubr.msk.bf16.mxu1 %vm4460_vm1, %v4459_v32 }
 0xda8   :  { %4017 = vmatprep.subr.bf16.mxu1 %v4459_v32 }
 0xe79   :  { %v2073_v33 = vpop.f32.mrb[44].mxu1 }
 0xe7a   :  { %v2074_v34 = vadd.f32 %v2073_v33, %v4624_v13  ;;  %v4009_v35 = vpop.f32.mrb[45].mxu1 }
 0xe7b   :  { %v2076_v36 = vpop.f32.mrb[46].mxu1 }
 0xe7c   :  { %v4010_v37 = vpop.f32.mrb[47].mxu1  ;;  %v2079_v38 = vsel %vm515_vm6, %v2074_v34, -inf }
 0xe7d   :  { %2080 = vmax.xlane.f32.xlu0 %v2079_v38 }
 0xe93   :  { %2141 = vrot.lane.b32.xlu0 %v2025_v25, %s4461_s15 }
 0xe97   :  { %2250 = vrot.lane.b32.xlu0 %v2018_v0, %s4462_s16 }
 0xe9b   :  { %2360 = vrot.lane.b32.xlu0 %v2018_v0, %s4463_s17 }
 0xe9f   :  { %2470 = vrot.lane.b32.xlu0 %v2018_v0, %s4464_s18 }
 0xea3   :  { %2580 = vrot.lane.b32.xlu0 %v2018_v0, %s4465_s21 }
 0xea7   :  { %2690 = vrot.lane.b32.xlu0 %v2018_v0, %s4466_s22 }
 0xeab   :  { %2800 = vrot.lane.b32.xlu0 %v2018_v0, %s4467_s0 }
 0xf0a   :  { %v2081_v39 = vpop.xlane.xlu0 %2080 }
 0xf0b   :  { %v2082_v40 = vsub.f32 %v2074_v34, %v2081_v39 }
 0xf0d   :  { %v2083_v41 = vmul.f32 1.442695, %v2082_v40 }
 0xf0e   :  { %v2142_v52 = vpop.permute.xlu0 %2141 }
 0xf0f   :  { %4366 = vpow2.f32 %v2083_v41  ;;  %v2147_v54 = vsel %vm468_vm3, %v2142_v52, 0 }
 0xf12   :  { %v2251_v55 = vpop.permute.xlu0 %2250 }
 0xf16   :  { %v2361_v58 = vpop.permute.xlu0 %2360 }
 0xf19   :  { %v4367_v42 = vpop.eup %4366 }
 0xf1a   :  { %v2085_v43 = vsel %vm515_vm6, %v4367_v42, 0.0  ;;  %v2471_v61 = vpop.permute.xlu0 %2470 }
 0xf1b   :  { %2086 = vadd.xlane.f32.xlu1 %v2085_v43 }
 0xf1e   :  { %v2581_v45 = vpop.permute.xlu0 %2580 }
 0xf22   :  { %v2691_v3 = vpop.permute.xlu0 %2690 }
 0xf26   :  { %v2801_v5 = vpop.permute.xlu0 %2800 }
 0xf2c   :  { %2138 = vrot.lane.b32.xlu1 %v2018_v0, %s4461_s15 }
 0xf30   :  { %2252 = vrot.lane.b32.xlu1 %v2025_v25, %s4462_s16 }
 0xf34   :  { %2362 = vrot.lane.b32.xlu1 %v2025_v25, %s4463_s17 }
 0xf38   :  { %2472 = vrot.lane.b32.xlu1 %v2025_v25, %s4464_s18 }
 0xf3c   :  { %2582 = vrot.lane.b32.xlu1 %v2025_v25, %s4465_s21 }
 0xf40   :  { %2692 = vrot.lane.b32.xlu1 %v2025_v25, %s4466_s22 }
 0xf44   :  { %2802 = vrot.lane.b32.xlu1 %v2025_v25, %s4467_s0 }
 0xfa8   :  { %v2087_v44 = vpop.xlane.xlu1 %2086 }
 0xfa9   :  { %4368 = vrcp.f32 %v2087_v44 }
 0xfac   :  { %v2139_v46 = vpop.permute.xlu1 %2138 }
 0xfb0   :  { %v2253_v47 = vpop.permute.xlu1 %2252 }
 0xfb1   :  { %v2258_v48 = vsel %vm468_vm3, %v2253_v47, 0 }
 0xfb2   :  { %4030 = vmatpush3.bf16.xpose.msra.mxu0 %v2258_v48 }
 0xfb3   :  { %v4369_v49 = vpop.eup %4368  ;;  %4041 = vmatprep.subr.bf16.mxu0 %v4459_v32 }
 0xfb4   :  { %v2089_v50 = vmul.f32 %v4369_v49, %v4367_v42  ;;  %v2363_v51 = vpop.permute.xlu1 %2362 }
 0xfb5   :  { %v2368_v56 = vsel %vm468_vm3, %v2363_v51, 0 }
 0xfb6   :  { %v2090_v53 = vpack.c.bf16 %v2089_v50, %v2089_v50 }
 0xfb8   :  { %4014 = vmatmul.mubr.msk.bf16.vlgmr.msra.gmra.mrb[48].mxu1 %vm515_vm6, %v2090_v53  ;;  %v2473_v57 = vpop.permute.xlu1 %2472 }
 0xfb9   :  { %4018 = vmatpush3.bf16.xpose.msra.mxu1 %v2147_v54  ;;  %4032 = vmatmul.mubr.msk.bf16.vlgmr.msra.gmra.mrb[52].mxu0 %vm468_vm3, %v2251_v55  ;;  %v2478_v59 = vsel %vm468_vm3, %v2473_v57, 0 }
 0xfba   :  { %4042 = vmatpush3.bf16.xpose.msra.mxu0 %v2368_v56  ;;  %4019 = vmatprep.mubr.msk.bf16.mxu1 %vm4460_vm1, %v4459_v32 }
 0xfbb   :  { %4043 = vmatprep.mubr.msk.bf16.mxu0 %vm4460_vm1, %v4459_v32  ;;  %4053 = vmatprep.subr.bf16.mxu0 %v4459_v32 }
 0xfbc   :  { %4023 = vmatprep.subr.bf16.mxu1 %v4459_v32  ;;  %v2583_v60 = vpop.permute.xlu1 %2582 }
 0xfbd   :  { %v2588_v62 = vsel %vm468_vm3, %v2583_v60, 0 }
 0xfc0   :  { %4020 = vmatmul.mubr.msk.bf16.vlgmr.msra.gmra.mrb[52].mxu1 %vm468_vm3, %v2139_v46  ;;  %v2693_v63 = vpop.permute.xlu1 %2692 }
 0xfc1   :  { %4044 = vmatmul.mubr.msk.bf16.vlgmr.msra.gmra.mrb[56].mxu0 %vm468_vm3, %v2361_v58  ;;  %4025 = vmatprep.mubr.msk.bf16.mxu1 %vm4460_vm1, %v4459_v32  ;;  %v2698_v1 = vsel %vm468_vm3, %v2693_v63, 0 }
 0xfc2   :  { %4054 = vmatpush3.bf16.xpose.msra.mxu0 %v2478_v59  ;;  %4055 = vmatprep.mubr.msk.bf16.mxu0 %vm4460_vm1, %v4459_v32 }
 0xfc3   :  { %4065 = vmatprep.subr.bf16.mxu0 %v4459_v32 }
 0xfc4   :  { %v2803_v2 = vpop.permute.xlu1 %2802 }
 0xfc5   :  { %v2808_v4 = vsel %vm468_vm3, %v2803_v2, 0 }
 0xfc9   :  { %4056 = vmatmul.mubr.msk.bf16.vlgmr.msra.gmra.mrb[60].mxu0 %vm468_vm3, %v2471_v61 }
 0xfca   :  { %4066 = vmatpush3.bf16.xpose.msra.mxu0 %v2588_v62  ;;  %4067 = vmatprep.mubr.msk.bf16.mxu0 %vm4460_vm1, %v4459_v32 }
 0xfcb   :  { %4077 = vmatprep.subr.bf16.mxu0 %v4459_v32 }
 0xfd1   :  { %4068 = vmatmul.mubr.msk.bf16.vlgmr.msra.gmra.mrb[64].mxu0 %vm468_vm3, %v2581_v45 }
 0xfd2   :  { %4078 = vmatpush3.bf16.xpose.msra.mxu0 %v2698_v1  ;;  %4079 = vmatprep.mubr.msk.bf16.mxu0 %vm4460_vm1, %v4459_v32 }
 0xfd3   :  { %4089 = vmatprep.subr.bf16.mxu0 %v4459_v32 }
 0xfd9   :  { %4080 = vmatmul.mubr.msk.bf16.vlgmr.msra.gmra.mrb[68].mxu0 %vm468_vm3, %v2691_v3 }
 0xfda   :  { %4090 = vmatpush3.bf16.xpose.msra.mxu0 %v2808_v4  ;;  %4091 = vmatprep.mubr.msk.bf16.mxu0 %vm4460_vm1, %v4459_v32 }
 0xfdb   :  { %4101 = vmatprep.subr.bf16.mxu0 %v4459_v32 }
 0xfe1   :  { %4092 = vmatmul.mubr.msk.bf16.vlgmr.msra.gmra.mrb[72].mxu0 %vm468_vm3, %v2801_v5 }
 0xfe2   :  { %4117 = vmatprep.mubr.msk.bf16.mxu0 %vm4460_vm1, %v4459_v32 }
0x108b   :  { %v4911_v6 = vpop.f32.mrb[48].mxu1 }
0x108c   :  { %v4015_v7 = vpop.f32.mrb[49].mxu1  ;;  %v2294_v9 = vpop.f32.mrb[52].mxu0 }
0x108d   :  { %v2295_v10 = vadd.f32 %v2294_v9, %v4624_v13  ;;  %v2134_v11 = vpop.f32.mrb[50].mxu1  ;;  %v4033_v14 = vpop.f32.mrb[53].mxu0 }
0x108e   :  { %v4016_v15 = vpop.f32.mrb[51].mxu1  ;;  %v2297_v16 = vpop.f32.mrb[54].mxu0 }
0x108f   :  { %v4034_v17 = vpop.f32.mrb[55].mxu0  ;;  %v2300_v18 = vsel %vm515_vm6, %v2295_v10, -inf }
0x1090   :  { %2301 = vmax.xlane.f32.xlu0 %v2300_v18 }
0x1093   :  { %v2183_v19 = vpop.f32.mrb[52].mxu1 }
0x1094   :  { %v2184_v20 = vadd.f32 %v2183_v19, %v4624_v13  ;;  %v4021_v21 = vpop.f32.mrb[53].mxu1  ;;  %v2404_v22 = vpop.f32.mrb[56].mxu0 }
0x1095   :  { %v2405_v23 = vadd.f32 %v2404_v22, %v4624_v13  ;;  %v2186_v8 = vpop.f32.mrb[54].mxu1  ;;  %v4045_v24 = vpop.f32.mrb[57].mxu0 }
0x1096   :  { %v4022_v25 = vpop.f32.mrb[55].mxu1  ;;  %v2407_v26 = vpop.f32.mrb[58].mxu0  ;;  %v2189_v27 = vsel %vm515_vm6, %v2184_v20, -inf }
0x1097   :  { %v4046_v28 = vpop.f32.mrb[59].mxu0  ;;  %2190 = vmax.xlane.f32.xlu1 %v2189_v27  ;;  %v2410_v29 = vsel %vm515_vm6, %v2405_v23, -inf }
0x1098   :  { %2411 = vmax.xlane.f32.xlu0 %v2410_v29 }
0x109c   :  { %v2514_v0 = vpop.f32.mrb[60].mxu0 }
0x109d   :  { %v2515_v31 = vadd.f32 %v2514_v0, %v4624_v13  ;;  %v4057_v33 = vpop.f32.mrb[61].mxu0 }
0x109e   :  { %v2517_v34 = vpop.f32.mrb[62].mxu0 }
0x109f   :  { %v4058_v35 = vpop.f32.mrb[63].mxu0  ;;  %v2520_v36 = vsel %vm515_vm6, %v2515_v31, -inf }
0x10a0   :  { %2521 = vmax.xlane.f32.xlu1 %v2520_v36 }
0x10a4   :  { %v2624_v37 = vpop.f32.mrb[64].mxu0 }
0x10a5   :  { %v2625_v38 = vadd.f32 %v2624_v37, %v4624_v13  ;;  %v4069_v39 = vpop.f32.mrb[65].mxu0 }
0x10a6   :  { %v2627_v40 = vpop.f32.mrb[66].mxu0 }
0x10a7   :  { %v4070_v41 = vpop.f32.mrb[67].mxu0  ;;  %v2630_v42 = vsel %vm515_vm6, %v2625_v38, -inf }
0x10a8   :  { %2631 = vmax.xlane.f32.xlu0 %v2630_v42 }
0x10ac   :  { %v2734_v43 = vpop.f32.mrb[68].mxu0 }
0x10ad   :  { %v2735_v44 = vadd.f32 %v2734_v43, %v4624_v13  ;;  %v4081_v46 = vpop.f32.mrb[69].mxu0 }
0x10ae   :  { %v2737_v47 = vpop.f32.mrb[70].mxu0 }
0x10af   :  { %v4082_v48 = vpop.f32.mrb[71].mxu0  ;;  %v2740_v52 = vsel %vm515_vm6, %v2735_v44, -inf }
0x10b0   :  { %2741 = vmax.xlane.f32.xlu1 %v2740_v52 }
0x10b4   :  { %v2844_v49 = vpop.f32.mrb[72].mxu0 }
0x10b5   :  { %v2845_v50 = vadd.f32 %v2844_v49, %v4624_v13  ;;  %v4093_v51 = vpop.f32.mrb[73].mxu0 }
0x10b6   :  { %v2847_v53 = vpop.f32.mrb[74].mxu0 }
0x10b7   :  { %v4094_v54 = vpop.f32.mrb[75].mxu0  ;;  %v2850_v55 = vsel %vm515_vm6, %v2845_v50, -inf }
0x10b8   :  { %2851 = vmax.xlane.f32.xlu0 %v2850_v55 }
0x111d   :  { %v2302_v56 = vpop.xlane.xlu0 %2301 }
0x111e   :  { %v2303_v57 = vsub.f32 %v2295_v10, %v2302_v56 }
0x1120   :  { %v2304_v58 = vmul.f32 1.442695, %v2303_v57 }
0x1122   :  { %4370 = vpow2.f32 %v2304_v58 }
0x1124   :  { %v2191_v59 = vpop.xlane.xlu1 %2190 }
0x1125   :  { %v2192_v60 = vsub.f32 %v2184_v20, %v2191_v59  ;;  %v2412_v61 = vpop.xlane.xlu0 %2411 }
0x1126   :  { %v2413_v62 = vsub.f32 %v2405_v23, %v2412_v61 }
0x1127   :  { %v2193_v63 = vmul.f32 1.442695, %v2192_v60 }
0x1128   :  { %v2414_v45 = vmul.f32 1.442695, %v2413_v62 }
0x112a   :  { %4372 = vpow2.f32 %v2414_v45 }
0x112b   :  { %4374 = vpow2.f32 %v2193_v63 }
0x112c   :  { %v4927_v1 = vpop.eup %4370 }
0x112d   :  { %v2522_v13 = vpop.xlane.xlu1 %2521  ;;  %v2306_v2 = vsel %vm515_vm6, %v4927_v1, 0.0 }
0x112e   :  { %v2523_v3 = vsub.f32 %v2515_v31, %v2522_v13  ;;  %2307 = vadd.xlane.f32.xlu0 %v2306_v2 }
0x1130   :  { %v2524_v4 = vmul.f32 1.442695, %v2523_v3 }
0x1132   :  { %4376 = vpow2.f32 %v2524_v4 }
0x1134   :  { %v4931_v5 = vpop.eup %4372 }
0x1135   :  { %v2632_v7 = vpop.xlane.xlu0 %2631  ;;  %v2416_v9 = vsel %vm515_vm6, %v4931_v5, 0.0  ;;  %v4375_v10 = vpop.eup %4374 }
0x1136   :  { %v2633_v11 = vsub.f32 %v2625_v38, %v2632_v7  ;;  %2417 = vadd.xlane.f32.xlu1 %v2416_v9  ;;  %v2195_v15 = vsel %vm515_vm6, %v4375_v10, 0.0 }
0x1138   :  { %v2634_v14 = vmul.f32 1.442695, %v2633_v11 }
0x113a   :  { %4378 = vpow2.f32 %v2634_v14  ;;  %2196 = vadd.xlane.f32.xlu1 %v2195_v15 }
0x113c   :  { %v4936_v16 = vpop.eup %4376 }
0x113d   :  { %v2526_v17 = vsel %vm515_vm6, %v4936_v16, 0.0  ;;  %v2742_v20 = vpop.xlane.xlu1 %2741 }
0x113e   :  { %2527 = vadd.xlane.f32.xlu0 %v2526_v17  ;;  %v2743_v21 = vsub.f32 %v2735_v44, %v2742_v20 }
0x1140   :  { %v2744_v22 = vmul.f32 1.442695, %v2743_v21 }
0x1142   :  { %4380 = vpow2.f32 %v2744_v22 }
0x1144   :  { %v4940_v18 = vpop.eup %4378 }
0x1145   :  { %v2636_v19 = vsel %vm515_vm6, %v4940_v18, 0.0  ;;  %v2852_v23 = vpop.xlane.xlu0 %2851 }
0x1146   :  { %2637 = vadd.xlane.f32.xlu0 %v2636_v19  ;;  %v2853_v8 = vsub.f32 %v2845_v50, %v2852_v23  ;;  %v4298_v23 = vld [vmem:[#allocation2 + $0x18c] ss:$24 sps:$4 sm:$0xff]  }
0x1147   :  { %4102 = vmatpush3.bf16.msra.mxu0 %v4298_v23  ;;  %v4319_v23 = vld [vmem:[#allocation2 + $0x284] ss:$24 sps:$4 sm:$0xff]  }
0x1148   :  { %v2854_v25 = vmul.f32 1.442695, %v2853_v8  ;;  %v4299_v8 = vld [vmem:[#allocation2 + $0x1bc] ss:$24 sps:$4 sm:$0xff]   ;;  %4103 = vmatprep.subr.bf16.mxu0 %v4459_v32 }
0x114a   :  { %4382 = vpow2.f32 %v2854_v25 }
0x114b   :  { %2202 = vrot.lane.b32.xlu1 %v4848_v30, %s4461_s15  ;;  %4104 = vmatpush3.bf16.msra.mxu0 %v4299_v8 }
0x114c   :  { %v4950_v24 = vpop.eup %4380  ;;  %4105 = vmatprep.subr.bf16.mxu0 %v4459_v32 }
0x114d   :  { %v2746_v26 = vsel %vm515_vm6, %v4950_v24, 0.0 }
0x1154   :  { %v4954_v27 = vpop.eup %4382 }
0x1155   :  { %v2856_v28 = vsel %vm515_vm6, %v4954_v27, 0.0 }
0x115c   :  { %2312 = vrot.lane.b32.xlu0 %v4848_v30, %s4462_s16 }
0x1160   :  { %2422 = vrot.lane.b32.xlu0 %v4848_v30, %s4463_s17 }
0x116f   :  { %2747 = vadd.xlane.f32.xlu1 %v2746_v26 }
0x117f   :  { %2857 = vadd.xlane.f32.xlu0 %v2856_v28 }
0x1180   :  { %2532 = vrot.lane.b32.xlu1 %v4848_v30, %s4464_s18 }
0x1184   :  { %2752 = vrot.lane.b32.xlu1 %v4848_v30, %s4466_s22 }
0x1188   :  { %2862 = vrot.lane.b32.xlu1 %v4848_v30, %s4467_s0 }
0x1195   :  { %2642 = vrot.lane.b32.xlu0 %v4848_v30, %s4465_s21 }
0x11bb   :  { %v2308_v31 = vpop.xlane.xlu0 %2307 }
0x11c3   :  { %v2418_v29 = vpop.xlane.xlu1 %2417 }
0x11c7   :  { %v2197_v0 = vpop.xlane.xlu1 %2196 }
0x11c8   :  { %4384 = vrcp.f32 %v2197_v0  ;;  %v4302_v0 = vld [vmem:[#allocation2 + $0x24c] ss:$24 sps:$4 sm:$0xff]  }
0x11c9   :  { %4386 = vrcp.f32 %v2308_v31  ;;  %v4303_v31 = vld [vmem:[#allocation2 + $0x27c] ss:$24 sps:$4 sm:$0xff]  }
0x11ca   :  { %4388 = vrcp.f32 %v2418_v29  ;;  %v4301_v29 = vld [vmem:[#allocation2 + $0x21c] ss:$24 sps:$4 sm:$0xff]  }
0x11cb   :  { %v2203_v33 = vpop.permute.xlu1 %2202  ;;  %v2528_v35 = vpop.xlane.xlu0 %2527 }
0x11cc   :  { %v2208_v34 = vsel %vm531_vm4, %v2203_v33, 0  ;;  %4390 = vrcp.f32 %v2528_v35  ;;  %v4304_v33 = vld [vmem:[#allocation2 + $0x2ac] ss:$24 sps:$4 sm:$0xff]  }
0x11cd   :  { %4024 = vmatpush3.bf16.msra.mxu1 %v2208_v34 }
0x11ce   :  { %4035 = vmatprep.subr.bf16.mxu1 %v4459_v32 }
0x11d2   :  { %v4385_v36 = vpop.eup %4384 }
0x11d3   :  { %v2199_v37 = vmul.f32 %v4385_v36, %v4375_v10  ;;  %v2638_v38 = vpop.xlane.xlu0 %2637  ;;  %v4387_v40 = vpop.eup %4386 }
0x11d4   :  { %v2310_v42 = vmul.f32 %v4387_v40, %v4927_v1  ;;  %v4389_v46 = vpop.eup %4388  ;;  %4392 = vrcp.f32 %v2638_v38  ;;  %v4305_v38 = vld [vmem:[#allocation2 + $0x2dc] ss:$24 sps:$4 sm:$0xff]  }
0x11d5   :  { %v2200_v39 = vpack.c.bf16 %v2199_v37, %v2199_v37  ;;  %v2420_v48 = vmul.f32 %v4389_v46, %v4931_v5 }
0x11d6   :  { %v2311_v44 = vpack.c.bf16 %v2310_v42, %v2310_v42  ;;  %v4391_v49 = vpop.eup %4390 }
0x11d7   :  { %v2313_v41 = vpop.permute.xlu0 %2312  ;;  %4026 = vmatmul.mubr.msk.bf16.vlgmr.msra.gmra.mrb[56].mxu1 %vm515_vm6, %v2200_v39  ;;  %v2421_v52 = vpack.c.bf16 %v2420_v48, %v2420_v48  ;;  %v2530_v51 = vmul.f32 %v4391_v49, %v4936_v16 }
0x11d8   :  { %v2318_v30 = vsel %vm531_vm4, %v2313_v41, 0  ;;  %4037 = vmatprep.mubr.msk.bf16.mxu1 %vm4460_vm1, %v4459_v32 }
0x11d9   :  { %4036 = vmatpush3.bf16.msra.mxu1 %v2318_v30  ;;  %v2531_v55 = vpack.c.bf16 %v2530_v51, %v2530_v51 }
0x11da   :  { %4047 = vmatprep.subr.bf16.mxu1 %v4459_v32 }
0x11db   :  { %v2423_v43 = vpop.permute.xlu0 %2422 }
0x11dc   :  { %v2428_v47 = vsel %vm531_vm4, %v2423_v43, 0 }
0x11de   :  { %v4393_v56 = vpop.eup %4392 }
0x11df   :  { %4038 = vmatmul.mubr.msk.bf16.vlgmr.msra.gmra.mrb[60].mxu1 %vm515_vm6, %v2311_v44  ;;  %v2640_v58 = vmul.f32 %v4393_v56, %v4940_v18 }
0x11e0   :  { %4048 = vmatpush3.bf16.msra.mxu1 %v2428_v47  ;;  %4049 = vmatprep.mubr.msk.bf16.mxu1 %vm4460_vm1, %v4459_v32 }
0x11e1   :  { %4059 = vmatprep.subr.bf16.mxu1 %v4459_v32  ;;  %v2641_v62 = vpack.c.bf16 %v2640_v58, %v2640_v58 }
0x11e7   :  { %4050 = vmatmul.mubr.msk.bf16.vlgmr.msra.gmra.mrb[64].mxu1 %vm515_vm6, %v2421_v52 }
0x11e8   :  { %4061 = vmatprep.mubr.msk.bf16.mxu1 %vm4460_vm1, %v4459_v32 }
0x11fc   :  { %v2748_v50 = vpop.xlane.xlu1 %2747 }
0x11fd   :  { %4394 = vrcp.f32 %v2748_v50 }
0x1200   :  { %v2533_v53 = vpop.permute.xlu1 %2532 }
0x1201   :  { %v2538_v54 = vsel %vm531_vm4, %v2533_v53, 0 }
0x1202   :  { %4060 = vmatpush3.bf16.msra.mxu1 %v2538_v54 }
0x1203   :  { %4071 = vmatprep.subr.bf16.mxu1 %v4459_v32 }
0x1204   :  { %v2753_v61 = vpop.permute.xlu1 %2752 }
0x1205   :  { %4062 = vmatmul.mubr.msk.bf16.vlgmr.msra.gmra.mrb[68].mxu1 %vm515_vm6, %v2531_v55  ;;  %v2758_v45 = vsel %vm531_vm4, %v2753_v61, 0 }
0x1206   :  { %4073 = vmatprep.mubr.msk.bf16.mxu1 %vm4460_vm1, %v4459_v32 }
0x1207   :  { %v4395_v63 = vpop.eup %4394 }
0x1208   :  { %v2750_v1 = vmul.f32 %v4395_v63, %v4950_v24  ;;  %v2863_v13 = vpop.permute.xlu1 %2862  ;;  %v4300_v24 = vld [vmem:[#allocation2 + $0x1ec] ss:$24 sps:$4 sm:$0xff]  }
0x1209   :  { %v2868_v4 = vsel %vm531_vm4, %v2863_v13, 0  ;;  %4106 = vmatpush3.bf16.msra.mxu0 %v4300_v24 }
0x120a   :  { %v2751_v2 = vpack.c.bf16 %v2750_v1, %v2750_v1  ;;  %4107 = vmatprep.subr.bf16.mxu0 %v4459_v32 }
0x120c   :  { %v2858_v57 = vpop.xlane.xlu0 %2857 }
0x120d   :  { %4396 = vrcp.f32 %v2858_v57  ;;  %4108 = vmatpush3.bf16.msra.mxu0 %v4301_v29  ;;  %v3631_v29 = vld [vmem:[%s5125_s5 + $0x15] ss:$0 sm:$0xff] }
0x120e   :  { %4109 = vmatprep.subr.bf16.mxu0 %v4459_v32 }
0x1210   :  { %v2643_v59 = vpop.permute.xlu0 %2642 }
0x1211   :  { %v2648_v60 = vsel %vm531_vm4, %v2643_v59, 0  ;;  %4110 = vmatpush3.bf16.msra.mxu0 %v4302_v0 }
0x1212   :  { %4072 = vmatpush3.bf16.msra.mxu1 %v2648_v60  ;;  %4111 = vmatprep.subr.bf16.mxu0 %v4459_v32 }
0x1213   :  { %4083 = vmatprep.subr.bf16.mxu1 %v4459_v32 }
0x1215   :  { %4074 = vmatmul.mubr.msk.bf16.vlgmr.msra.gmra.mrb[72].mxu1 %vm515_vm6, %v2641_v62  ;;  %4112 = vmatpush3.bf16.msra.mxu0 %v4303_v31 }
0x1216   :  { %4084 = vmatpush3.bf16.msra.mxu1 %v2758_v45  ;;  %4085 = vmatprep.mubr.msk.bf16.mxu1 %vm4460_vm1, %v4459_v32 }
0x1217   :  { %4095 = vmatprep.subr.bf16.mxu1 %v4459_v32  ;;  %v4397_v3 = vpop.eup %4396  ;;  %4113 = vmatprep.subr.bf16.mxu0 %v4459_v32 }
0x1218   :  { %v2860_v5 = vmul.f32 %v4397_v3, %v4954_v27  ;;  %v4306_v3 = vld [vmem:[#allocation2 + $0x190] ss:$24 sps:$4 sm:$0xff]  }
0x1219   :  { %4114 = vmatpush3.bf16.msra.mxu0 %v4304_v33 }
0x121a   :  { %v2861_v7 = vpack.c.bf16 %v2860_v5, %v2860_v5  ;;  %4115 = vmatprep.subr.bf16.mxu0 %v4459_v32 }
0x121d   :  { %4086 = vmatmul.mubr.msk.bf16.vlgmr.msra.gmra.mrb[76].mxu1 %vm515_vm6, %v2751_v2  ;;  %4116 = vmatpush3.bf16.msra.mxu0 %v4305_v38 }
0x121e   :  { %4096 = vmatpush3.bf16.msra.mxu1 %v2868_v4  ;;  %4097 = vmatprep.mubr.msk.bf16.mxu1 %vm4460_vm1, %v4459_v32  ;;  %v4307_v4 = vld [vmem:[#allocation2 + $0x1c0] ss:$24 sps:$4 sm:$0xff]  }
0x121f   :  { %4121 = vmatprep.subr.bf16.mxu1 %v4459_v32  ;;  %4141 = vmatprep.subr.bf16.mxu0 %v4459_v32 }
0x1225   :  { %4098 = vmatmul.mubr.msk.bf16.vlgmr.msra.gmra.mrb[80].mxu1 %vm515_vm6, %v2861_v7 }
0x1226   :  { %4137 = vmatprep.mubr.msk.bf16.mxu1 %vm4460_vm1, %v4459_v32  ;;  %4122 = vmatpush3.bf16.msra.mxu1 %v4306_v3 }
0x1227   :  { %4123 = vmatprep.subr.bf16.mxu1 %v4459_v32 }
0x122a   :  { %4124 = vmatpush3.bf16.msra.mxu1 %v4307_v4 }
0x122b   :  { %4125 = vmatprep.subr.bf16.mxu1 %v4459_v32 }
0x12aa   :  { %v2244_v9 = vpop.f32.mrb[56].mxu1 }
0x12ab   :  { %2911 = vrot.lane.b32.xlu1 %v2244_v9, %s4467_s0  ;;  %v4027_v10 = vpop.f32.mrb[57].mxu1 }
0x12ac   :  { %v2247_v11 = vpop.f32.mrb[58].mxu1 }
0x12ad   :  { %v4028_v14 = vpop.f32.mrb[59].mxu1  ;;  %v4308_v11 = vld [vmem:[#allocation2 + $0x1f0] ss:$24 sps:$4 sm:$0xff]  }
0x12ae   :  { %4126 = vmatpush3.bf16.msra.mxu1 %v4308_v11  ;;  %v4309_v14 = vld [vmem:[#allocation2 + $0x220] ss:$24 sps:$4 sm:$0xff]   ;;  %v4327_v11 = vld [vmem:[%s5122_s2 + $0x28] sm:$0xff]  }
0x12af   :  { %4127 = vmatprep.subr.bf16.mxu1 %v4459_v32 }
0x12b2   :  { %v2354_v15 = vpop.f32.mrb[60].mxu1  ;;  %4128 = vmatpush3.bf16.msra.mxu1 %v4309_v14  ;;  %v4328_v14 = vld [vmem:[%s5122_s2 + $0x30] sm:$0xff]  }
0x12b3   :  { %2915 = vrot.lane.b32.xlu1 %v2354_v15, %s4466_s22  ;;  %v4039_v16 = vpop.f32.mrb[61].mxu1  ;;  %4129 = vmatprep.subr.bf16.mxu1 %v4459_v32  ;;  %v4311_v15 = vld [vmem:[#allocation2 + $0x280] ss:$24 sps:$4 sm:$0xff]  }
0x12b4   :  { %v2357_v17 = vpop.f32.mrb[62].mxu1  ;;  %v4312_v16 = vld [vmem:[#allocation2 + $0x2b0] ss:$24 sps:$4 sm:$0xff]  }
0x12b5   :  { %v4040_v18 = vpop.f32.mrb[63].mxu1  ;;  %v4313_v17 = vld [vmem:[#allocation2 + $0x2e0] ss:$24 sps:$4 sm:$0xff]  }
0x12b6   :  { %v4314_v18 = vld [vmem:[#allocation2 + $0x194] ss:$24 sps:$4 sm:$0xff]  }
0x12ba   :  { %v2464_v19 = vpop.f32.mrb[64].mxu1 }
0x12bb   :  { %2919 = vrot.lane.b32.xlu0 %v2464_v19, %s4465_s21  ;;  %v4051_v20 = vpop.f32.mrb[65].mxu1  ;;  %v4315_v19 = vld [vmem:[#allocation2 + $0x1c4] ss:$24 sps:$4 sm:$0xff]  }
0x12bc   :  { %v2467_v21 = vpop.f32.mrb[66].mxu1  ;;  %v4316_v20 = vld [vmem:[#allocation2 + $0x1f4] ss:$24 sps:$4 sm:$0xff]  }
0x12bd   :  { %v4052_v22 = vpop.f32.mrb[67].mxu1  ;;  %v4317_v21 = vld [vmem:[#allocation2 + $0x224] ss:$24 sps:$4 sm:$0xff]  }
0x12be   :  { %v4318_v22 = vld [vmem:[#allocation2 + $0x254] ss:$24 sps:$4 sm:$0xff]  }
0x12d8   :  { %v2574_v25 = vpop.f32.mrb[68].mxu1 }
0x12d9   :  { %2923 = vrot.lane.b32.xlu1 %v2574_v25, %s4464_s18  ;;  %v4063_v26 = vpop.f32.mrb[69].mxu1 }
0x12da   :  { %v2577_v27 = vpop.f32.mrb[70].mxu1 }
0x12db   :  { %v4064_v28 = vpop.f32.mrb[71].mxu1  ;;  %v3630_v27 = vld [vmem:[%s5125_s5 + $0x14] ss:$0 sm:$0xff] }
0x12e8   :  { %v2684_v34 = vpop.f32.mrb[72].mxu1 }
0x12e9   :  { %2927 = vrot.lane.b32.xlu0 %v2684_v34, %s4463_s17  ;;  %v4075_v35 = vpop.f32.mrb[73].mxu1  ;;  %v4320_v34 = vld [vmem:[#allocation2 + $0x2b4] ss:$24 sps:$4 sm:$0xff]  }
0x12ea   :  { %v2687_v36 = vpop.f32.mrb[74].mxu1  ;;  %v4321_v35 = vld [vmem:[#allocation2 + $0x2e4] ss:$24 sps:$4 sm:$0xff]  }
0x12eb   :  { %v4076_v37 = vpop.f32.mrb[75].mxu1  ;;  %v3633_v36 = vld [vmem:[%s5125_s5 + $0x16] ss:$0 sm:$0xff] }
0x12f0   :  { %v2794_v39 = vpop.f32.mrb[76].mxu1 }
0x12f1   :  { %2931 = vrot.lane.b32.xlu1 %v2794_v39, %s4462_s16  ;;  %v4087_v40 = vpop.f32.mrb[77].mxu1 }
0x12f2   :  { %v2797_v41 = vpop.f32.mrb[78].mxu1 }
0x12f3   :  { %v4088_v30 = vpop.f32.mrb[79].mxu1 }
0x12f8   :  { %v2904_v42 = vpop.f32.mrb[80].mxu1 }
0x12f9   :  { %2935 = vrot.lane.b32.xlu0 %v2904_v42, %s4461_s15  ;;  %v4099_v43 = vpop.f32.mrb[81].mxu1 }
0x12fa   :  { %v2907_v44 = vpop.f32.mrb[82].mxu1  ;;  %v3643_v43 = vld [vmem:[%s5125_s5 + $0x17] ss:$0 sm:$0xff] }
0x12fb   :  { %v4100_v46 = vpop.f32.mrb[83].mxu1 }
0x131d   :  { %v2912_v47 = vpop.permute.xlu1 %2911 }
0x131e   :  { %v2938_v50 = vsel %vm468_vm3, %v4911_v6, %v2912_v47  ;;  %v3619_v6 = vld [vmem:[%s5125_s5 + $0x13] ss:$0 sm:$0xff] }
0x1325   :  { %v2916_v48 = vpop.permute.xlu1 %2915 }
0x1326   :  { %v2939_v51 = vsel %vm1377_vm7, %v2938_v50, %v2916_v48 }
0x132d   :  { %v2920_v52 = vpop.permute.xlu0 %2919 }
0x132e   :  { %v2940_v54 = vsel %vm1379_vm8, %v2939_v51, %v2920_v52 }
0x134b   :  { %v2924_v49 = vpop.permute.xlu1 %2923 }
0x134c   :  { %v2941_v56 = vsel %vm151_vm0, %v2940_v54, %v2924_v49 }
0x135b   :  { %v2928_v53 = vpop.permute.xlu0 %2927 }
0x135c   :  { %v2942_v57 = vsel %vm1382_vm9, %v2941_v56, %v2928_v53 }
0x1363   :  { %v2932_v55 = vpop.permute.xlu1 %2931 }
0x1364   :  { %v2943_v58 = vsel %vm1384_vm10, %v2942_v57, %v2932_v55 }
0x136b   :  { %v2936_v59 = vpop.permute.xlu0 %2935 }
0x136c   :  { %v2944_v60 = vsel %vm1386_vm11, %v2943_v58, %v2936_v59  ;;  %v3654_v59 = vld [vmem:[%s5125_s5 + $0x18] ss:$0 sm:$0xff] }
0x136d   :  { %v2945_v61 = vpack.c.bf16 %v2944_v60, %v2944_v60 }
0x136f   :  { %4118 = vmatmul.mubr.bf16.vlgmr.msra.gmra.mrb[76].mxu0 %v2945_v61  ;;  %v3655_v61 = vld [vmem:[%s5125_s5 + $0x19] ss:$0 sm:$0xff] }
0x1370   :  { %4157 = vmatprep.mubr.msk.bf16.mxu0 %vm4460_vm1, %v4459_v32  ;;  %4142 = vmatpush3.bf16.msra.mxu0 %v4314_v18  ;;  %v4406_v18 = vld [vmem:[%s5123_s3] sm:$0x7f] }
0x1371   :  { %4143 = vmatprep.subr.bf16.mxu0 %v4459_v32 }
0x1374   :  { %4144 = vmatpush3.bf16.msra.mxu0 %v4315_v19  ;;  %v3339_v19 = vrot.slane %v4406_v18, 2 }
0x1375   :  { %4145 = vmatprep.subr.bf16.mxu0 %v4459_v32 }
0x1378   :  { %4146 = vmatpush3.bf16.msra.mxu0 %v4316_v20 }
0x1379   :  { %4147 = vmatprep.subr.bf16.mxu0 %v4459_v32 }
0x137c   :  { %4148 = vmatpush3.bf16.msra.mxu0 %v4317_v21 }
0x137d   :  { %4149 = vmatprep.subr.bf16.mxu0 %v4459_v32 }
0x1380   :  { %4150 = vmatpush3.bf16.msra.mxu0 %v4318_v22  ;;  %v3342_v22 = vrot.slane %v4406_v18, 3 }
0x1381   :  { %4151 = vmatprep.subr.bf16.mxu0 %v4459_v32 }
0x1384   :  { %4152 = vmatpush3.bf16.msra.mxu0 %v4319_v23 }
0x1385   :  { %4153 = vmatprep.subr.bf16.mxu0 %v4459_v32 }
0x1388   :  { %4154 = vmatpush3.bf16.msra.mxu0 %v4320_v34 }
0x1389   :  { %4155 = vmatprep.subr.bf16.mxu0 %v4459_v32 }
0x138c   :  { %4156 = vmatpush3.bf16.msra.mxu0 %v4321_v35  ;;  %v3457_v35 = vrot.slane %v4406_v18, 5 }
0x1442   :  { %v3049_v62 = vpop.f32.mrb[76].mxu0 }
0x1443   :  { %v3050_v63 = vadd.f32 %v3619_v6, %v3049_v62  ;;  %v4119_v45 = vpop.f32.mrb[77].mxu0 }
0x1444   :  { %v3052_v1 = vpop.f32.mrb[78].mxu0  ;;  %v4322_v45 = vld [vmem:[%s5122_s2] sm:$0xff]  }
0x1445   :  { %v4120_v13 = vpop.f32.mrb[79].mxu0  ;;  %v3055_v2 = vadd.f32 %v3050_v63, %v4829_v12  ;;  %v4310_v12 = vld [vmem:[#allocation2 + $0x250] ss:$24 sps:$4 sm:$0xff]  }
0x1446   :  { %4130 = vmatpush3.bf16.msra.mxu1 %v4310_v12  ;;  %v4323_v1 = vld [vmem:[%s5122_s2 + $0x8] sm:$0xff]   ;;  %v4329_v12 = vld [vmem:[%s5122_s2 + $0x38] sm:$0xff]  }
0x1447   :  { %3058 = vadd.xlane.f32.xlu1 %v3055_v2  ;;  %4131 = vmatprep.subr.bf16.mxu1 %v4459_v32 }
0x144a   :  { %4132 = vmatpush3.bf16.msra.mxu1 %v4311_v15 }
0x144b   :  { %4133 = vmatprep.subr.bf16.mxu1 %v4459_v32 }
0x144e   :  { %4134 = vmatpush3.bf16.msra.mxu1 %v4312_v16 }
0x144f   :  { %4135 = vmatprep.subr.bf16.mxu1 %v4459_v32 }
0x1452   :  { %4136 = vmatpush3.bf16.msra.mxu1 %v4313_v17 }
0x1453   :  { %4161 = vmatprep.subr.bf16.mxu1 %v4459_v32 }
0x14d4   :  { %v3059_v5 = vpop.xlane.xlu1 %3058 }
0x14d5   :  { %v3060_v7 = vmul.f32 0.0078125, %v3059_v5 }
0x14d7   :  { %v3061_v9 = vsub.f32 %v3055_v2, %v3060_v7  ;;  %v4324_v7 = vld [vmem:[%s5122_s2 + $0x10] sm:$0xff]  }
0x14d9   :  { %v3062_v10 = vmul.f32 %v3061_v9, %v3061_v9 }
0x14db   :  { %3063 = vadd.xlane.f32.xlu0 %v3062_v10  ;;  %v4326_v10 = vld [vmem:[%s5122_s2 + $0x20] sm:$0xff]  }
0x1568   :  { %v3064_v8 = vpop.xlane.xlu0 %3063 }
0x1569   :  { %v3065_v24 = vmul.f32 0.0078125, %v3064_v8 }
0x156b   :  { %v3066_v25 = vadd.f32 1e-05, %v3065_v24 }
0x156d   :  { %4398 = vrsqrt.f32 %v3066_v25  ;;  %v3410_v25 = vrot.slane %v4406_v18, 4 }
0x1577   :  { %v4399_v26 = vpop.eup %4398 }
0x1578   :  { %v3068_v28 = vmul.f32 %v4399_v26, %v3061_v9  ;;  %v4325_v9 = vld [vmem:[%s5122_s2 + $0x18] sm:$0xff]   ;;  %s4469_s2 = smov [#allocation5]  }
0x1579   :  { %s3474_s3 = sshll.u32 %s4469_s2, 4  ;;  %s3475_s3 = int_to_ptr.vmem [resolvable:$true] %s3474_s3 }
0x157a   :  { %v3073_v0 = vmul.f32 %v3630_v27, %v3068_v28  ;;  %s4429_s21 = scalar_lea.vmem %s3475_s3, 16  ;;  %s4433_s22 = scalar_lea.vmem %s3475_s3, 32 }
0x157b   :  { %p4430_p8 = scmp.ne.s32.totalorder %s3475_s3, %s4429_s21  ;;  %p4434_p9 = scmp.lt.s32.totalorder %s3475_s3, %s3475_s3 }
0x157c   :  { %v3078_v31 = vadd.f32 %v3631_v29, %v3073_v0  ;;  %p4435_p10 = scmp.lt.s32.totalorder %s4433_s22, %s4429_s21 }
0x157e   :  { %v3079_v33 = vpack.c.bf16 %v3078_v31, %v3078_v31  ;;  %p4436_p11 = por %p4435_p10, %p4434_p9 }
0x1580   :  { %4138 = vmatmul.mubr.bf16.vlgmr.msra.gmra.mrb[84].mxu1 %v3079_v33  ;;  %p4437_p12 = pnand %p4436_p11, %p4430_p8 }
0x1581   :  { %4177 = vmatprep.mubr.msk.bf16.mxu1 %vm4460_vm1, %v4459_v32  ;;  %4162 = vmatpush3.bf16.msra.mxu1 %v4322_v45 }
0x1582   :  { %4163 = vmatprep.subr.bf16.mxu1 %v4459_v32 }
0x1585   :  { %4164 = vmatpush3.bf16.msra.mxu1 %v4323_v1 }
0x1586   :  { %4165 = vmatprep.subr.bf16.mxu1 %v4459_v32 }
0x1589   :  { %4166 = vmatpush3.bf16.msra.mxu1 %v4324_v7 }
0x158a   :  { %4167 = vmatprep.subr.bf16.mxu1 %v4459_v32 }
0x158d   :  { %4168 = vmatpush3.bf16.msra.mxu1 %v4325_v9 }
0x158e   :  { %4169 = vmatprep.subr.bf16.mxu1 %v4459_v32 }
0x1591   :  { %4170 = vmatpush3.bf16.msra.mxu1 %v4326_v10 }
0x1592   :  { %4171 = vmatprep.subr.bf16.mxu1 %v4459_v32 }
0x1595   :  { %4172 = vmatpush3.bf16.msra.mxu1 %v4327_v11 }
0x1596   :  { %4173 = vmatprep.subr.bf16.mxu1 %v4459_v32 }
0x1599   :  { %4174 = vmatpush3.bf16.msra.mxu1 %v4328_v14 }
0x159a   :  { %4175 = vmatprep.subr.bf16.mxu1 %v4459_v32 }
0x159d   :  { %4176 = vmatpush3.bf16.msra.mxu1 %v4329_v12 }
0x1653   :  { %v3183_v37 = vpop.f32.mrb[84].mxu1 }
0x1654   :  { %v3184_v38 = vadd.f32 %v3633_v36, %v3183_v37  ;;  %v4139_v39 = vpop.f32.mrb[85].mxu1 }
0x1655   :  { %v3186_v40 = vpop.f32.mrb[86].mxu1  ;;  %v3463_v39 = vrot.slane %v4406_v18, 6 }
0x1656   :  { %v3189_v41 = vmax.f32 %v3184_v38, 0.0  ;;  %v4140_v30 = vpop.f32.mrb[87].mxu1 }
0x1658   :  { %v3190_v42 = vpack.c.bf16 %v3189_v41, %v3189_v41 }
0x165a   :  { %4158 = vmatmul.mubr.bf16.vlgmr.msra.gmra.mrb[80].mxu0 %v3190_v42 }
0x172d   :  { %v3294_v44 = vpop.f32.mrb[80].mxu0 }
0x172e   :  { %v3295_v46 = vadd.f32 %v3643_v43, %v3294_v44  ;;  %v4159_v47 = vpop.f32.mrb[81].mxu0 }
0x172f   :  { %v3297_v48 = vpop.f32.mrb[82].mxu0 }
0x1730   :  { %v4160_v52 = vpop.f32.mrb[83].mxu0  ;;  %v3300_v49 = vadd.f32 %v3295_v46, %v3078_v31 }
0x1732   :  { %3303 = vadd.xlane.f32.xlu0 %v3300_v49 }
0x17bf   :  { %v3304_v50 = vpop.xlane.xlu0 %3303 }
0x17c0   :  { %v3305_v51 = vmul.f32 0.0078125, %v3304_v50 }
0x17c2   :  { %v3306_v53 = vsub.f32 %v3300_v49, %v3305_v51 }
0x17c4   :  { %v3307_v54 = vmul.f32 %v3306_v53, %v3306_v53 }
0x17c6   :  { %3308 = vadd.xlane.f32.xlu1 %v3307_v54 }
0x1853   :  { %v3309_v55 = vpop.xlane.xlu1 %3308 }
0x1854   :  { %v3310_v56 = vmul.f32 0.0078125, %v3309_v55 }
0x1856   :  { %v3311_v57 = vadd.f32 1e-05, %v3310_v56 }
0x1858   :  { %4400 = vrsqrt.f32 %v3311_v57 }
0x1862   :  { %v4401_v58 = vpop.eup %4400 }
0x1863   :  { %v3313_v60 = vmul.f32 %v4401_v58, %v3306_v53 }
0x1865   :  { %v3318_v6 = vmul.f32 %v3654_v59, %v3313_v60 }
0x1867   :  { %v3323_v62 = vadd.f32 %v3655_v61, %v3318_v6 }
0x1869   :  { %v3325_v63 = vsel %vm3324_vm12, %v3323_v62, 0.0 }
0x186a   :  { %3326 = vadd.xlane.f32.xlu0 %v3325_v63 }
0x18f7   :  { %v3327_v13 = vpop.xlane.xlu0 %3326 }
0x18f8   :  { %v3328_v2 = vmul.f32 0.0078125, %v3327_v13 }
0x18fa   :  { %v3329_v3 = vsub.f32 %v3323_v62, %v3328_v2 }
0x18fc   :  { %v3330_v4 = vmul.f32 %v3329_v3, %v3329_v3 }
0x18fe   :  { %v3331_v5 = vsel %vm3324_vm12, %v3330_v4, 0.0 }
0x18ff   :  { %3332 = vadd.xlane.f32.xlu1 %v3331_v5 }
0x198c   :  { %v3333_v15 = vpop.xlane.xlu1 %3332 }
0x198d   :  { %v3334_v16 = vmul.f32 0.0078125, %v3333_v15 }
0x198f   :  { %v3335_v17 = vadd.f32 1e-05, %v3334_v16 }
0x1991   :  { %4402 = vrsqrt.f32 %v3335_v17 }
0x199b   :  { %v4403_v20 = vpop.eup %4402 }
0x199c   :  { %v3337_v21 = vmul.f32 %v4403_v20, %v3329_v3 }
0x199e   :  { %v3341_v23 = vmul.f32 %v3339_v19, %v3337_v21 }
0x19a0   :  { %v3344_v8 = vadd.f32 %v3342_v22, %v3341_v23 }
0x19a2   :  { %v3345_v24 = vpack.c.bf16 %v3344_v8, %v3344_v8 }
0x19a4   :  { %4178 = vmatmul.mubr.bf16.vlgmr.msra.gmra.mrb[88].mxu1 %v3345_v24 }
0x1a77   :  { %v3446_v26 = vpop.f32.mrb[88].mxu1 }
0x1a78   :  { %v3447_v32 = vadd.f32 %v3446_v26, %v3410_v25  ;;  %v4179_v27 = vpop.f32.mrb[89].mxu1 }
0x1a79   :  { %v3449_v28 = vpop.f32.mrb[90].mxu1 }
0x1a7a   :  { %v3453_v29 = vmul.f32 0.70710677, %v3447_v32  ;;  %v4180_v0 = vpop.f32.mrb[91].mxu1  ;;  %v3452_v33 = vmul.f32 0.5, %v3447_v32 }
0x1a7c   :  { %4404 = verf.f32 %v3453_v29 }
0x1a86   :  { %v4405_v31 = vpop.eup %4404 }
0x1a87   :  { %v3455_v34 = vadd.f32 1.0, %v4405_v31 }
0x1a89   :  { %v3456_v36 = vmul.f32 %v3455_v34, %v3452_v33 }
0x1a8b   :  { %v3459_v37 = vmul.f32 %v3457_v35, %v3456_v36 }
0x1a8d   :  { %v3460_v38 = vsel %vm3324_vm12, %v3459_v37, 0.0 }
0x1a8e   :  { %3461 = vadd.xlane.f32.xlu0 %v3460_v38 }
0x1b1b   :  { %v3462_v40 = vpop.xlane.xlu0 %3461 }
0x1b1c   :  { %v3465_v41 = vadd.f32 %v3463_v39, %v3462_v40 }
0x1b1e   :  { %3467 = vst.msk [vmem:[#allocation5] sm:$0x1] %vm3466_vm13, %v3465_v41 }
0x1b1f   :  { %4440 = shalt.err (!%p4437_p12)
}
0x1b20   :  { %s4441_s24 = scalar_lea.hbm %s5126_s6, 16 }
0x1b21   :  { %p4442_p13 = scmp.ne.s32.totalorder %s5126_s6, %s4441_s24  ;;  %p4445_p0 = scmp.lt.u32.totalorder %s4441_s24, %s5126_s6 }
0x1b23   :  { %p4447_p1 = pnand %p4445_p0, %p4442_p13 }
0x1b25   :  { %4450 = shalt.err (!%p4447_p1)
}
0x1b26   :  { %3477 = dma.vmem_to_hbm [thread:$0]  %s3475_s3, 16, %s5126_s6, [#allocation4]  }
0x1b27   :  { %4453 = dma.done.wait [#allocation4], 16  }
0x1b28   :  { %4454 = vsyncadd [#allocation4], 4294967280 }
0x1b29   :  { %3481 = vsyncpa [#allocation3], 1 }
0x1b2a   :  { %3482 = vsyncpa [#allocation4], 1 }

</bundles_post_ra>
